<compile_context>
chip_gen: v5e
topology: v5e:2x2
jax: 0.10.0
libtpu: 0.0.40
codegen_flags: <defaults>
</compile_context>

<pallas_src>
import math
import numpy as np
import jax
import jax.numpy as jnp
from jax import lax
from jax.experimental import pallas as pl
from jax.experimental.pallas import tpu as pltpu

EXPANSION = 4      # torchvision Bottleneck expansion
PAD = 8            # zero rows above/below the feature map in the conv3x3 scratch


def _round_up(x, m):
    return (x + m - 1) // m * m


# ---------------------------------------------------------------------------
# Host-side constant builders
# ---------------------------------------------------------------------------
def build_tap_offsets(w):
    # flattened-row offset of tap (dy, dx) of a padded 3x3 conv
    return [(dy - 1) * w + (dx - 1) for dy in range(3) for dx in range(3)]


def build_tap_mask(n, h, w, cin):
    """(n*h*w, 9*cin) 0/1 mask: column block t is 1 where tap t is inside the image."""
    hw = h * w
    m = np.zeros((n * hw, 9 * cin), np.float32)
    for dy in range(3):
        for dx in range(3):
            t = dy * 3 + dx
            for y in range(h):
                if not (0 <= y + dy - 1 < h):
                    continue
                for x in range(w):
                    if not (0 <= x + dx - 1 < w):
                        continue
                    for ni in range(n):
                        m[ni * hw + y * w + x, t * cin:(t + 1) * cin] = 1.0
    return m


def build_selectors_np(shot, ways, nq, hw):
    nk = shot * ways
    # per-way sum over shot (0/1; the 1/shot scale is applied in-kernel)
    avg = np.zeros((ways * hw, nk * hw), np.float32)
    for wy in range(ways):
        for s in range(shot):
            img = s * ways + wy
            for p in range(hw):
                avg[wy * hw + p, img * hw + p] = 1.0
    gq = np.kron(np.eye(nq, dtype=np.float32), np.ones((1, hw), np.float32))
    gp = np.kron(np.eye(ways, dtype=np.float32), np.ones((1, hw), np.float32))
    e = np.tile(np.eye(hw, dtype=np.float32), (nq, ways))
    return {'avg': avg, 'gq': gq, 'gp': gp,
            'gpT': np.ascontiguousarray(gp.T), 'e': e}


# ---------------------------------------------------------------------------
# Packing: many tiny tensors -> few VMEM inputs
# ---------------------------------------------------------------------------
def pack_rows(entries, dtype, row_align):
    """Stack 2-D arrays along rows into one zero-padded (R, ncols) buffer.

    Returns (buffer, spec) with spec[name] = (row_offset, rows, cols)."""
    ncols = max(np.asarray(a).shape[1] for _, a in entries)
    spec, chunks, off = {}, [], 0
    for name, a in entries:
        a = np.asarray(a, np.float32)
        r, c = a.shape
        rp = _round_up(r, row_align)
        buf = np.zeros((rp, ncols), np.float32)
        buf[:r, :c] = a
        spec[name] = (off, r, c)
        chunks.append(buf)
        off += rp
    return jnp.asarray(np.concatenate(chunks, axis=0), dtype), spec


def pack_biases(entries, ncols=64):
    spec, rows = {}, []
    for i, (name, b) in enumerate(entries):
        b = np.asarray(b, np.float32).reshape(-1)
        row = np.zeros((ncols,), np.float32)
        row[:b.shape[0]] = b
        spec[name] = (i, b.shape[0])
        rows.append(row)
    return jnp.asarray(np.stack(rows, axis=0)), spec


# ---------------------------------------------------------------------------
# The single fused Pallas kernel
# ---------------------------------------------------------------------------
def make_fused_kernel(cfg):
    f32, bf16 = jnp.float32, jnp.bfloat16
    hw, nq, ways, nk, shot = cfg['hw'], cfg['ways_hw_nq'][2], cfg['ways'], cfg['nk'], cfg['shot']
    nq = cfg['nq']
    taps = cfg['tap_offsets']
    wspec, bspec, cspec = cfg['wspec'], cfg['bspec'], cfg['cspec']
    nsup = nk * hw
    nqry = nq * hw

    def kernel(xb_ref, wpack_ref, cpack_ref, bpack_ref, out_ref, sc_conc, sc_proj):
        # ---- packed-buffer accessors (static offsets) ----
        def weight(name):
            off, r, c = wspec[name]
            return wpack_ref[pl.ds(off, r), 0:c]            # bf16 (r, c)

        def const(name):
            off, r, c = cspec[name]
            return cpack_ref[pl.ds(off, r), 0:c]            # bf16 0/1 (r, c)

        def bias(name):
            i, c = bspec[name]
            return bpack_ref[pl.ds(i, 1), 0:c]              # f32 (1, c)

        def mm(a, b):                                       # bf16 MXU, f32 accumulate
            return jnp.dot(a, b, preferred_element_type=f32)

        def conv1x1(x_b16, wname, bname, relu, residual=None):
            y = mm(x_b16, weight(wname)) + bias(bname)
            if residual is not None:
                y = y + residual
            return jnp.maximum(y, 0.0) if relu else y

        def conv3x3(x, wname, bname, scratch, mask, m_rows):
            # spatial 3x3 taps: zero-padded scratch + shifted sublane reads;
            # out-of-image taps are zeroed by the 0/1 mask (VPU), then ONE
            # K = 9*cin MXU matmul against the full 3x3 weight.
            scratch[pl.ds(PAD, m_rows), :] = x
            shifted = [scratch[pl.ds(PAD + o, m_rows), :] for o in taps]
            xcat = jnp.concatenate(shifted, axis=1)         # (m, 9*cin) f32
            xcat = (xcat * mask).astype(bf16)
            y = mm(xcat, weight(wname)) + bias(bname)
            return jnp.maximum(y, 0.0)

        def bottleneck(x, blk, scratch, mask, m_rows):
            x_b16 = x.astype(bf16)
            out = conv1x1(x_b16, blk['w1'], blk['b1'], relu=True)
            out = conv3x3(out, blk['w2'], blk['b2'], scratch, mask, m_rows)
            if 'wd' in blk:
                identity = conv1x1(x_b16, blk['wd'], blk['bd'], relu=False)
            else:
                identity = x
            return conv1x1(out.astype(bf16), blk['w3'], blk['b3'], relu=True,
                           residual=identity)

        # zero the conv3x3 pad rows once; only rows [PAD, PAD+m) get rewritten
        sc_conc[...] = jnp.zeros_like(sc_conc)
        sc_proj[...] = jnp.zeros_like(sc_proj)

        mask_conc = const('mask_conc')                      # (nsup, 9*cin)
        mask_proj = const('mask_proj')                      # (hw,   9*cin)
        avg = const('avg')                                  # (ways*hw, nk*hw)
        gq = const('gq')                                    # (nq, nq*hw)
        gp = const('gp')                                    # (ways, ways*hw)
        gpT = const('gpT')                                  # (ways*hw, ways)
        e = const('e')                                      # (nq*hw, ways*hw)

        # ---- base model: 3x3 conv (im2col'd in the wrapper) on the full batch ----
        feats = jnp.maximum(mm(xb_ref[...], weight('base_w')) + bias('base_b'), 0.0)
        x_sup = feats[:nsup, :]                             # (nk*hw, 64)
        x_qry = feats[nsup:, :]                             # (nq*hw, 64)

        # ---- proto: per-way mean over shot (reshaper is None in this branch) ----
        proto = mm(avg, x_sup.astype(bf16))                 # (ways*hw, 64)
        if shot != 1:
            proto = proto * (1.0 / shot)

        # ---- concentrator ----
        c = x_sup
        for blk in cfg['conc_blocks']:
            c = bottleneck(c, blk, sc_conc, mask_conc, nsup)
        c = mm(avg, c.astype(bf16))                         # per-way mean
        if shot != 1:
            c = c * (1.0 / shot)
        # concat per-way maps along channels -> (hw, ways*64)
        stacked = jnp.concatenate(
            [c[wy * hw:(wy + 1) * hw, :] for wy in range(ways)], axis=1)

        # ---- projector -> mask, softmax over channels per spatial position ----
        mk = stacked
        for blk in cfg['proj_blocks']:
            mk = bottleneck(mk, blk, sc_proj, mask_proj, hw)
        mk = mk - jnp.max(mk, axis=-1, keepdims=True)
        ex = jnp.exp(mk)
        mask = ex * pl.reciprocal(jnp.sum(ex, axis=-1, keepdims=True), approx=True)

        # ---- masked features: tile the mask once, slice for the smaller side ----
        reps = max(nq, ways)
        mask_rep = jnp.concatenate([mask] * reps, axis=0)   # (reps*hw, 64)
        qm = x_qry * mask_rep[:nqry, :]                     # (nq*hw, 64)
        pm = proto * mask_rep[:ways * hw, :]                # (ways*hw, 64)

        # ---- logits[qi, wy] = -||qm_qi - pm_wy||^2 = 2*cross - q2 - p2 ----
        cr = lax.dot_general(qm.astype(bf16), pm.astype(bf16),
                             (((1,), (1,)), ((), ())),
                             preferred_element_type=f32)    # (nq*hw, ways*hw)
        cross = mm(gq, (cr * e).astype(bf16))               # (nq, ways*hw)
        cross = mm(cross.astype(bf16), gpT)                 # (nq, ways)
        q2 = mm(gq, jnp.sum(qm * qm, axis=-1, keepdims=True).astype(bf16))  # (nq, 1)
        p2 = mm(gp, jnp.sum(pm * pm, axis=-1, keepdims=True).astype(bf16))  # (ways, 1)
        out_ref[...] = 2.0 * cross - q2 - p2.T

    return kernel


# ---------------------------------------------------------------------------
# Wrapper: im2col of the raw network input + one pallas_call
# ---------------------------------------------------------------------------
def im2col_3x3(x_nhwc):
    n, h, w, c = x_nhwc.shape
    xp = jnp.pad(x_nhwc, ((0, 0), (1, 1), (1, 1), (0, 0)))
    patches = [xp[:, dy:dy + h, dx:dx + w, :] for dy in range(3) for dx in range(3)]
    p = jnp.stack(patches, axis=3)               # (n, h, w, 9, c)
    return p.reshape(n * h * w, 9 * c)


def ctm_forward(cfg, packs, data_nchw):
    wpack, cpack, bpack = packs
    nq, ways, nk, hw = cfg['nq'], cfg['ways'], cfg['nk'], cfg['hw']
    planes = cfg['planes']
    nsup = nk * hw

    # NCHW -> NHWC, im2col the *network input* only (plain-JAX prologue on HBM
    # data); everything downstream stays inside the fused kernel / VMEM.
    data = jnp.transpose(data_nchw, (0, 2, 3, 1))
    xb = im2col_3x3(data).astype(jnp.bfloat16)   # (n_img*hw, 27)

    kernel = make_fused_kernel(cfg)
    vmem = lambda: pl.BlockSpec(memory_space=pltpu.MemorySpace.VMEM)
    return pl.pallas_call(
        kernel,
        out_shape=jax.ShapeDtypeStruct((nq, ways), jnp.float32),
        in_specs=[vmem(), vmem(), vmem(), vmem()],
        out_specs=vmem(),
        scratch_shapes=[pltpu.VMEM((PAD + nsup + PAD, planes), jnp.float32),
                        pltpu.VMEM((PAD + hw + PAD, planes), jnp.float32)],
    )(xb, wpack, cpack, bpack)


# ---------------------------------------------------------------------------
# Deterministic parameter construction (eval-mode BN folded into conv weights)
# ---------------------------------------------------------------------------
def init_conv_w(key, kh, kw, cin, cout):
    fan_in = kh * kw * cin
    std = 1.0 / math.sqrt(fan_in)
    return std * jax.random.normal(key, (kh * kw * cin, cout), jnp.float32)


def init_bn_stats(cout):
    return {'gamma': np.ones((cout,), np.float32), 'beta': np.zeros((cout,), np.float32),
            'mean': np.zeros((cout,), np.float32), 'var': np.ones((cout,), np.float32)}


def fold_bn(w, bn, eps=1e-5):
    scale = bn['gamma'] / np.sqrt(bn['var'] + eps)
    w = np.asarray(w, np.float32) * scale[None, :]
    b = bn['beta'] - bn['mean'] * scale
    return w, b


def init_bottleneck(key, inplanes, planes, with_downsample):
    ks = jax.random.split(key, 4)
    p = {}
    p['w1'], p['b1'] = fold_bn(init_conv_w(ks[0], 1, 1, inplanes, planes),
                               init_bn_stats(planes))
    p['w2'], p['b2'] = fold_bn(init_conv_w(ks[1], 3, 3, planes, planes),
                               init_bn_stats(planes))
    p['w3'], p['b3'] = fold_bn(init_conv_w(ks[2], 1, 1, planes, planes * EXPANSION),
                               init_bn_stats(planes * EXPANSION))
    if with_downsample:
        p['wd'], p['bd'] = fold_bn(init_conv_w(ks[3], 1, 1, inplanes, planes * EXPANSION),
                                   init_bn_stats(planes * EXPANSION))
    return p


def make_layer_params(key, inplanes, planes, blocks):
    keys = jax.random.split(key, blocks)
    out, cur = [], inplanes
    for k in keys:
        ds = (cur != planes * EXPANSION)          # stride == 1 everywhere here
        out.append(init_bottleneck(k, cur, planes, ds))
        cur = planes * EXPANSION
    return out


def init_base_model(key, cin=3, cout=64):
    # synthetic 3x3-conv (cin->cout) + bias + ReLU backbone stand-in (keeps 5x5)
    k1, k2 = jax.random.split(key)
    return {'w': np.asarray(init_conv_w(k1, 3, 3, cin, cout)),
            'b': np.asarray(0.01 * jax.random.normal(k2, (cout,), jnp.float32))}


def build_ctm_state(params, shot, ways, nq, h, w, planes=16):
    hw = h * w
    nk = shot * ways
    assert w + 1 <= PAD  # scratch pad must cover the largest tap shift

    # ---- pack conv weights (bf16, 16-row aligned) and biases (f32) ----
    w_entries = [('base_w', params['base']['w'])]
    b_entries = [('base_b', params['base']['b'])]
    blocks_cfg = {'conc': [], 'proj': []}
    groups = (('conc', params['concentrator']), ('proj', params['projector']))
    for gname, plist in groups:
        for bi, blk in enumerate(plist):
            names = {}
            for role in ('w1', 'w2', 'w3', 'wd'):
                if role in blk:
                    nm = f'{gname}{bi}_{role}'
                    w_entries.append((nm, blk[role]))
                    names[role] = nm
            for role in ('b1', 'b2', 'b3', 'bd'):
                if role in blk:
                    nm = f'{gname}{bi}_{role}'
                    b_entries.append((nm, blk[role]))
                    names[role] = nm
            blocks_cfg[gname].append(names)
    wpack, wspec = pack_rows(w_entries, dtype=jnp.bfloat16, row_align=16)
    bpack, bspec = pack_biases(b_entries, ncols=64)

    # ---- pack 0/1 selector / tap-mask constants (bf16, exact) ----
    sel = build_selectors_np(shot, ways, nq, hw)
    c_entries = [('avg', sel['avg']), ('gq', sel['gq']), ('gp', sel['gp']),
                 ('gpT', sel['gpT']), ('e', sel['e']),
                 ('mask_conc', build_tap_mask(nk, h, w, planes)),
                 ('mask_proj', build_tap_mask(1, h, w, planes))]
    cpack, cspec = pack_rows(c_entries, dtype=jnp.bfloat16, row_align=16)

    cfg = dict(shot=shot, ways=ways, nq=nq, nk=nk, h=h, w=w, hw=hw, planes=planes,
               ways_hw_nq=(ways, hw, nq),
               tap_offsets=build_tap_offsets(w),
               wspec=wspec, bspec=bspec, cspec=cspec,
               conc_blocks=blocks_cfg['conc'], proj_blocks=blocks_cfg['proj'])
    return cfg, (wpack, cpack, bpack)


# ---------------------------------------------------------------------------
if __name__ == "__main__":
    shot, ways = 1, 2             # args.shot, args.train_way (training mode)
    nq = 4
    nk = shot * ways
    H = W = 5
    hw = H * W

    key = jax.random.PRNGKey(0)
    k_data, k_base, k_conc, k_proj = jax.random.split(key, 4)

    params = {
        'base': init_base_model(k_base, cin=3, cout=64),
        # concentrator: inplanes=64,      planes=16, blocks=2 (no downsample)
        'concentrator': make_layer_params(k_conc, 64, 16, 2),
        # projector:    inplanes=64*ways, planes=16, blocks=2 (first has downsample)
        'projector': make_layer_params(k_proj, 64 * ways, 16, 2),
    }

    cfg, packs = build_ctm_state(params, shot, ways, nq, H, W, planes=16)

    data = jax.random.normal(k_data, (nk + nq, 3, H, W), jnp.float32)  # NCHW

    fwd = jax.jit(lambda pk, d: ctm_forward(cfg, pk, d))
    logits = fwd(packs, data)
    jax.block_until_ready(logits)
    assert logits.shape == (nq, ways)
    assert bool(jnp.all(jnp.isfinite(logits)))
    print("KERNEL_OK")
</pallas_src>

<mosaic_0001>
module attributes {stable_mosaic.version = 11 : i64} {
  func.func @kernel(%arg0: memref<150x27xbf16, #tpu.memory_space<vmem>>, %arg1: memref<1120x64xbf16, #tpu.memory_space<vmem>>, %arg2: memref<368x144xbf16, #tpu.memory_space<vmem>>, %arg3: memref<14x64xf32, #tpu.memory_space<vmem>>, %arg4: memref<4x2xf32, #tpu.memory_space<vmem>>, %arg5: memref<66x16xf32, #tpu.memory_space<vmem>>, %arg6: memref<41x16xf32, #tpu.memory_space<vmem>>) attributes {dimension_semantics = [], scalar_prefetch = 0 : i64, scratch_operands = 2 : i64, tpu.core_type = #tpu.core_type<tc>} {
    %cst = arith.constant 0.000000e+00 : f32
    %0 = vector.broadcast %cst : f32 to vector<66x16xf32>
    %c0 = arith.constant 0 : index
    %c0_0 = arith.constant 0 : index
    %1 = vector.load %arg5[%c0, %c0_0] : memref<66x16xf32, #tpu.memory_space<vmem>>, vector<66x16xf32>
    tpu.vector_store %arg5[%c0, %c0_0], %0 {strides = array<i32>} : memref<66x16xf32, #tpu.memory_space<vmem>>, vector<66x16xf32>,
    %cst_1 = arith.constant 0.000000e+00 : f32
    %2 = vector.broadcast %cst_1 : f32 to vector<41x16xf32>
    %c0_2 = arith.constant 0 : index
    %c0_3 = arith.constant 0 : index
    %3 = vector.load %arg6[%c0_2, %c0_3] : memref<41x16xf32, #tpu.memory_space<vmem>>, vector<41x16xf32>
    tpu.vector_store %arg6[%c0_2, %c0_3], %2 {strides = array<i32>} : memref<41x16xf32, #tpu.memory_space<vmem>>, vector<41x16xf32>,
    %c272 = arith.constant 272 : index
    %c0_4 = arith.constant 0 : index
    %4 = vector.load %arg2[%c272, %c0_4] : memref<368x144xbf16, #tpu.memory_space<vmem>>, vector<50x144xbf16>
    %c336 = arith.constant 336 : index
    %c0_5 = arith.constant 0 : index
    %5 = vector.load %arg2[%c336, %c0_5] : memref<368x144xbf16, #tpu.memory_space<vmem>>, vector<25x144xbf16>
    %c0_6 = arith.constant 0 : index
    %c0_7 = arith.constant 0 : index
    %6 = vector.load %arg2[%c0_6, %c0_7] : memref<368x144xbf16, #tpu.memory_space<vmem>>, vector<50x50xbf16>
    %c64 = arith.constant 64 : index
    %c0_8 = arith.constant 0 : index
    %7 = vector.load %arg2[%c64, %c0_8] : memref<368x144xbf16, #tpu.memory_space<vmem>>, vector<4x100xbf16>
    %c80 = arith.constant 80 : index
    %c0_9 = arith.constant 0 : index
    %8 = vector.load %arg2[%c80, %c0_9] : memref<368x144xbf16, #tpu.memory_space<vmem>>, vector<2x50xbf16>
    %c96 = arith.constant 96 : index
    %c0_10 = arith.constant 0 : index
    %9 = vector.load %arg2[%c96, %c0_10] : memref<368x144xbf16, #tpu.memory_space<vmem>>, vector<50x2xbf16>
    %c160 = arith.constant 160 : index
    %c0_11 = arith.constant 0 : index
    %10 = vector.load %arg2[%c160, %c0_11] : memref<368x144xbf16, #tpu.memory_space<vmem>>, vector<100x50xbf16>
    %c0_12 = arith.constant 0 : index
    %c0_13 = arith.constant 0 : index
    %11 = vector.load %arg0[%c0_12, %c0_13] : memref<150x27xbf16, #tpu.memory_space<vmem>>, vector<150x27xbf16>
    %c0_14 = arith.constant 0 : index
    %c0_15 = arith.constant 0 : index
    %12 = vector.load %arg1[%c0_14, %c0_15] : memref<1120x64xbf16, #tpu.memory_space<vmem>>, vector<27x64xbf16>
    %cst_16 = arith.constant dense<0.000000e+00> : vector<150x64xf32>
    %13 = tpu.matmul %11, %12, %cst_16 {dimension_numbers = #tpu.dot_dimension_numbers<[1], [0], [0], [1], [0, 0, 1, 1], [], []>} : vector<150x27xbf16>, vector<27x64xbf16>, vector<150x64xf32> -> vector<150x64xf32>
    %c0_17 = arith.constant 0 : index
    %c0_18 = arith.constant 0 : index
    %14 = vector.load %arg3[%c0_17, %c0_18] : memref<14x64xf32, #tpu.memory_space<vmem>>, vector<1x64xf32>
    %15 = vector.broadcast %14 : vector<1x64xf32> to vector<150x64xf32>
    %16 = arith.addf %13, %15 : vector<150x64xf32>
    %cst_19 = arith.constant 0.000000e+00 : f32
    %17 = vector.broadcast %cst_19 : f32 to vector<150x64xf32>
    %18 = arith.maximumf %16, %17 : vector<150x64xf32>
    %19 = vector.extract_strided_slice %18 {offsets = [0, 0], sizes = [50, 64], strides = [1, 1]} : vector<150x64xf32> to vector<50x64xf32>
    %20 = vector.extract_strided_slice %18 {offsets = [50, 0], sizes = [100, 64], strides = [1, 1]} : vector<150x64xf32> to vector<100x64xf32>
    %21 = arith.truncf %19 : vector<50x64xf32> to vector<50x64xbf16>
    %cst_20 = arith.constant dense<0.000000e+00> : vector<50x64xf32>
    %22 = tpu.matmul %6, %21, %cst_20 {dimension_numbers = #tpu.dot_dimension_numbers<[1], [0], [0], [1], [0, 0, 1, 1], [], []>} : vector<50x50xbf16>, vector<50x64xbf16>, vector<50x64xf32> -> vector<50x64xf32>
    %23 = arith.truncf %19 : vector<50x64xf32> to vector<50x64xbf16>
    %c32 = arith.constant 32 : index
    %c0_21 = arith.constant 0 : index
    %24 = vector.load %arg1[%c32, %c0_21] : memref<1120x64xbf16, #tpu.memory_space<vmem>>, vector<64x16xbf16>
    %cst_22 = arith.constant dense<0.000000e+00> : vector<50x16xf32>
    %25 = tpu.matmul %23, %24, %cst_22 {dimension_numbers = #tpu.dot_dimension_numbers<[1], [0], [0], [1], [0, 0, 1, 1], [], []>} : vector<50x64xbf16>, vector<64x16xbf16>, vector<50x16xf32> -> vector<50x16xf32>
    %c1 = arith.constant 1 : index
    %c0_23 = arith.constant 0 : index
    %26 = vector.load %arg3[%c1, %c0_23] : memref<14x64xf32, #tpu.memory_space<vmem>>, vector<1x16xf32>
    %27 = vector.broadcast %26 : vector<1x16xf32> to vector<50x16xf32>
    %28 = arith.addf %25, %27 : vector<50x16xf32>
    %cst_24 = arith.constant 0.000000e+00 : f32
    %29 = vector.broadcast %cst_24 : f32 to vector<50x16xf32>
    %30 = arith.maximumf %28, %29 : vector<50x16xf32>
    %c8 = arith.constant 8 : index
    %c0_25 = arith.constant 0 : index
    %31 = vector.load %arg5[%c8, %c0_25] : memref<66x16xf32, #tpu.memory_space<vmem>>, vector<50x16xf32>
    tpu.vector_store %arg5[%c8, %c0_25], %30 {strides = array<i32>} : memref<66x16xf32, #tpu.memory_space<vmem>>, vector<50x16xf32>,
    %c2 = arith.constant 2 : index
    %c0_26 = arith.constant 0 : index
    %32 = vector.load %arg5[%c2, %c0_26] : memref<66x16xf32, #tpu.memory_space<vmem>>, vector<50x16xf32>
    %c3 = arith.constant 3 : index
    %c0_27 = arith.constant 0 : index
    %33 = vector.load %arg5[%c3, %c0_27] : memref<66x16xf32, #tpu.memory_space<vmem>>, vector<50x16xf32>
    %c4 = arith.constant 4 : index
    %c0_28 = arith.constant 0 : index
    %34 = vector.load %arg5[%c4, %c0_28] : memref<66x16xf32, #tpu.memory_space<vmem>>, vector<50x16xf32>
    %c7 = arith.constant 7 : index
    %c0_29 = arith.constant 0 : index
    %35 = vector.load %arg5[%c7, %c0_29] : memref<66x16xf32, #tpu.memory_space<vmem>>, vector<50x16xf32>
    %c8_30 = arith.constant 8 : index
    %c0_31 = arith.constant 0 : index
    %36 = vector.load %arg5[%c8_30, %c0_31] : memref<66x16xf32, #tpu.memory_space<vmem>>, vector<50x16xf32>
    %c9 = arith.constant 9 : index
    %c0_32 = arith.constant 0 : index
    %37 = vector.load %arg5[%c9, %c0_32] : memref<66x16xf32, #tpu.memory_space<vmem>>, vector<50x16xf32>
    %c12 = arith.constant 12 : index
    %c0_33 = arith.constant 0 : index
    %38 = vector.load %arg5[%c12, %c0_33] : memref<66x16xf32, #tpu.memory_space<vmem>>, vector<50x16xf32>
    %c13 = arith.constant 13 : index
    %c0_34 = arith.constant 0 : index
    %39 = vector.load %arg5[%c13, %c0_34] : memref<66x16xf32, #tpu.memory_space<vmem>>, vector<50x16xf32>
    %c14 = arith.constant 14 : index
    %c0_35 = arith.constant 0 : index
    %40 = vector.load %arg5[%c14, %c0_35] : memref<66x16xf32, #tpu.memory_space<vmem>>, vector<50x16xf32>
    %41 = tpu.concatenate %32, %33, %34, %35, %36, %37, %38, %39, %40 in 1 : vector<50x16xf32>, vector<50x16xf32>, vector<50x16xf32>, vector<50x16xf32>, vector<50x16xf32>, vector<50x16xf32>, vector<50x16xf32>, vector<50x16xf32>, vector<50x16xf32> -> vector<50x144xf32>
    %42 = arith.extf %4 : vector<50x144xbf16> to vector<50x144xf32>
    %43 = arith.mulf %41, %42 : vector<50x144xf32>
    %44 = arith.truncf %43 : vector<50x144xf32> to vector<50x144xbf16>
    %c96_36 = arith.constant 96 : index
    %c0_37 = arith.constant 0 : index
    %45 = vector.load %arg1[%c96_36, %c0_37] : memref<1120x64xbf16, #tpu.memory_space<vmem>>, vector<144x16xbf16>
    %cst_38 = arith.constant dense<0.000000e+00> : vector<50x16xf32>
    %46 = tpu.matmul %44, %45, %cst_38 {dimension_numbers = #tpu.dot_dimension_numbers<[1], [0], [0], [1], [0, 0, 1, 1], [], []>} : vector<50x144xbf16>, vector<144x16xbf16>, vector<50x16xf32> -> vector<50x16xf32>
    %c2_39 = arith.constant 2 : index
    %c0_40 = arith.constant 0 : index
    %47 = vector.load %arg3[%c2_39, %c0_40] : memref<14x64xf32, #tpu.memory_space<vmem>>, vector<1x16xf32>
    %48 = vector.broadcast %47 : vector<1x16xf32> to vector<50x16xf32>
    %49 = arith.addf %46, %48 : vector<50x16xf32>
    %cst_41 = arith.constant 0.000000e+00 : f32
    %50 = vector.broadcast %cst_41 : f32 to vector<50x16xf32>
    %51 = arith.maximumf %49, %50 : vector<50x16xf32>
    %52 = arith.truncf %51 : vector<50x16xf32> to vector<50x16xbf16>
    %c240 = arith.constant 240 : index
    %c0_42 = arith.constant 0 : index
    %53 = vector.load %arg1[%c240, %c0_42] : memref<1120x64xbf16, #tpu.memory_space<vmem>>, vector<16x64xbf16>
    %cst_43 = arith.constant dense<0.000000e+00> : vector<50x64xf32>
    %54 = tpu.matmul %52, %53, %cst_43 {dimension_numbers = #tpu.dot_dimension_numbers<[1], [0], [0], [1], [0, 0, 1, 1], [], []>} : vector<50x16xbf16>, vector<16x64xbf16>, vector<50x64xf32> -> vector<50x64xf32>
    %c3_44 = arith.constant 3 : index
    %c0_45 = arith.constant 0 : index
    %55 = vector.load %arg3[%c3_44, %c0_45] : memref<14x64xf32, #tpu.memory_space<vmem>>, vector<1x64xf32>
    %56 = vector.broadcast %55 : vector<1x64xf32> to vector<50x64xf32>
    %57 = arith.addf %54, %56 : vector<50x64xf32>
    %58 = arith.addf %57, %19 : vector<50x64xf32>
    %cst_46 = arith.constant 0.000000e+00 : f32
    %59 = vector.broadcast %cst_46 : f32 to vector<50x64xf32>
    %60 = arith.maximumf %58, %59 : vector<50x64xf32>
    %61 = arith.truncf %60 : vector<50x64xf32> to vector<50x64xbf16>
    %c256 = arith.constant 256 : index
    %c0_47 = arith.constant 0 : index
    %62 = vector.load %arg1[%c256, %c0_47] : memref<1120x64xbf16, #tpu.memory_space<vmem>>, vector<64x16xbf16>
    %cst_48 = arith.constant dense<0.000000e+00> : vector<50x16xf32>
    %63 = tpu.matmul %61, %62, %cst_48 {dimension_numbers = #tpu.dot_dimension_numbers<[1], [0], [0], [1], [0, 0, 1, 1], [], []>} : vector<50x64xbf16>, vector<64x16xbf16>, vector<50x16xf32> -> vector<50x16xf32>
    %c4_49 = arith.constant 4 : index
    %c0_50 = arith.constant 0 : index
    %64 = vector.load %arg3[%c4_49, %c0_50] : memref<14x64xf32, #tpu.memory_space<vmem>>, vector<1x16xf32>
    %65 = vector.broadcast %64 : vector<1x16xf32> to vector<50x16xf32>
    %66 = arith.addf %63, %65 : vector<50x16xf32>
    %cst_51 = arith.constant 0.000000e+00 : f32
    %67 = vector.broadcast %cst_51 : f32 to vector<50x16xf32>
    %68 = arith.maximumf %66, %67 : vector<50x16xf32>
    %c8_52 = arith.constant 8 : index
    %c0_53 = arith.constant 0 : index
    %69 = vector.load %arg5[%c8_52, %c0_53] : memref<66x16xf32, #tpu.memory_space<vmem>>, vector<50x16xf32>
    tpu.vector_store %arg5[%c8_52, %c0_53], %68 {strides = array<i32>} : memref<66x16xf32, #tpu.memory_space<vmem>>, vector<50x16xf32>,
    %c2_54 = arith.constant 2 : index
    %c0_55 = arith.constant 0 : index
    %70 = vector.load %arg5[%c2_54, %c0_55] : memref<66x16xf32, #tpu.memory_space<vmem>>, vector<50x16xf32>
    %c3_56 = arith.constant 3 : index
    %c0_57 = arith.constant 0 : index
    %71 = vector.load %arg5[%c3_56, %c0_57] : memref<66x16xf32, #tpu.memory_space<vmem>>, vector<50x16xf32>
    %c4_58 = arith.constant 4 : index
    %c0_59 = arith.constant 0 : index
    %72 = vector.load %arg5[%c4_58, %c0_59] : memref<66x16xf32, #tpu.memory_space<vmem>>, vector<50x16xf32>
    %c7_60 = arith.constant 7 : index
    %c0_61 = arith.constant 0 : index
    %73 = vector.load %arg5[%c7_60, %c0_61] : memref<66x16xf32, #tpu.memory_space<vmem>>, vector<50x16xf32>
    %c8_62 = arith.constant 8 : index
    %c0_63 = arith.constant 0 : index
    %74 = vector.load %arg5[%c8_62, %c0_63] : memref<66x16xf32, #tpu.memory_space<vmem>>, vector<50x16xf32>
    %c9_64 = arith.constant 9 : index
    %c0_65 = arith.constant 0 : index
    %75 = vector.load %arg5[%c9_64, %c0_65] : memref<66x16xf32, #tpu.memory_space<vmem>>, vector<50x16xf32>
    %c12_66 = arith.constant 12 : index
    %c0_67 = arith.constant 0 : index
    %76 = vector.load %arg5[%c12_66, %c0_67] : memref<66x16xf32, #tpu.memory_space<vmem>>, vector<50x16xf32>
    %c13_68 = arith.constant 13 : index
    %c0_69 = arith.constant 0 : index
    %77 = vector.load %arg5[%c13_68, %c0_69] : memref<66x16xf32, #tpu.memory_space<vmem>>, vector<50x16xf32>
    %c14_70 = arith.constant 14 : index
    %c0_71 = arith.constant 0 : index
    %78 = vector.load %arg5[%c14_70, %c0_71] : memref<66x16xf32, #tpu.memory_space<vmem>>, vector<50x16xf32>
    %79 = tpu.concatenate %70, %71, %72, %73, %74, %75, %76, %77, %78 in 1 : vector<50x16xf32>, vector<50x16xf32>, vector<50x16xf32>, vector<50x16xf32>, vector<50x16xf32>, vector<50x16xf32>, vector<50x16xf32>, vector<50x16xf32>, vector<50x16xf32> -> vector<50x144xf32>
    %80 = arith.extf %4 : vector<50x144xbf16> to vector<50x144xf32>
    %81 = arith.mulf %79, %80 : vector<50x144xf32>
    %82 = arith.truncf %81 : vector<50x144xf32> to vector<50x144xbf16>
    %c320 = arith.constant 320 : index
    %c0_72 = arith.constant 0 : index
    %83 = vector.load %arg1[%c320, %c0_72] : memref<1120x64xbf16, #tpu.memory_space<vmem>>, vector<144x16xbf16>
    %cst_73 = arith.constant dense<0.000000e+00> : vector<50x16xf32>
    %84 = tpu.matmul %82, %83, %cst_73 {dimension_numbers = #tpu.dot_dimension_numbers<[1], [0], [0], [1], [0, 0, 1, 1], [], []>} : vector<50x144xbf16>, vector<144x16xbf16>, vector<50x16xf32> -> vector<50x16xf32>
    %c5 = arith.constant 5 : index
    %c0_74 = arith.constant 0 : index
    %85 = vector.load %arg3[%c5, %c0_74] : memref<14x64xf32, #tpu.memory_space<vmem>>, vector<1x16xf32>
    %86 = vector.broadcast %85 : vector<1x16xf32> to vector<50x16xf32>
    %87 = arith.addf %84, %86 : vector<50x16xf32>
    %cst_75 = arith.constant 0.000000e+00 : f32
    %88 = vector.broadcast %cst_75 : f32 to vector<50x16xf32>
    %89 = arith.maximumf %87, %88 : vector<50x16xf32>
    %90 = arith.truncf %89 : vector<50x16xf32> to vector<50x16xbf16>
    %c464 = arith.constant 464 : index
    %c0_76 = arith.constant 0 : index
    %91 = vector.load %arg1[%c464, %c0_76] : memref<1120x64xbf16, #tpu.memory_space<vmem>>, vector<16x64xbf16>
    %cst_77 = arith.constant dense<0.000000e+00> : vector<50x64xf32>
    %92 = tpu.matmul %90, %91, %cst_77 {dimension_numbers = #tpu.dot_dimension_numbers<[1], [0], [0], [1], [0, 0, 1, 1], [], []>} : vector<50x16xbf16>, vector<16x64xbf16>, vector<50x64xf32> -> vector<50x64xf32>
    %c6 = arith.constant 6 : index
    %c0_78 = arith.constant 0 : index
    %93 = vector.load %arg3[%c6, %c0_78] : memref<14x64xf32, #tpu.memory_space<vmem>>, vector<1x64xf32>
    %94 = vector.broadcast %93 : vector<1x64xf32> to vector<50x64xf32>
    %95 = arith.addf %92, %94 : vector<50x64xf32>
    %96 = arith.addf %95, %60 : vector<50x64xf32>
    %cst_79 = arith.constant 0.000000e+00 : f32
    %97 = vector.broadcast %cst_79 : f32 to vector<50x64xf32>
    %98 = arith.maximumf %96, %97 : vector<50x64xf32>
    %99 = arith.truncf %98 : vector<50x64xf32> to vector<50x64xbf16>
    %cst_80 = arith.constant dense<0.000000e+00> : vector<50x64xf32>
    %100 = tpu.matmul %6, %99, %cst_80 {dimension_numbers = #tpu.dot_dimension_numbers<[1], [0], [0], [1], [0, 0, 1, 1], [], []>} : vector<50x50xbf16>, vector<50x64xbf16>, vector<50x64xf32> -> vector<50x64xf32>
    %101 = vector.extract_strided_slice %100 {offsets = [0, 0], sizes = [25, 64], strides = [1, 1]} : vector<50x64xf32> to vector<25x64xf32>
    %102 = vector.extract_strided_slice %100 {offsets = [25, 0], sizes = [25, 64], strides = [1, 1]} : vector<50x64xf32> to vector<25x64xf32>
    %103 = tpu.concatenate %101, %102 in 1 : vector<25x64xf32>, vector<25x64xf32> -> vector<25x128xf32>
    %104 = arith.truncf %103 : vector<25x128xf32> to vector<25x128xbf16>
    %c480 = arith.constant 480 : index
    %c0_81 = arith.constant 0 : index
    %105 = vector.load %arg1[%c480, %c0_81] : memref<1120x64xbf16, #tpu.memory_space<vmem>>, vector<128x16xbf16>
    %cst_82 = arith.constant dense<0.000000e+00> : vector<25x16xf32>
    %106 = tpu.matmul %104, %105, %cst_82 {dimension_numbers = #tpu.dot_dimension_numbers<[1], [0], [0], [1], [0, 0, 1, 1], [], []>} : vector<25x128xbf16>, vector<128x16xbf16>, vector<25x16xf32> -> vector<25x16xf32>
    %c7_83 = arith.constant 7 : index
    %c0_84 = arith.constant 0 : index
    %107 = vector.load %arg3[%c7_83, %c0_84] : memref<14x64xf32, #tpu.memory_space<vmem>>, vector<1x16xf32>
    %108 = vector.broadcast %107 : vector<1x16xf32> to vector<25x16xf32>
    %109 = arith.addf %106, %108 : vector<25x16xf32>
    %cst_85 = arith.constant 0.000000e+00 : f32
    %110 = vector.broadcast %cst_85 : f32 to vector<25x16xf32>
    %111 = arith.maximumf %109, %110 : vector<25x16xf32>
    %c8_86 = arith.constant 8 : index
    %c0_87 = arith.constant 0 : index
    %112 = vector.load %arg6[%c8_86, %c0_87] : memref<41x16xf32, #tpu.memory_space<vmem>>, vector<25x16xf32>
    tpu.vector_store %arg6[%c8_86, %c0_87], %111 {strides = array<i32>} : memref<41x16xf32, #tpu.memory_space<vmem>>, vector<25x16xf32>,
    %c2_88 = arith.constant 2 : index
    %c0_89 = arith.constant 0 : index
    %113 = vector.load %arg6[%c2_88, %c0_89] : memref<41x16xf32, #tpu.memory_space<vmem>>, vector<25x16xf32>
    %c3_90 = arith.constant 3 : index
    %c0_91 = arith.constant 0 : index
    %114 = vector.load %arg6[%c3_90, %c0_91] : memref<41x16xf32, #tpu.memory_space<vmem>>, vector<25x16xf32>
    %c4_92 = arith.constant 4 : index
    %c0_93 = arith.constant 0 : index
    %115 = vector.load %arg6[%c4_92, %c0_93] : memref<41x16xf32, #tpu.memory_space<vmem>>, vector<25x16xf32>
    %c7_94 = arith.constant 7 : index
    %c0_95 = arith.constant 0 : index
    %116 = vector.load %arg6[%c7_94, %c0_95] : memref<41x16xf32, #tpu.memory_space<vmem>>, vector<25x16xf32>
    %c8_96 = arith.constant 8 : index
    %c0_97 = arith.constant 0 : index
    %117 = vector.load %arg6[%c8_96, %c0_97] : memref<41x16xf32, #tpu.memory_space<vmem>>, vector<25x16xf32>
    %c9_98 = arith.constant 9 : index
    %c0_99 = arith.constant 0 : index
    %118 = vector.load %arg6[%c9_98, %c0_99] : memref<41x16xf32, #tpu.memory_space<vmem>>, vector<25x16xf32>
    %c12_100 = arith.constant 12 : index
    %c0_101 = arith.constant 0 : index
    %119 = vector.load %arg6[%c12_100, %c0_101] : memref<41x16xf32, #tpu.memory_space<vmem>>, vector<25x16xf32>
    %c13_102 = arith.constant 13 : index
    %c0_103 = arith.constant 0 : index
    %120 = vector.load %arg6[%c13_102, %c0_103] : memref<41x16xf32, #tpu.memory_space<vmem>>, vector<25x16xf32>
    %c14_104 = arith.constant 14 : index
    %c0_105 = arith.constant 0 : index
    %121 = vector.load %arg6[%c14_104, %c0_105] : memref<41x16xf32, #tpu.memory_space<vmem>>, vector<25x16xf32>
    %122 = tpu.concatenate %113, %114, %115, %116, %117, %118, %119, %120, %121 in 1 : vector<25x16xf32>, vector<25x16xf32>, vector<25x16xf32>, vector<25x16xf32>, vector<25x16xf32>, vector<25x16xf32>, vector<25x16xf32>, vector<25x16xf32>, vector<25x16xf32> -> vector<25x144xf32>
    %123 = arith.extf %5 : vector<25x144xbf16> to vector<25x144xf32>
    %124 = arith.mulf %122, %123 : vector<25x144xf32>
    %125 = arith.truncf %124 : vector<25x144xf32> to vector<25x144xbf16>
    %c608 = arith.constant 608 : index
    %c0_106 = arith.constant 0 : index
    %126 = vector.load %arg1[%c608, %c0_106] : memref<1120x64xbf16, #tpu.memory_space<vmem>>, vector<144x16xbf16>
    %cst_107 = arith.constant dense<0.000000e+00> : vector<25x16xf32>
    %127 = tpu.matmul %125, %126, %cst_107 {dimension_numbers = #tpu.dot_dimension_numbers<[1], [0], [0], [1], [0, 0, 1, 1], [], []>} : vector<25x144xbf16>, vector<144x16xbf16>, vector<25x16xf32> -> vector<25x16xf32>
    %c8_108 = arith.constant 8 : index
    %c0_109 = arith.constant 0 : index
    %128 = vector.load %arg3[%c8_108, %c0_109] : memref<14x64xf32, #tpu.memory_space<vmem>>, vector<1x16xf32>
    %129 = vector.broadcast %128 : vector<1x16xf32> to vector<25x16xf32>
    %130 = arith.addf %127, %129 : vector<25x16xf32>
    %cst_110 = arith.constant 0.000000e+00 : f32
    %131 = vector.broadcast %cst_110 : f32 to vector<25x16xf32>
    %132 = arith.maximumf %130, %131 : vector<25x16xf32>
    %c768 = arith.constant 768 : index
    %c0_111 = arith.constant 0 : index
    %133 = vector.load %arg1[%c768, %c0_111] : memref<1120x64xbf16, #tpu.memory_space<vmem>>, vector<128x64xbf16>
    %cst_112 = arith.constant dense<0.000000e+00> : vector<25x64xf32>
    %134 = tpu.matmul %104, %133, %cst_112 {dimension_numbers = #tpu.dot_dimension_numbers<[1], [0], [0], [1], [0, 0, 1, 1], [], []>} : vector<25x128xbf16>, vector<128x64xbf16>, vector<25x64xf32> -> vector<25x64xf32>
    %c10 = arith.constant 10 : index
    %c0_113 = arith.constant 0 : index
    %135 = vector.load %arg3[%c10, %c0_113] : memref<14x64xf32, #tpu.memory_space<vmem>>, vector<1x64xf32>
    %136 = vector.broadcast %135 : vector<1x64xf32> to vector<25x64xf32>
    %137 = arith.addf %134, %136 : vector<25x64xf32>
    %138 = arith.truncf %132 : vector<25x16xf32> to vector<25x16xbf16>
    %c752 = arith.constant 752 : index
    %c0_114 = arith.constant 0 : index
    %139 = vector.load %arg1[%c752, %c0_114] : memref<1120x64xbf16, #tpu.memory_space<vmem>>, vector<16x64xbf16>
    %cst_115 = arith.constant dense<0.000000e+00> : vector<25x64xf32>
    %140 = tpu.matmul %138, %139, %cst_115 {dimension_numbers = #tpu.dot_dimension_numbers<[1], [0], [0], [1], [0, 0, 1, 1], [], []>} : vector<25x16xbf16>, vector<16x64xbf16>, vector<25x64xf32> -> vector<25x64xf32>
    %c9_116 = arith.constant 9 : index
    %c0_117 = arith.constant 0 : index
    %141 = vector.load %arg3[%c9_116, %c0_117] : memref<14x64xf32, #tpu.memory_space<vmem>>, vector<1x64xf32>
    %142 = vector.broadcast %141 : vector<1x64xf32> to vector<25x64xf32>
    %143 = arith.addf %140, %142 : vector<25x64xf32>
    %144 = arith.addf %143, %137 : vector<25x64xf32>
    %cst_118 = arith.constant 0.000000e+00 : f32
    %145 = vector.broadcast %cst_118 : f32 to vector<25x64xf32>
    %146 = arith.maximumf %144, %145 : vector<25x64xf32>
    %147 = arith.truncf %146 : vector<25x64xf32> to vector<25x64xbf16>
    %c896 = arith.constant 896 : index
    %c0_119 = arith.constant 0 : index
    %148 = vector.load %arg1[%c896, %c0_119] : memref<1120x64xbf16, #tpu.memory_space<vmem>>, vector<64x16xbf16>
    %cst_120 = arith.constant dense<0.000000e+00> : vector<25x16xf32>
    %149 = tpu.matmul %147, %148, %cst_120 {dimension_numbers = #tpu.dot_dimension_numbers<[1], [0], [0], [1], [0, 0, 1, 1], [], []>} : vector<25x64xbf16>, vector<64x16xbf16>, vector<25x16xf32> -> vector<25x16xf32>
    %c11 = arith.constant 11 : index
    %c0_121 = arith.constant 0 : index
    %150 = vector.load %arg3[%c11, %c0_121] : memref<14x64xf32, #tpu.memory_space<vmem>>, vector<1x16xf32>
    %151 = vector.broadcast %150 : vector<1x16xf32> to vector<25x16xf32>
    %152 = arith.addf %149, %151 : vector<25x16xf32>
    %cst_122 = arith.constant 0.000000e+00 : f32
    %153 = vector.broadcast %cst_122 : f32 to vector<25x16xf32>
    %154 = arith.maximumf %152, %153 : vector<25x16xf32>
    %c8_123 = arith.constant 8 : index
    %c0_124 = arith.constant 0 : index
    %155 = vector.load %arg6[%c8_123, %c0_124] : memref<41x16xf32, #tpu.memory_space<vmem>>, vector<25x16xf32>
    tpu.vector_store %arg6[%c8_123, %c0_124], %154 {strides = array<i32>} : memref<41x16xf32, #tpu.memory_space<vmem>>, vector<25x16xf32>,
    %c2_125 = arith.constant 2 : index
    %c0_126 = arith.constant 0 : index
    %156 = vector.load %arg6[%c2_125, %c0_126] : memref<41x16xf32, #tpu.memory_space<vmem>>, vector<25x16xf32>
    %c3_127 = arith.constant 3 : index
    %c0_128 = arith.constant 0 : index
    %157 = vector.load %arg6[%c3_127, %c0_128] : memref<41x16xf32, #tpu.memory_space<vmem>>, vector<25x16xf32>
    %c4_129 = arith.constant 4 : index
    %c0_130 = arith.constant 0 : index
    %158 = vector.load %arg6[%c4_129, %c0_130] : memref<41x16xf32, #tpu.memory_space<vmem>>, vector<25x16xf32>
    %c7_131 = arith.constant 7 : index
    %c0_132 = arith.constant 0 : index
    %159 = vector.load %arg6[%c7_131, %c0_132] : memref<41x16xf32, #tpu.memory_space<vmem>>, vector<25x16xf32>
    %c8_133 = arith.constant 8 : index
    %c0_134 = arith.constant 0 : index
    %160 = vector.load %arg6[%c8_133, %c0_134] : memref<41x16xf32, #tpu.memory_space<vmem>>, vector<25x16xf32>
    %c9_135 = arith.constant 9 : index
    %c0_136 = arith.constant 0 : index
    %161 = vector.load %arg6[%c9_135, %c0_136] : memref<41x16xf32, #tpu.memory_space<vmem>>, vector<25x16xf32>
    %c12_137 = arith.constant 12 : index
    %c0_138 = arith.constant 0 : index
    %162 = vector.load %arg6[%c12_137, %c0_138] : memref<41x16xf32, #tpu.memory_space<vmem>>, vector<25x16xf32>
    %c13_139 = arith.constant 13 : index
    %c0_140 = arith.constant 0 : index
    %163 = vector.load %arg6[%c13_139, %c0_140] : memref<41x16xf32, #tpu.memory_space<vmem>>, vector<25x16xf32>
    %c14_141 = arith.constant 14 : index
    %c0_142 = arith.constant 0 : index
    %164 = vector.load %arg6[%c14_141, %c0_142] : memref<41x16xf32, #tpu.memory_space<vmem>>, vector<25x16xf32>
    %165 = tpu.concatenate %156, %157, %158, %159, %160, %161, %162, %163, %164 in 1 : vector<25x16xf32>, vector<25x16xf32>, vector<25x16xf32>, vector<25x16xf32>, vector<25x16xf32>, vector<25x16xf32>, vector<25x16xf32>, vector<25x16xf32>, vector<25x16xf32> -> vector<25x144xf32>
    %166 = arith.extf %5 : vector<25x144xbf16> to vector<25x144xf32>
    %167 = arith.mulf %165, %166 : vector<25x144xf32>
    %168 = arith.truncf %167 : vector<25x144xf32> to vector<25x144xbf16>
    %c960 = arith.constant 960 : index
    %c0_143 = arith.constant 0 : index
    %169 = vector.load %arg1[%c960, %c0_143] : memref<1120x64xbf16, #tpu.memory_space<vmem>>, vector<144x16xbf16>
    %cst_144 = arith.constant dense<0.000000e+00> : vector<25x16xf32>
    %170 = tpu.matmul %168, %169, %cst_144 {dimension_numbers = #tpu.dot_dimension_numbers<[1], [0], [0], [1], [0, 0, 1, 1], [], []>} : vector<25x144xbf16>, vector<144x16xbf16>, vector<25x16xf32> -> vector<25x16xf32>
    %c12_145 = arith.constant 12 : index
    %c0_146 = arith.constant 0 : index
    %171 = vector.load %arg3[%c12_145, %c0_146] : memref<14x64xf32, #tpu.memory_space<vmem>>, vector<1x16xf32>
    %172 = vector.broadcast %171 : vector<1x16xf32> to vector<25x16xf32>
    %173 = arith.addf %170, %172 : vector<25x16xf32>
    %cst_147 = arith.constant 0.000000e+00 : f32
    %174 = vector.broadcast %cst_147 : f32 to vector<25x16xf32>
    %175 = arith.maximumf %173, %174 : vector<25x16xf32>
    %176 = arith.truncf %175 : vector<25x16xf32> to vector<25x16xbf16>
    %c1104 = arith.constant 1104 : index
    %c0_148 = arith.constant 0 : index
    %177 = vector.load %arg1[%c1104, %c0_148] : memref<1120x64xbf16, #tpu.memory_space<vmem>>, vector<16x64xbf16>
    %cst_149 = arith.constant dense<0.000000e+00> : vector<25x64xf32>
    %178 = tpu.matmul %176, %177, %cst_149 {dimension_numbers = #tpu.dot_dimension_numbers<[1], [0], [0], [1], [0, 0, 1, 1], [], []>} : vector<25x16xbf16>, vector<16x64xbf16>, vector<25x64xf32> -> vector<25x64xf32>
    %c13_150 = arith.constant 13 : index
    %c0_151 = arith.constant 0 : index
    %179 = vector.load %arg3[%c13_150, %c0_151] : memref<14x64xf32, #tpu.memory_space<vmem>>, vector<1x64xf32>
    %180 = vector.broadcast %179 : vector<1x64xf32> to vector<25x64xf32>
    %181 = arith.addf %178, %180 : vector<25x64xf32>
    %182 = arith.addf %181, %146 : vector<25x64xf32>
    %cst_152 = arith.constant 0.000000e+00 : f32
    %183 = vector.broadcast %cst_152 : f32 to vector<25x64xf32>
    %184 = arith.maximumf %182, %183 : vector<25x64xf32>
    %cst_153 = arith.constant dense<0xFF800000> : vector<25xf32>
    %185 = vector.multi_reduction <maximumf>, %184, %cst_153 [1] : vector<25x64xf32> to vector<25xf32>
    %186 = vector.shape_cast %185 : vector<25xf32> to vector<25x1xf32>
    %187 = vector.broadcast %186 : vector<25x1xf32> to vector<25x64xf32>
    %188 = arith.subf %184, %187 : vector<25x64xf32>
    %189 = math.exp %188 : vector<25x64xf32>
    %cst_154 = arith.constant dense<0.000000e+00> : vector<25xf32>
    %190 = vector.multi_reduction <add>, %189, %cst_154 [1] : vector<25x64xf32> to vector<25xf32>
    %191 = vector.shape_cast %190 : vector<25xf32> to vector<25x1xf32>
    %192 = tpu.reciprocal %191 {approx = true} : vector<25x1xf32> -> vector<25x1xf32>
    %193 = vector.broadcast %192 : vector<25x1xf32> to vector<25x64xf32>
    %194 = arith.mulf %189, %193 : vector<25x64xf32>
    %195 = tpu.concatenate %194, %194, %194, %194 in 0 : vector<25x64xf32>, vector<25x64xf32>, vector<25x64xf32>, vector<25x64xf32> -> vector<100x64xf32>
    %196 = arith.mulf %20, %195 : vector<100x64xf32>
    %197 = vector.extract_strided_slice %195 {offsets = [0, 0], sizes = [50, 64], strides = [1, 1]} : vector<100x64xf32> to vector<50x64xf32>
    %198 = arith.mulf %22, %197 : vector<50x64xf32>
    %199 = arith.truncf %196 : vector<100x64xf32> to vector<100x64xbf16>
    %200 = arith.truncf %198 : vector<50x64xf32> to vector<50x64xbf16>
    %cst_155 = arith.constant dense<0.000000e+00> : vector<100x50xf32>
    %201 = tpu.matmul %199, %200, %cst_155 {dimension_numbers = #tpu.dot_dimension_numbers<[1], [1], [0], [0], [0, 0, 1, 0], [], []>} : vector<100x64xbf16>, vector<50x64xbf16>, vector<100x50xf32> -> vector<100x50xf32>
    %202 = arith.extf %10 : vector<100x50xbf16> to vector<100x50xf32>
    %203 = arith.mulf %201, %202 : vector<100x50xf32>
    %204 = arith.truncf %203 : vector<100x50xf32> to vector<100x50xbf16>
    %cst_156 = arith.constant dense<0.000000e+00> : vector<4x50xf32>
    %205 = tpu.matmul %7, %204, %cst_156 {dimension_numbers = #tpu.dot_dimension_numbers<[1], [0], [0], [1], [0, 0, 1, 1], [], []>} : vector<4x100xbf16>, vector<100x50xbf16>, vector<4x50xf32> -> vector<4x50xf32>
    %206 = arith.truncf %205 : vector<4x50xf32> to vector<4x50xbf16>
    %cst_157 = arith.constant dense<0.000000e+00> : vector<4x2xf32>
    %207 = tpu.matmul %206, %9, %cst_157 {dimension_numbers = #tpu.dot_dimension_numbers<[1], [0], [0], [1], [0, 0, 1, 1], [], []>} : vector<4x50xbf16>, vector<50x2xbf16>, vector<4x2xf32> -> vector<4x2xf32>
    %208 = arith.mulf %196, %196 : vector<100x64xf32>
    %cst_158 = arith.constant dense<0.000000e+00> : vector<100xf32>
    %209 = vector.multi_reduction <add>, %208, %cst_158 [1] : vector<100x64xf32> to vector<100xf32>
    %210 = vector.shape_cast %209 : vector<100xf32> to vector<100x1xf32>
    %211 = arith.truncf %210 : vector<100x1xf32> to vector<100x1xbf16>
    %cst_159 = arith.constant dense<0.000000e+00> : vector<4x1xf32>
    %212 = tpu.matmul %7, %211, %cst_159 {dimension_numbers = #tpu.dot_dimension_numbers<[1], [0], [0], [1], [0, 0, 1, 1], [], []>} : vector<4x100xbf16>, vector<100x1xbf16>, vector<4x1xf32> -> vector<4x1xf32>
    %213 = arith.mulf %198, %198 : vector<50x64xf32>
    %cst_160 = arith.constant dense<0.000000e+00> : vector<50xf32>
    %214 = vector.multi_reduction <add>, %213, %cst_160 [1] : vector<50x64xf32> to vector<50xf32>
    %215 = vector.shape_cast %214 : vector<50xf32> to vector<50x1xf32>
    %216 = arith.truncf %215 : vector<50x1xf32> to vector<50x1xbf16>
    %cst_161 = arith.constant dense<0.000000e+00> : vector<2x1xf32>
    %217 = tpu.matmul %8, %216, %cst_161 {dimension_numbers = #tpu.dot_dimension_numbers<[1], [0], [0], [1], [0, 0, 1, 1], [], []>} : vector<2x50xbf16>, vector<50x1xbf16>, vector<2x1xf32> -> vector<2x1xf32>
    %cst_162 = arith.constant 2.000000e+00 : f32
    %218 = vector.broadcast %cst_162 : f32 to vector<4x2xf32>
    %219 = arith.mulf %218, %207 : vector<4x2xf32>
    %220 = vector.broadcast %212 : vector<4x1xf32> to vector<4x2xf32>
    %221 = arith.subf %219, %220 : vector<4x2xf32>
    %222 = tpu.transpose %217, [1, 0] : vector<2x1xf32> -> vector<1x2xf32>
    %223 = vector.broadcast %222 : vector<1x2xf32> to vector<4x2xf32>
    %224 = arith.subf %221, %223 : vector<4x2xf32>
    %c0_163 = arith.constant 0 : index
    %c0_164 = arith.constant 0 : index
    %225 = vector.load %arg4[%c0_163, %c0_164] : memref<4x2xf32, #tpu.memory_space<vmem>>, vector<4x2xf32>
    tpu.vector_store %arg4[%c0_163, %c0_164], %224 {strides = array<i32>} : memref<4x2xf32, #tpu.memory_space<vmem>>, vector<4x2xf32>,
    return
  }
}

</mosaic_0001>

<bundles_post_ra>
// kernel: _lambda_.1
= control target key start
LH: loop header
LB: loop body
LE: loop exit
PB: predicated region body
PF: predicated region fallthrough
CT: control target
= control target key end

     0   :  { %vm191_vm0 = vcmask 1044480   ;;  %vm192_vm1 = vcmask 1045504   ;;  %v3724_v2 = vmov 65535   ;;  %vm160_vm2 = vcmask 220160   ;;  %s3726_s29 = smov 64   ;;  %s3727_s30 = smov 48   ;;  %s5203_s1 = inlined_call_operand.vmem [shape: bf16[1120,64], index: 1, kind: input, shape index: {}]   ;;  %s5204_s3 = inlined_call_operand.vmem [shape: f32[14,64], index: 3, kind: input, shape index: {}]   ;;  %s5205_s0 = inlined_call_operand.vmem [shape: bf16[150,27], index: 0, kind: input, shape index: {}]   ;;  %s5206_s2 = inlined_call_operand.vmem [shape: bf16[368,144], index: 2, kind: input, shape index: {}]   ;;  %s5207_s4 = inlined_call_operand.vmem [shape: f32[4,2], index: 4, kind: output, shape index: {}]  }
   0x1   :  { %v3220_v0 = vld [vmem:[%s5203_s1 + $0x8] sm:$0xf]  ;;  %v3597_v1 = vld [vmem:[%s5203_s1 + $0x8] sm:$0x30]  ;;  %v193_v3 = vsel %vm191_vm0, 4294967295, %v3724_v2  ;;  %v3596_v7 = vld [vmem:[%s5203_s1] sm:$0xff] }
   0x2   :  { %v3221_v4 = vor.u32 %v3597_v1, %v3220_v0  ;;  %v194_v5 = vsel %vm192_vm1, %v193_v3, 0  ;;  %v3587_v8 = vld [vmem:[%s5205_s0] sm:$0xff]  ;;  %v3588_v9 = vld [vmem:[%s5205_s0 + $0x8] sm:$0xff]  ;;  %v3589_v10 = vld [vmem:[%s5205_s0 + $0x10] sm:$0xff]  ;;  %vm376_vm3 = vcmask 523264   ;;  %vm310_vm4 = vcmask 1040384  }
   0x3   :  { %v3590_v11 = vld [vmem:[%s5205_s0 + $0x18] sm:$0xff]  ;;  %v3601_v12 = vld [vmem:[%s5203_s1 + $0x28] sm:$0xff]  ;;  %v3600_v13 = vld [vmem:[%s5203_s1 + $0x20] sm:$0xff]  ;;  %vm297_vm5 = vcmask 408576   ;;  %vm18_vm6 = vcmask 130048   ;;  %v3725_v52 = vmov 0.0  }
   0x4   :  { %v196_v6 = vand.u32 %v3221_v4, %v194_v5  ;;  %3666 = vmatpush.bf16.msra.mxu2 %v3601_v12  ;;  %v3599_v14 = vld [vmem:[%s5203_s1 + $0x18] sm:$0xff]  ;;  %v3598_v15 = vld [vmem:[%s5203_s1 + $0x10] sm:$0xff]  ;;  %v3693_v19 = vld [vmem:[%s5204_s3] ss:$0 sm:$0xff]  ;;  %22 = vst.msk [vmem:[#allocation2 + $0x18] sm:$0xff] %vm18_vm6, %v3725_v52  ;;  %vm27_vm7 = vcmask 123904  }
   0x5   :  { %v3234_v42 = vld [vmem:[%s5206_s2] sm:$0xf]  ;;  %v3581_v43 = vld [vmem:[%s5206_s2 + $0x4] sm:$0xf0]  ;;  %v3238_v46 = vld [vmem:[%s5206_s2 + $0x10] sm:$0xf] }
   0x6   :  { %204 = vmatpush.bf16.msra.mxu0 %v196_v6  ;;  %v3843_v45 = vor.u32 %v3581_v43, %v3234_v42  ;;  %v3582_v47 = vld [vmem:[%s5206_s2 + $0x14] sm:$0xf0]  ;;  %v3242_v49 = vld [vmem:[%s5206_s2 + $0x20] sm:$0xf]  ;;  %v3583_v50 = vld [vmem:[%s5206_s2 + $0x24] sm:$0xf0] }
   0x7   :  { %v3853_v48 = vor.u32 %v3582_v47, %v3238_v46  ;;  %v3863_v51 = vor.u32 %v3583_v50, %v3242_v49  ;;  %19 = vst.msk [vmem:[#allocation2] sm:$0xff] %vm18_vm6, %v3725_v52  ;;  %v53_v53 = vld [vmem:[%s5206_s2 + $0x30] sm:$0x1]  ;;  %v3891_v56 = vld [vmem:[%s5204_s3 + $0x1] ss:$0 sm:$0xff]  ;;  %s3728_s5 = smov 32  }
   0x8   :  { %3667 = vmatpush.bf16.msra.mxu2 %v3600_v13  ;;  %20 = vst.msk [vmem:[#allocation2 + $0x8] sm:$0xff] %vm18_vm6, %v3725_v52  ;;  %v292_v54 = vunpack.c.l.b16 %v53_v53  ;;  %s3729_s6 = smov 16   ;;  %s3730_s7 = smov 80   ;;  %v3610_v42 = vld [vmem:[%s5203_s1 + $0x70] sm:$0xff]  ;;  %vm686_vm8 = vcmask 261120   ;;  %vm694_vm9 = vcmask 392192  }
   0x9   :  { %21 = vst.msk [vmem:[#allocation2 + $0x10] sm:$0xff] %vm18_vm6, %v3725_v52  ;;  %s3731_s8 = smov 112   ;;  %s3732_s9 = smov 96   ;;  %vm709_vm10 = vcmask 654336   ;;  %vm717_vm11 = vcmask 785408   ;;  %vm725_vm12 = vcmask 916480  }
   0xa   :  { %205 = vmatpush.bf16.msra.mxu0 %v3596_v7  ;;  %23 = vst.msk [vmem:[#allocation2 + $0x20] sm:$0xff] %vm18_vm6, %v3725_v52  ;;  %v3881_v55 = vpack.c.b16 %v292_v54, %v292_v54  ;;  %vm1654_vm13 = vcmask 1046528   ;;  %vm34_vm14 = vcmask 122880   ;;  %vm2646_vm15 = vcmask 516096  }
   0xb   :  { %24 = vst.msk [vmem:[#allocation2 + $0x28] sm:$0xff] %vm18_vm6, %v3725_v52  ;;  %vm2697_vm0 = vcmask 1041408   ;;  %vm2707_vm1 = vcmask 1042432  }
   0xc   :  { %3668 = vmatpush.bf16.msra.mxu2 %v3599_v14  ;;  %25 = vst.msk [vmem:[#allocation2 + $0x30] sm:$0xff] %vm18_vm6, %v3725_v52 }
   0xd   :  { %3222 = vmatmul.msk.bf16.vlgmr.msra.gmra.mxu0 %vm160_vm2, %v3587_v8  ;;  %26 = vst.msk [vmem:[#allocation2 + $0x38] sm:$0xff] %vm18_vm6, %v3725_v52 }
   0xe   :  { %29 = vst.msk [vmem:[#allocation3] sm:$0xff] %vm18_vm6, %v3725_v52 }
   0xf   :  { %30 = vst.msk [vmem:[#allocation3 + $0x8] sm:$0xff] %vm18_vm6, %v3725_v52 }
  0x10   :  { %3669 = vmatpush.bf16.msra.mxu2 %v3598_v15  ;;  %31 = vst.msk [vmem:[#allocation3 + $0x10] sm:$0xff] %vm18_vm6, %v3725_v52 }
  0x11   :  { %32 = vst.msk [vmem:[#allocation3 + $0x18] sm:$0xff] %vm18_vm6, %v3725_v52 }
  0x12   :  { %33 = vst.msk [vmem:[#allocation3 + $0x20] sm:$0xff] %vm18_vm6, %v3725_v52 }
  0x1d   :  { %3223 = vmatmul.msk.bf16.gmra.mxu0 %vm160_vm2, %v3588_v9 }
  0x2d   :  { %3224 = vmatmul.msk.bf16.gmra.mxu0 %vm160_vm2, %v3589_v10 }
  0x3d   :  { %3225 = vmatmul.msk.bf16.gmra.mxu0 %vm160_vm2, %v3590_v11 }
  0x8a   :  { %v207_v16 = vpop.f32.mrf.mxu0 }
  0x8b   :  { %v3828_v39 = vadd.f32 %v3693_v19, %v207_v16 }
  0x8d   :  { %v256_v41 = vmax.f32 %v3828_v39, 0.0 }
  0x92   :  { %v209_v17 = vpop.f32.mrf.mxu0 }
  0x93   :  { %v3826_v38 = vadd.f32 %v3693_v19, %v209_v17 }
  0x95   :  { %v257_v40 = vmax.f32 %v3826_v38, 0.0 }
  0x97   :  { %v275_v44 = vpack.c.bf16 %v257_v40, %v256_v41 }
  0x9a   :  { %v212_v18 = vpop.f32.mrf.mxu0 }
  0x9b   :  { %v3799_v20 = vadd.f32 %v3693_v19, %v212_v18 }
  0x9d   :  { %v258_v23 = vmax.f32 %v3799_v20, 0.0  ;;  %v3591_v20 = vld [vmem:[%s5205_s0 + $0x20] sm:$0xff] }
  0x9e   :  { %3226 = vmatmul.msk.bf16.gmra.mxu0 %vm160_vm2, %v3591_v20 }
  0xa2   :  { %v214_v21 = vpop.f32.mrf.mxu0 }
  0xa3   :  { %v3801_v22 = vadd.f32 %v3693_v19, %v214_v21 }
  0xa5   :  { %v5216_v24 = vmax.f32 %v3801_v22, 0.0 }
  0xa7   :  { %v276_v25 = vpack.c.bf16 %v5216_v24, %v258_v23 }
  0xa9   :  { %3265 = vmatmul.msk.bf16.vlgmr.msra.gmra.mxu2 %vm376_vm3, %v276_v25 }
  0xaa   :  { %v217_v26 = vpop.f32.mrf.mxu0 }
  0xab   :  { %v3810_v27 = vadd.f32 %v3693_v19, %v217_v26 }
  0xad   :  { %v5215_v30 = vmax.f32 %v3810_v27, 0.0 }
  0xb2   :  { %v219_v28 = vpop.f32.mrf.mxu0 }
  0xb3   :  { %v3812_v29 = vadd.f32 %v3693_v19, %v219_v28 }
  0xb5   :  { %v5214_v31 = vmax.f32 %v3812_v29, 0.0 }
  0xb7   :  { %v277_v32 = vpack.c.bf16 %v5214_v31, %v5215_v30 }
  0xb9   :  { %3266 = vmatmul.msk.bf16.gmra.mxu2 %vm376_vm3, %v277_v32 }
  0xba   :  { %v222_v33 = vpop.f32.mrf.mxu0 }
  0xbb   :  { %v223_v34 = vadd.f32 %v3693_v19, %v222_v33 }
  0xbd   :  { %v3821_v35 = vmax.f32 %v223_v34, 0.0 }
  0xbf   :  { %v278_v36 = vpack.c.bf16 %v3821_v35, %v3821_v35 }
  0xc1   :  { %v312_v37 = vsel %vm310_vm4, %v278_v36, 0 }
  0xc2   :  { %318 = vmatpush.bf16.msra.mxu1 %v312_v37 }
  0xc6   :  { %319 = vmatpush.bf16.msra.mxu1 %v277_v32 }
  0xc9   :  { %3267 = vmatmul.msk.bf16.gmra.mxu2 %vm376_vm3, %v278_v36 }
  0xca   :  { %320 = vmatpush.bf16.msra.mxu1 %v276_v25 }
  0xce   :  { %321 = vmatpush.bf16.msra.mxu1 %v275_v44 }
  0xd1   :  { %3244 = vmatmul.msk.bf16.vlgmr.msra.gmra.mxu1 %vm297_vm5, %v3843_v45 }
  0xd2   :  { %392 = vmatpush.bf16.msrb.mxu1 %v3601_v12 }
  0xd6   :  { %393 = vmatpush.bf16.msrb.mxu1 %v3600_v13 }
  0xda   :  { %394 = vmatpush.bf16.msrb.mxu1 %v3599_v14 }
  0xde   :  { %395 = vmatpush.bf16.msrb.mxu1 %v3598_v15 }
  0xe1   :  { %3245 = vmatmul.msk.bf16.gmra.mxu1 %vm297_vm5, %v3853_v48 }
  0xe2   :  { %890 = vmatpush.bf16.msra.mxu1 %v3610_v42 }
  0xf1   :  { %3246 = vmatmul.msk.bf16.gmra.mxu1 %vm297_vm5, %v3863_v51 }
 0x101   :  { %3247 = vmatmul.msk.bf16.gmra.mxu1 %vm297_vm5, %v3881_v55 }
 0x111   :  { %3264 = vmatmul.msk.bf16.vlgmr.msrb.gmra.mxu1 %vm376_vm3, %v275_v44 }
 0x12c   :  { %v402_v57 = vpop.f32.mrf.mxu2 }
 0x12d   :  { %v403_v58 = vadd.f32 %v3891_v56, %v402_v57 }
 0x12f   :  { %v418_v59 = vmax.f32 %v403_v58, 0.0  ;;  %v3948_v58 = vld [vmem:[%s5206_s2 + $0x110] sm:$0xff] }
 0x131   :  { %425 = vst.msk [vmem:[#allocation2 + $0x18] sm:$0xff] %vm18_vm6, %v418_v59  ;;  %v5213_v59 = vunpack.c.h.bf16 %v3948_v58 }
 0x134   :  { %v404_v60 = vpop.f32.mrf.mxu2 }
 0x135   :  { %v405_v61 = vadd.f32 %v3891_v56, %v404_v60 }
 0x137   :  { %v419_v62 = vmax.f32 %v405_v61, 0.0 }
 0x138   :  { %v460_v63 = vld [vmem:[#allocation2 + $0x18] sm:$0xff] }
 0x139   :  { %426 = vst.msk [vmem:[#allocation2 + $0x20] sm:$0xff] %vm18_vm6, %v419_v62  ;;  %583 = vrot.lane.b32.xlu2 %v460_v63, %s3726_s29 }
 0x13c   :  { %v407_v0 = vpop.f32.mrf.mxu2 }
 0x13d   :  { %v408_v1 = vadd.f32 %v3891_v56, %v407_v0 }
 0x13f   :  { %v420_v2 = vmax.f32 %v408_v1, 0.0 }
 0x140   :  { %v454_v3 = vld [vmem:[#allocation2 + $0x1f] sm:$0xff] }
 0x141   :  { %v447_v4 = vld [vmem:[#allocation2 + $0x1c] sm:$0xff]  ;;  %427 = vst.msk [vmem:[#allocation2 + $0x28] sm:$0xff] %vm18_vm6, %v420_v2  ;;  %557 = vrot.lane.b32.xlu1 %v454_v3, %s3727_s30 }
 0x142   :  { %v440_v5 = vld [vmem:[#allocation2 + $0x1b] sm:$0xff]  ;;  %529 = vrot.lane.b32.xlu2 %v447_v4, %s3728_s5 }
 0x143   :  { %501 = vrot.lane.b32.xlu0 %v440_v5, %s3729_s6  ;;  %v467_v9 = vld [vmem:[#allocation2 + $0x19] sm:$0xff] }
 0x144   :  { %v409_v6 = vpop.f32.mrf.mxu2  ;;  %v476_v10 = vld [vmem:[#allocation2 + $0x1d] sm:$0xff] }
 0x145   :  { %v410_v7 = vadd.f32 %v3891_v56, %v409_v6  ;;  %v461_v11 = vld [vmem:[#allocation2 + $0x20] sm:$0xff] }
 0x147   :  { %v421_v8 = vmax.f32 %v410_v7, 0.0 }
 0x148   :  { %v448_v16 = vld [vmem:[#allocation2 + $0x24] sm:$0xff] }
 0x149   :  { %428 = vst.msk [vmem:[#allocation2 + $0x30] sm:$0xff] %vm18_vm6, %v421_v8  ;;  %611 = vrot.lane.b32.xlu1 %v467_v9, %s3730_s7  ;;  %v468_v17 = vld [vmem:[#allocation2 + $0x21] sm:$0xff] }
 0x14a   :  { %662 = vrot.lane.b32.xlu2 %v476_v10, %s3731_s8  ;;  %v441_v21 = vld [vmem:[#allocation2 + $0x23] sm:$0xff] }
 0x14b   :  { %585 = vrot.lane.b32.xlu0 %v461_v11, %s3726_s29  ;;  %v477_v26 = vld [vmem:[#allocation2 + $0x25] sm:$0xff] }
 0x14c   :  { %v412_v12 = vpop.f32.mrf.mxu2  ;;  %v3970_v8 = vld [vmem:[%s5206_s2 + $0x128] sm:$0xff]  ;;  %v3976_v9 = vld [vmem:[%s5206_s2 + $0x120] sm:$0xff] }
 0x14d   :  { %v413_v13 = vadd.f32 %v3891_v56, %v412_v12  ;;  %v5210_v10 = vunpack.c.h.bf16 %v3970_v8  ;;  %v484_v11 = vld [vmem:[#allocation2 + $0x26] sm:$0xff]  ;;  %v5211_v12 = vunpack.c.h.bf16 %v3976_v9 }
 0x14e   :  { %v3909_v14 = vpop.f32.mrf.mxu1 }
 0x14f   :  { %v422_v15 = vmax.f32 %v413_v13, 0.0  ;;  %v483_v13 = vld [vmem:[#allocation2 + $0x1e] sm:$0xff] }
 0x150   :  { %v442_v25 = vld [vmem:[#allocation2 + $0x2b] sm:$0xff] }
 0x151   :  { %429 = vst.msk [vmem:[#allocation2 + $0x38] sm:$0x3] %vm27_vm7, %v422_v15  ;;  %636 = vrot.lane.b32.xlu1 %v448_v16, %s3732_s9  ;;  %v3922_v32 = vld [vmem:[#allocation2 + $0x2c] sm:$0xff] }
 0x152   :  { %613 = vrot.lane.b32.xlu2 %v468_v17, %s3730_s7 }
 0x153   :  { %634 = vrot.lane.b32.xlu0 %v447_v4, %s3732_s9 }
 0x154   :  { %v414_v18 = vpop.f32.mrf.mxu2 }
 0x155   :  { %v752_v18 = vmul.f32 %v5211_v12, %v483_v13 }
 0x156   :  { %v3915_v19 = vpop.f32.mrf.mxu1 }
 0x159   :  { %503 = vrot.lane.b32.xlu1 %v441_v21, %s3729_s6 }
 0x15a   :  { %505 = vrot.lane.b32.xlu2 %v442_v25, %s3729_s6  ;;  %v455_v25 = vld [vmem:[#allocation2 + $0x27] sm:$0xff] }
 0x15b   :  { %664 = vrot.lane.b32.xlu0 %v477_v26, %s3731_s8 }
 0x15e   :  { %v3920_v28 = vpop.f32.mrf.mxu1 }
 0x161   :  { %533 = vrot.lane.b32.xlu1 %v3922_v32, %s3728_s5 }
 0x163   :  { %531 = vrot.lane.b32.xlu0 %v448_v16, %s3728_s5  ;;  %v754_v16 = vmul.f32 %v5210_v10, %v484_v11 }
 0x165   :  { %v764_v21 = vpack.c.bf16 %v754_v16, %v752_v18 }
 0x166   :  { %v3927_v33 = vpop.f32.mrf.mxu1 }
 0x16e   :  { %v3929_v34 = vpop.f32.mrf.mxu1 }
 0x176   :  { %v3931_v36 = vpop.f32.mrf.mxu1 }
 0x17e   :  { %v3933_v37 = vpop.f32.mrf.mxu1 }
 0x186   :  { %v340_v43 = vpop.f32.mrf.mxu1 }
 0x187   :  { %v3993_v43 = vld [vmem:[%s5206_s2 + $0x138] sm:$0xff] }
 0x18e   :  { %v397_v44 = vpop.f32.mrf.mxu1 }
 0x18f   :  { %v398_v46 = vadd.f32 %v3891_v56, %v397_v44  ;;  %v3999_v44 = vld [vmem:[%s5206_s2 + $0x130] sm:$0xff] }
 0x191   :  { %v416_v47 = vmax.f32 %v398_v46, 0.0  ;;  %v5208_v46 = vunpack.c.h.bf16 %v3993_v43 }
 0x193   :  { %423 = vst.msk [vmem:[#allocation2 + $0x8] sm:$0xff] %vm18_vm6, %v416_v47  ;;  %v486_v47 = vld [vmem:[#allocation2 + $0x36] sm:$0xff] }
 0x196   :  { %v399_v49 = vpop.f32.mrf.mxu1 }
 0x197   :  { %v400_v50 = vadd.f32 %v3891_v56, %v399_v49  ;;  %v3953_v56 = vld [vmem:[%s5206_s2 + $0x118] sm:$0xff]  ;;  %v5209_v49 = vunpack.c.h.bf16 %v3999_v44 }
 0x198   :  { %v5212_v60 = vunpack.c.h.bf16 %v3953_v56 }
 0x199   :  { %v417_v52 = vmax.f32 %v400_v50, 0.0  ;;  %v485_v50 = vld [vmem:[#allocation2 + $0x2e] sm:$0xff] }
 0x19a   :  { %v451_v53 = vld [vmem:[#allocation2 + $0x7] sm:$0xff] }
 0x19b   :  { %v444_v54 = vld [vmem:[#allocation2 + $0x4] sm:$0xff]  ;;  %424 = vst.msk [vmem:[#allocation2 + $0x10] sm:$0xff] %vm18_vm6, %v417_v52  ;;  %551 = vrot.lane.b32.xlu2 %v451_v53, %s3727_s30  ;;  %v758_v53 = vmul.f32 %v5208_v46, %v486_v47 }
 0x19c   :  { %v437_v57 = vld [vmem:[#allocation2 + $0x3] sm:$0xff]  ;;  %523 = vrot.lane.b32.xlu1 %v444_v54, %s3728_s5 }
 0x19d   :  { %495 = vrot.lane.b32.xlu0 %v437_v57, %s3729_s6  ;;  %v458_v0 = vld [vmem:[#allocation2 + $0x8] sm:$0xff]  ;;  %v756_v57 = vmul.f32 %v5209_v49, %v485_v50 }
 0x19e   :  { %v3609_v50 = vld [vmem:[%s5203_s1 + $0x68] sm:$0xff] }
 0x19f   :  { %855 = vmatpush.bf16.msra.mxu3 %v3609_v50  ;;  %v430_v49 = vld [vmem:[#allocation2 + $0x2] sm:$0xff] }
 0x1a2   :  { %v452_v61 = vld [vmem:[#allocation2 + $0xf] sm:$0xff]  ;;  %v453_v54 = vld [vmem:[#allocation2 + $0x17] sm:$0xff] }
 0x1a3   :  { %v445_v62 = vld [vmem:[#allocation2 + $0xc] sm:$0xff]  ;;  %553 = vrot.lane.b32.xlu2 %v452_v61, %s3727_s30  ;;  %v482_v1 = vld [vmem:[#allocation2 + $0x16] sm:$0xff]  ;;  %v766_v61 = vpack.c.bf16 %v758_v53, %v756_v57 }
 0x1a4   :  { %v481_v63 = vld [vmem:[#allocation2 + $0xe] sm:$0xff]  ;;  %525 = vrot.lane.b32.xlu1 %v445_v62, %s3728_s5  ;;  %v750_v3 = vmul.f32 %v5212_v60, %v482_v1  ;;  %v4014_v1 = vpop.permute.xlu2 %583  ;;  %v480_v53 = vld [vmem:[#allocation2 + $0x3d] sm:$0x3] }
 0x1a5   :  { %v748_v2 = vmul.f32 %v5213_v59, %v481_v63  ;;  %579 = vrot.lane.b32.xlu0 %v458_v0, %s3726_s29  ;;  %v465_v5 = vld [vmem:[#allocation2 + $0x9] sm:$0xff]  ;;  %v446_v15 = vld [vmem:[#allocation2 + $0x14] sm:$0xff] }
 0x1a6   :  { %v459_v6 = vld [vmem:[#allocation2 + $0x10] sm:$0xff]  ;;  %v462_v63 = vld [vmem:[#allocation2 + $0x28] sm:$0xff] }
 0x1a7   :  { %v762_v4 = vpack.c.bf16 %v750_v3, %v748_v2  ;;  %v438_v7 = vld [vmem:[#allocation2 + $0xb] sm:$0xff]  ;;  %v475_v26 = vld [vmem:[#allocation2 + $0x15] sm:$0xff] }
 0x1a8   :  { %v466_v17 = vld [vmem:[#allocation2 + $0x11] sm:$0xff]  ;;  %v469_v3 = vld [vmem:[#allocation2 + $0x29] sm:$0xff] }
 0x1a9   :  { %3304 = vmatmul.msk.bf16.vlgmr.msra.gmra.mxu1 %vm18_vm6, %v762_v4  ;;  %v474_v42 = vld [vmem:[#allocation2 + $0xd] sm:$0xff] }
 0x1aa   :  { %v439_v52 = vld [vmem:[#allocation2 + $0x13] sm:$0xff]  ;;  %v431_v46 = vld [vmem:[#allocation2 + $0xa] sm:$0xff] }
 0x1ab   :  { %607 = vrot.lane.b32.xlu2 %v465_v5, %s3730_s7  ;;  %v456_v0 = vld [vmem:[#allocation2 + $0x2f] sm:$0xff] }
 0x1ac   :  { %581 = vrot.lane.b32.xlu1 %v459_v6, %s3726_s29  ;;  %v470_v2 = vld [vmem:[#allocation2 + $0x31] sm:$0xff]  ;;  %v4020_v4 = vpop.permute.xlu2 %529 }
 0x1ad   :  { %497 = vrot.lane.b32.xlu0 %v438_v7, %s3729_s6  ;;  %v479_v5 = vld [vmem:[#allocation2 + $0x35] sm:$0xff]  ;;  %v478_v6 = vld [vmem:[#allocation2 + $0x2d] sm:$0xff] }
 0x1ae   :  { %v472_v7 = vld [vmem:[#allocation2 + $0x34] sm:$0xff] }
 0x1b3   :  { %632 = vrot.lane.b32.xlu2 %v446_v15, %s3732_s9  ;;  %v4025_v11 = vpop.permute.xlu1 %557 }
 0x1b4   :  { %630 = vrot.lane.b32.xlu1 %v445_v62, %s3732_s9  ;;  %v463_v62 = vld [vmem:[#allocation2 + $0x30] sm:$0xff]  ;;  %v4029_v16 = vpop.permute.xlu2 %662 }
 0x1b5   :  { %609 = vrot.lane.b32.xlu0 %v466_v17, %s3730_s7  ;;  %v4027_v13 = vpop.permute.xlu0 %501  ;;  %v443_v17 = vld [vmem:[#allocation2 + $0x33] sm:$0x3] }
 0x1b9   :  { %3305 = vmatmul.msk.bf16.gmra.mxu1 %vm18_vm6, %v764_v21 }
 0x1bb   :  { %559 = vrot.lane.b32.xlu2 %v455_v25, %s3727_s30  ;;  %v4034_v18 = vpop.permute.xlu1 %611  ;;  %v473_v25 = vld [vmem:[#allocation2 + $0x3c] sm:$0x3] }
 0x1bc   :  { %660 = vrot.lane.b32.xlu1 %v475_v26, %s3731_s8  ;;  %v471_v26 = vld [vmem:[#allocation2 + $0x39] sm:$0x3]  ;;  %v4041_v47 = vpop.permute.xlu2 %613 }
 0x1bd   :  { %658 = vrot.lane.b32.xlu0 %v474_v42, %s3731_s8  ;;  %v4036_v21 = vpop.permute.xlu0 %585  ;;  %v464_v42 = vld [vmem:[#allocation2 + $0x38] sm:$0x3] }
 0x1c3   :  { %499 = vrot.lane.b32.xlu2 %v439_v52, %s3729_s6  ;;  %v4046_v52 = vpop.permute.xlu1 %636 }
 0x1c4   :  { %527 = vrot.lane.b32.xlu1 %v446_v15, %s3728_s5  ;;  %v450_v15 = vld [vmem:[#allocation2 + $0x34] sm:$0x3]  ;;  %v4051_v57 = vpop.permute.xlu2 %505 }
 0x1c5   :  { %555 = vrot.lane.b32.xlu0 %v453_v54, %s3727_s30  ;;  %v4048_v54 = vpop.permute.xlu0 %634 }
 0x1c9   :  { %3306 = vmatmul.msk.bf16.gmra.mxu1 %vm18_vm6, %v766_v61  ;;  %v3608_v61 = vld [vmem:[%s5203_s1 + $0x60] sm:$0xff] }
 0x1ca   :  { %856 = vmatpush.bf16.msra.mxu3 %v3608_v61 }
 0x1cb   :  { %589 = vrot.lane.b32.xlu2 %v463_v62, %s3726_s29  ;;  %v3607_v62 = vld [vmem:[%s5203_s1 + $0x58] sm:$0xff] }
 0x1cc   :  { %587 = vrot.lane.b32.xlu1 %v462_v63, %s3726_s29  ;;  %v4059_v63 = vpop.permute.xlu1 %503 }
 0x1cd   :  { %561 = vrot.lane.b32.xlu0 %v456_v0, %s3727_s30  ;;  %v4061_v0 = vpop.permute.xlu0 %664 }
 0x1ce   :  { %857 = vmatpush.bf16.msra.mxu3 %v3607_v62 }
 0x1d3   :  { %638 = vrot.lane.b32.xlu2 %v3922_v32, %s3732_s9  ;;  %v457_v32 = vld [vmem:[#allocation2 + $0x37] sm:$0x3] }
 0x1d4   :  { %617 = vrot.lane.b32.xlu1 %v470_v2, %s3730_s7 }
 0x1d5   :  { %615 = vrot.lane.b32.xlu0 %v469_v3, %s3730_s7  ;;  %v3606_v3 = vld [vmem:[%s5203_s1 + $0x50] sm:$0xff] }
 0x1d6   :  { %858 = vmatpush.bf16.msra.mxu3 %v3606_v3 }
 0x1db   :  { %668 = vrot.lane.b32.xlu2 %v479_v5, %s3731_s8  ;;  %v3605_v5 = vld [vmem:[%s5203_s1 + $0x48] sm:$0xff] }
 0x1dc   :  { %666 = vrot.lane.b32.xlu1 %v478_v6, %s3731_s8  ;;  %v4069_v6 = vpop.permute.xlu1 %533  ;;  %859 = vmatpush.bf16.msra.mxu3 %v3605_v5 }
 0x1dd   :  { %640 = vrot.lane.b32.xlu0 %v472_v7, %s3732_s9  ;;  %v4071_v7 = vpop.permute.xlu0 %531 }
 0x1e3   :  { %563 = vrot.lane.b32.xlu2 %v457_v32, %s3727_s30  ;;  %v3604_v32 = vld [vmem:[%s5203_s1 + $0x40] sm:$0xff] }
 0x1e4   :  { %535 = vrot.lane.b32.xlu1 %v450_v15, %s3728_s5  ;;  %860 = vmatpush.bf16.msra.mxu3 %v3604_v32 }
 0x1e5   :  { %507 = vrot.lane.b32.xlu0 %v443_v17, %s3729_s6  ;;  %v3603_v17 = vld [vmem:[%s5203_s1 + $0x38] sm:$0xff] }
 0x1e8   :  { %861 = vmatpush.bf16.msra.mxu3 %v3603_v17 }
 0x1eb   :  { %642 = vrot.lane.b32.xlu2 %v473_v25, %s3732_s9 }
 0x1ec   :  { %619 = vrot.lane.b32.xlu1 %v471_v26, %s3730_s7 }
 0x1ed   :  { %591 = vrot.lane.b32.xlu0 %v464_v42, %s3726_s29  ;;  %v3602_v42 = vld [vmem:[%s5203_s1 + $0x30] sm:$0xff] }
 0x1ee   :  { %862 = vmatpush.bf16.msra.mxu3 %v3602_v42 }
 0x1f5   :  { %670 = vrot.lane.b32.xlu0 %v480_v53, %s3731_s8  ;;  %v552_v2 = vpop.permute.xlu2 %551 }
 0x1fd   :  { %v554_v15 = vpop.permute.xlu2 %553 }
 0x205   :  { %v608_v50 = vpop.permute.xlu2 %607 }
 0x20d   :  { %v633_v62 = vpop.permute.xlu2 %632 }
 0x20e   :  { %v524_v25 = vpop.permute.xlu1 %523 }
 0x20f   :  { %v496_v26 = vpop.permute.xlu0 %495 }
 0x210   :  { %v679_v10 = vsel %vm18_vm6, %v430_v49, %v496_v26  ;;  %v5228_v49 = vunpack.c.l.bf16 %v3953_v56  ;;  %v733_v26 = vunpack.c.l.bf16 %v3948_v58 }
 0x211   :  { %v687_v12 = vsel %vm686_vm8, %v679_v10, %v524_v25 }
 0x212   :  { %v695_v30 = vsel %vm694_vm9, %v687_v12, %v552_v2 }
 0x215   :  { %v560_v59 = vpop.permute.xlu2 %559 }
 0x216   :  { %v526_v53 = vpop.permute.xlu1 %525 }
 0x217   :  { %v580_v61 = vpop.permute.xlu0 %579 }
 0x218   :  { %v702_v24 = vsel %vm376_vm3, %v695_v30, %v580_v61 }
 0x219   :  { %v710_v10 = vsel %vm709_vm10, %v702_v24, %v608_v50 }
 0x21d   :  { %v500_v50 = vpop.permute.xlu2 %499 }
 0x21e   :  { %v582_v3 = vpop.permute.xlu1 %581 }
 0x21f   :  { %v498_v5 = vpop.permute.xlu0 %497 }
 0x220   :  { %v680_v32 = vsel %vm18_vm6, %v431_v46, %v498_v5 }
 0x221   :  { %v688_v17 = vsel %vm686_vm8, %v680_v32, %v526_v53  ;;  %v433_v53 = vld [vmem:[#allocation2 + $0x1a] sm:$0xff]  ;;  %v432_v32 = vld [vmem:[#allocation2 + $0x12] sm:$0xff] }
 0x222   :  { %v696_v31 = vsel %vm694_vm9, %v688_v17, %v554_v15  ;;  %v682_v24 = vsel %vm18_vm6, %v433_v53, %v4027_v13  ;;  %v681_v17 = vsel %vm18_vm6, %v432_v32, %v500_v50 }
 0x223   :  { %v703_v46 = vsel %vm376_vm3, %v696_v31, %v582_v3 }
 0x226   :  { %v631_v60 = vpop.permute.xlu1 %630 }
 0x227   :  { %v610_v42 = vpop.permute.xlu0 %609  ;;  %v718_v25 = vsel %vm717_vm11, %v710_v10, %v631_v60 }
 0x228   :  { %v711_v5 = vsel %vm709_vm10, %v703_v46, %v610_v42 }
 0x229   :  { %v719_v12 = vsel %vm717_vm11, %v711_v5, %v633_v62  ;;  %v690_v62 = vsel %vm686_vm8, %v682_v24, %v4020_v4 }
 0x22a   :  { %v698_v5 = vsel %vm694_vm9, %v690_v62, %v4025_v11  ;;  %v435_v62 = vld [vmem:[#allocation2 + $0x2a] sm:$0xff] }
 0x22e   :  { %v661_v15 = vpop.permute.xlu1 %660 }
 0x22f   :  { %v659_v2 = vpop.permute.xlu0 %658  ;;  %v727_v30 = vsel %vm725_vm12, %v719_v12, %v661_v15  ;;  %v5226_v12 = vunpack.c.l.bf16 %v3976_v9 }
 0x230   :  { %v726_v31 = vsel %vm725_vm12, %v718_v25, %v659_v2  ;;  %v749_v61 = vmul.f32 %v5228_v49, %v727_v30  ;;  %v705_v25 = vsel %vm376_vm3, %v698_v5, %v4036_v21  ;;  %v590_v30 = vpop.permute.xlu2 %589 }
 0x231   :  { %v747_v3 = vmul.f32 %v733_v26, %v726_v31  ;;  %v713_v2 = vsel %vm709_vm10, %v705_v25, %v4041_v47  ;;  %v5227_v31 = vunpack.c.l.bf16 %v3970_v8  ;;  %v487_v25 = vld [vmem:[#allocation2 + $0x3e] sm:$0x3] }
 0x232   :  { %v721_v21 = vsel %vm717_vm11, %v713_v2, %v4046_v52  ;;  %v434_v52 = vld [vmem:[#allocation2 + $0x22] sm:$0xff] }
 0x233   :  { %v761_v60 = vpack.c.bf16 %v749_v61, %v747_v3 }
 0x235   :  { %863 = vmatmul.bf16.vlgmr.msra.gmra.mxu3 %v761_v60 }
 0x236   :  { %v528_v42 = vpop.permute.xlu1 %527 }
 0x237   :  { %v556_v46 = vpop.permute.xlu0 %555  ;;  %v689_v10 = vsel %vm686_vm8, %v681_v17, %v528_v42  ;;  %v4142_v17 = vld [vmem:[%s5206_s2 + $0x140] sm:$0x11] }
 0x238   :  { %v697_v13 = vsel %vm694_vm9, %v689_v10, %v556_v46  ;;  %v639_v24 = vpop.permute.xlu2 %638  ;;  %v746_v5 = vunpack.c.h.bf16 %v4142_v17 }
 0x239   :  { %v704_v15 = vsel %vm376_vm3, %v697_v13, %v4014_v1  ;;  %v3611_v13 = vld [vmem:[%s5203_s1 + $0x78] sm:$0xff] }
 0x23a   :  { %v712_v4 = vsel %vm709_vm10, %v704_v15, %v4034_v18  ;;  %v729_v18 = vsel %vm725_vm12, %v721_v21, %v4061_v0  ;;  %v684_v0 = vsel %vm18_vm6, %v435_v62, %v4051_v57  ;;  %951 = vmatpush.bf16.msrb.mxu2 %v3611_v13 }
 0x23b   :  { %v720_v11 = vsel %vm717_vm11, %v712_v4, %v4048_v54  ;;  %v753_v3 = vmul.f32 %v5227_v31, %v729_v18  ;;  %v692_v42 = vsel %vm686_vm8, %v684_v0, %v4069_v6  ;;  %v5224_v6 = vunpack.c.l.bf16 %v3993_v43 }
 0x23c   :  { %v728_v1 = vsel %vm725_vm12, %v720_v11, %v4029_v16  ;;  %v683_v16 = vsel %vm18_vm6, %v434_v52, %v4059_v63 }
 0x23d   :  { %v751_v47 = vmul.f32 %v5226_v12, %v728_v1  ;;  %v691_v32 = vsel %vm686_vm8, %v683_v16, %v4071_v7  ;;  %v5225_v7 = vunpack.c.l.bf16 %v3999_v44 }
 0x23e   :  { %v588_v53 = vpop.permute.xlu1 %587  ;;  %v699_v46 = vsel %vm694_vm9, %v691_v32, %v560_v59  ;;  %v760_v59 = vmul.f32 %v746_v5, %v487_v25 }
 0x23f   :  { %v562_v61 = vpop.permute.xlu0 %561  ;;  %v763_v54 = vpack.c.bf16 %v753_v3, %v751_v47  ;;  %v706_v63 = vsel %vm376_vm3, %v699_v46, %v588_v53 }
 0x240   :  { %v700_v10 = vsel %vm694_vm9, %v692_v42, %v562_v61  ;;  %v669_v1 = vpop.permute.xlu2 %668  ;;  %v768_v61 = vpack.c.bf16 %v760_v59, %v760_v59 }
 0x241   :  { %v707_v15 = vsel %vm376_vm3, %v700_v10, %v590_v30 }
 0x242   :  { %3307 = vmatmul.msk.bf16.gmra.mxu1 %vm18_vm6, %v768_v61 }
 0x245   :  { %868 = vmatmul.bf16.gmra.mxu3 %v763_v54 }
 0x246   :  { %v618_v50 = vpop.permute.xlu1 %617 }
 0x247   :  { %v616_v60 = vpop.permute.xlu0 %615  ;;  %v715_v4 = vsel %vm709_vm10, %v707_v15, %v618_v50  ;;  %v436_v50 = vld [vmem:[#allocation2 + $0x32] sm:$0x3] }
 0x248   :  { %v714_v57 = vsel %vm709_vm10, %v706_v63, %v616_v60  ;;  %v564_v62 = vpop.permute.xlu2 %563 }
 0x249   :  { %v722_v11 = vsel %vm717_vm11, %v714_v57, %v639_v24  ;;  %v5223_v57 = vunpack.c.l.bf16 %v4142_v17 }
 0x24e   :  { %v667_v2 = vpop.permute.xlu1 %666 }
 0x24f   :  { %v641_v21 = vpop.permute.xlu0 %640  ;;  %v730_v18 = vsel %vm725_vm12, %v722_v11, %v667_v2  ;;  %v892_v2 = vpop.f32.mrf.mxu1 }
 0x250   :  { %v723_v53 = vsel %vm717_vm11, %v715_v4, %v641_v21  ;;  %v755_v30 = vmul.f32 %v5225_v7, %v730_v18  ;;  %v643_v63 = vpop.permute.xlu2 %642 }
 0x251   :  { %v731_v47 = vsel %vm725_vm12, %v723_v53, %v669_v1  ;;  %v3695_v53 = vld [vmem:[%s5204_s3 + $0x2] ss:$0 sm:$0xff] }
 0x252   :  { %v757_v3 = vmul.f32 %v5224_v6, %v731_v47 }
 0x254   :  { %v765_v54 = vpack.c.bf16 %v757_v3, %v755_v30 }
 0x256   :  { %873 = vmatmul.bf16.gmra.mxu3 %v765_v54  ;;  %v536_v24 = vpop.permute.xlu1 %535 }
 0x257   :  { %v508_v52 = vpop.permute.xlu0 %507  ;;  %v894_v11 = vpop.f32.mrf.mxu1 }
 0x258   :  { %v685_v60 = vsel %vm18_vm6, %v436_v50, %v508_v52 }
 0x259   :  { %v693_v16 = vsel %vm686_vm8, %v685_v60, %v536_v24 }
 0x25a   :  { %v701_v32 = vsel %vm694_vm9, %v693_v16, %v564_v62 }
 0x25e   :  { %v620_v42 = vpop.permute.xlu1 %619 }
 0x25f   :  { %v592_v0 = vpop.permute.xlu0 %591  ;;  %v897_v21 = vpop.f32.mrf.mxu1 }
 0x260   :  { %v708_v46 = vsel %vm376_vm3, %v701_v32, %v592_v0 }
 0x261   :  { %v716_v10 = vsel %vm709_vm10, %v708_v46, %v620_v42 }
 0x262   :  { %v724_v25 = vsel %vm717_vm11, %v716_v10, %v643_v63 }
 0x267   :  { %v671_v13 = vpop.permute.xlu0 %670  ;;  %v899_v1 = vpop.f32.mrf.mxu1 }
 0x268   :  { %v732_v15 = vsel %vm725_vm12, %v724_v25, %v671_v13 }
 0x269   :  { %v759_v59 = vmul.f32 %v5223_v57, %v732_v15 }
 0x26b   :  { %v767_v4 = vpack.c.bf16 %v759_v59, %v759_v59 }
 0x26d   :  { %878 = vmatmul.bf16.gmra.mxu3 %v767_v4 }
 0x26f   :  { %v902_v30 = vpop.f32.mrf.mxu1 }
 0x277   :  { %v904_v16 = vpop.f32.mrf.mxu1 }
 0x2b8   :  { %v864_v18 = vpop.f32.mrf.mxu3 }
 0x2b9   :  { %v865_v61 = vadd.f32 %v3695_v53, %v864_v18 }
 0x2bb   :  { %v893_v3 = vadd.f32 %v892_v2, %v865_v61  ;;  %v3615_v2 = vld [vmem:[%s5203_s1 + $0x98] sm:$0xff] }
 0x2bc   :  { %1040 = vmatpush.bf16.msrb.mxu3 %v3615_v2 }
 0x2bd   :  { %v911_v52 = vmax.f32 %v893_v3, 0.0 }
 0x2bf   :  { %v907_v63 = vpop.f32.mrf.mxu1 }
 0x2c0   :  { %v866_v47 = vpop.f32.mrf.mxu3 }
 0x2c1   :  { %v867_v54 = vadd.f32 %v3695_v53, %v866_v47 }
 0x2c3   :  { %v895_v24 = vadd.f32 %v894_v11, %v867_v54  ;;  %v3614_v11 = vld [vmem:[%s5203_s1 + $0x90] sm:$0xff] }
 0x2c4   :  { %1041 = vmatpush.bf16.msrb.mxu3 %v3614_v11 }
 0x2c5   :  { %v912_v50 = vmax.f32 %v895_v24, 0.0 }
 0x2c7   :  { %v918_v60 = vpack.c.bf16 %v912_v50, %v911_v52  ;;  %v909_v4 = vpop.f32.mrf.mxu1 }
 0x2c8   :  { %v869_v62 = vpop.f32.mrf.mxu3 }
 0x2c9   :  { %3312 = vmatmul.msk.bf16.vlgmr.msrb.gmra.mxu2 %vm18_vm6, %v918_v60  ;;  %v870_v0 = vadd.f32 %v3695_v53, %v869_v62 }
 0x2cb   :  { %v898_v42 = vadd.f32 %v897_v21, %v870_v0 }
 0x2cd   :  { %v913_v25 = vmax.f32 %v898_v42, 0.0 }
 0x2d0   :  { %v871_v32 = vpop.f32.mrf.mxu3 }
 0x2d1   :  { %v872_v46 = vadd.f32 %v3695_v53, %v871_v32 }
 0x2d3   :  { %v900_v10 = vadd.f32 %v899_v1, %v872_v46  ;;  %v3613_v1 = vld [vmem:[%s5203_s1 + $0x88] sm:$0xff]  ;;  %v3696_v46 = vld [vmem:[%s5204_s3 + $0x3] ss:$0 sm:$0xff] }
 0x2d4   :  { %1042 = vmatpush.bf16.msrb.mxu3 %v3613_v1 }
 0x2d5   :  { %v914_v13 = vmax.f32 %v900_v10, 0.0 }
 0x2d7   :  { %v919_v15 = vpack.c.bf16 %v914_v13, %v913_v25 }
 0x2d9   :  { %v874_v59 = vpop.f32.mrf.mxu3  ;;  %3313 = vmatmul.msk.bf16.gmra.mxu2 %vm18_vm6, %v919_v15 }
 0x2da   :  { %v875_v21 = vadd.f32 %v3695_v53, %v874_v59 }
 0x2dc   :  { %v903_v61 = vadd.f32 %v902_v30, %v875_v21  ;;  %v3612_v30 = vld [vmem:[%s5203_s1 + $0x80] sm:$0xff] }
 0x2dd   :  { %1043 = vmatpush.bf16.msrb.mxu3 %v3612_v30 }
 0x2de   :  { %v915_v54 = vmax.f32 %v903_v61, 0.0 }
 0x2e1   :  { %v876_v18 = vpop.f32.mrf.mxu3 }
 0x2e2   :  { %v877_v47 = vadd.f32 %v3695_v53, %v876_v18 }
 0x2e4   :  { %v905_v3 = vadd.f32 %v904_v16, %v877_v47 }
 0x2e6   :  { %v916_v24 = vmax.f32 %v905_v3, 0.0  ;;  %v5230_v3 = vmax.f32 %v3810_v27, 0.0  ;;  %v3592_v27 = vld [vmem:[%s5205_s0 + $0x28] sm:$0xff] }
 0x2e7   :  { %3227 = vmatmul.msk.bf16.gmra.mxu0 %vm160_vm2, %v3592_v27 }
 0x2e8   :  { %v920_v52 = vpack.c.bf16 %v916_v24, %v915_v54 }
 0x2ea   :  { %3314 = vmatmul.msk.bf16.gmra.mxu2 %vm18_vm6, %v920_v52  ;;  %v5231_v52 = vmax.f32 %v3812_v29, 0.0 }
 0x2f0   :  { %v879_v50 = vpop.f32.mrf.mxu3 }
 0x2f1   :  { %v880_v60 = vadd.f32 %v3695_v53, %v879_v50 }
 0x2f3   :  { %v908_v62 = vadd.f32 %v907_v63, %v880_v60 }
 0x2f5   :  { %v917_v0 = vmax.f32 %v908_v62, 0.0 }
 0x2f7   :  { %v921_v32 = vpack.c.bf16 %v917_v0, %v917_v0 }
 0x2f8   :  { %v881_v42 = vpop.f32.mrf.mxu3 }
 0x2fa   :  { %3315 = vmatmul.msk.bf16.gmra.mxu2 %vm18_vm6, %v921_v32 }
 0x34c   :  { %v953_v16 = vpop.f32.mrf.mxu2 }
 0x34d   :  { %v954_v10 = vadd.f32 %v3696_v46, %v953_v16 }
 0x34f   :  { %v4203_v53 = vadd.f32 %v954_v10, %v256_v41 }
 0x351   :  { %v5217_v15 = vmax.f32 %v4203_v53, 0.0 }
 0x354   :  { %v955_v25 = vpop.f32.mrf.mxu2 }
 0x355   :  { %v956_v63 = vadd.f32 %v3696_v46, %v955_v25  ;;  %v3593_v25 = vld [vmem:[%s5205_s0 + $0x30] sm:$0xff] }
 0x356   :  { %3228 = vmatmul.msk.bf16.gmra.mxu0 %vm160_vm2, %v3593_v25 }
 0x357   :  { %v4207_v13 = vadd.f32 %v956_v63, %v257_v40  ;;  %v5229_v40 = vmax.f32 %v3801_v22, 0.0  ;;  %v3595_v63 = vld [vmem:[%s5205_s0 + $0x40] sm:$0xff] }
 0x359   :  { %v5218_v59 = vmax.f32 %v4207_v13, 0.0 }
 0x35b   :  { %v986_v4 = vpack.c.bf16 %v5218_v59, %v5217_v15  ;;  %v1128_v15 = vld [vmem:[#allocation2 + $0x3d] sm:$0x3] }
 0x35c   :  { %v958_v2 = vpop.f32.mrf.mxu2 }
 0x35d   :  { %3332 = vmatmul.msk.bf16.vlgmr.msrb.gmra.mxu3 %vm376_vm3, %v986_v4  ;;  %v959_v39 = vadd.f32 %v3696_v46, %v958_v2  ;;  %v94_v4 = vld [vmem:[%s5205_s0 + $0x48] sm:$0x7] }
 0x35e   :  { %v138_v2 = vunpack.c.l.b16 %v94_v4 }
 0x35f   :  { %v4218_v11 = vadd.f32 %v959_v39, %v258_v23 }
 0x360   :  { %v148_v39 = vpack.c.b16 %v138_v2, %v138_v2 }
 0x361   :  { %v5219_v1 = vmax.f32 %v4218_v11, 0.0 }
 0x364   :  { %v960_v41 = vpop.f32.mrf.mxu2 }
 0x365   :  { %v961_v38 = vadd.f32 %v3696_v46, %v960_v41  ;;  %v1135_v41 = vld [vmem:[#allocation2 + $0x3e] sm:$0x3] }
 0x367   :  { %v4222_v21 = vadd.f32 %v961_v38, %v5229_v40  ;;  %v1389_v38 = vmul.f32 %v1135_v41, %v746_v5  ;;  %v4281_v40 = vld [vmem:[%s5204_s3 + $0x4] ss:$0 sm:$0xff] }
 0x369   :  { %v5220_v18 = vmax.f32 %v4222_v21, 0.0 }
 0x36b   :  { %v987_v61 = vpack.c.bf16 %v5220_v18, %v5219_v1 }
 0x36d   :  { %v963_v47 = vpop.f32.mrf.mxu2  ;;  %3333 = vmatmul.msk.bf16.gmra.mxu3 %vm376_vm3, %v987_v61  ;;  %v3624_v61 = vld [vmem:[%s5203_s1 + $0xe0] sm:$0xff] }
 0x36e   :  { %v964_v22 = vadd.f32 %v3696_v46, %v963_v47  ;;  %v1397_v47 = vpack.c.bf16 %v1389_v38, %v1389_v38  ;;  %1519 = vmatpush.bf16.msrb.mxu0 %v3624_v61  ;;  %3670 = vmatpush.bf16.msra.mxu2 %v3624_v61 }
 0x36f   :  { %3671 = vmatpush.bf16.msra.mxu3 %v3624_v61 }
 0x370   :  { %v4237_v54 = vadd.f32 %v964_v22, %v5230_v3 }
 0x372   :  { %v5221_v60 = vmax.f32 %v4237_v54, 0.0 }
 0x375   :  { %v965_v23 = vpop.f32.mrf.mxu2 }
 0x376   :  { %v966_v24 = vadd.f32 %v3696_v46, %v965_v23 }
 0x378   :  { %v4241_v50 = vadd.f32 %v966_v24, %v5231_v52 }
 0x37a   :  { %v5222_v62 = vmax.f32 %v4241_v50, 0.0 }
 0x37c   :  { %v988_v0 = vpack.c.bf16 %v5222_v62, %v5221_v60 }
 0x37d   :  { %v968_v32 = vpop.f32.mrf.mxu2 }
 0x37e   :  { %3334 = vmatmul.msk.bf16.gmra.mxu3 %vm376_vm3, %v988_v0  ;;  %v969_v42 = vadd.f32 %v3696_v46, %v968_v32  ;;  %v3594_v46 = vld [vmem:[%s5205_s0 + $0x38] sm:$0xff] }
 0x37f   :  { %3229 = vmatmul.msk.bf16.gmra.mxu0 %vm160_vm2, %v3594_v46  ;;  %v4298_v46 = vpop.f32.mrf.mxu0 }
 0x380   :  { %v978_v29 = vadd.f32 %v969_v42, %v3821_v35 }
 0x382   :  { %v4255_v16 = vmax.f32 %v978_v29, 0.0 }
 0x384   :  { %v989_v10 = vpack.c.bf16 %v4255_v16, %v4255_v16 }
 0x385   :  { %v970_v30 = vpop.f32.mrf.mxu2 }
 0x38e   :  { %3335 = vmatmul.msk.bf16.gmra.mxu3 %vm376_vm3, %v989_v10 }
 0x38f   :  { %3230 = vmatmul.msk.bf16.gmra.mxu0 %vm160_vm2, %v3595_v63 }
 0x39e   :  { %3375 = vmatmul.msk.bf16.vlgmr.msra.gmra.mxu3 %vm18_vm6, %v1397_v47 }
 0x39f   :  { %3231 = vmatmul.msk.bf16.gmra.mxu0 %vm160_vm2, %v148_v39  ;;  %vm3026_vm2 = vcmask 521216  }
 0x3e0   :  { %v1045_v20 = vpop.f32.mrf.mxu3 }
 0x3e1   :  { %v1046_v22 = vadd.f32 %v4281_v40, %v1045_v20  ;;  %v5232_v20 = vunpack.c.h.bf16 %v3948_v58 }
 0x3e3   :  { %v1064_v23 = vmax.f32 %v1046_v22, 0.0 }
 0x3e5   :  { %1071 = vst.msk [vmem:[#allocation2 + $0x8] sm:$0xff] %vm18_vm6, %v1064_v23  ;;  %v5233_v23 = vunpack.c.h.bf16 %v3953_v56 }
 0x3e8   :  { %v1047_v5 = vpop.f32.mrf.mxu3 }
 0x3e9   :  { %v1048_v3 = vadd.f32 %v4281_v40, %v1047_v5 }
 0x3eb   :  { %v1065_v24 = vmax.f32 %v1048_v3, 0.0  ;;  %v4310_v3 = vpop.f32.mrf.mxu0 }
 0x3ec   :  { %v1099_v52 = vld [vmem:[#allocation2 + $0x7] sm:$0xff] }
 0x3ed   :  { %v1092_v0 = vld [vmem:[#allocation2 + $0x4] sm:$0xff]  ;;  %1072 = vst.msk [vmem:[#allocation2 + $0x10] sm:$0xff] %vm18_vm6, %v1065_v24  ;;  %1199 = vrot.lane.b32.xlu2 %v1099_v52, %s3727_s30 }
 0x3ee   :  { %v1085_v27 = vld [vmem:[#allocation2 + $0x3] sm:$0xff]  ;;  %1171 = vrot.lane.b32.xlu0 %v1092_v0, %s3728_s5 }
 0x3ef   :  { %1143 = vrot.lane.b32.xlu1 %v1085_v27, %s3729_s6  ;;  %v1106_v25 = vld [vmem:[#allocation2 + $0x8] sm:$0xff] }
 0x3f0   :  { %v1050_v32 = vpop.f32.mrf.mxu3  ;;  %v1078_v18 = vld [vmem:[#allocation2 + $0x2] sm:$0xff] }
 0x3f1   :  { %v1051_v42 = vadd.f32 %v4281_v40, %v1050_v32 }
 0x3f3   :  { %v1066_v29 = vmax.f32 %v1051_v42, 0.0 }
 0x3f4   :  { %v1100_v30 = vld [vmem:[#allocation2 + $0xf] sm:$0xff] }
 0x3f5   :  { %v1086_v10 = vld [vmem:[#allocation2 + $0xb] sm:$0xff]  ;;  %1073 = vst.msk [vmem:[#allocation2 + $0x18] sm:$0xff] %vm18_vm6, %v1066_v29  ;;  %v4318_v29 = vpop.f32.mrf.mxu0 }
 0x3f6   :  { %1201 = vrot.lane.b32.xlu0 %v1100_v30, %s3727_s30  ;;  %1145 = vrot.lane.b32.xlu2 %v1086_v10, %s3729_s6  ;;  %v1129_v2 = vld [vmem:[#allocation2 + $0xe] sm:$0xff] }
 0x3f7   :  { %1227 = vrot.lane.b32.xlu1 %v1106_v25, %s3726_s29  ;;  %v1113_v41 = vld [vmem:[#allocation2 + $0x9] sm:$0xff]  ;;  %v1377_v22 = vmul.f32 %v1129_v2, %v5232_v20 }
 0x3f8   :  { %v1052_v63 = vpop.f32.mrf.mxu3  ;;  %v1107_v38 = vld [vmem:[#allocation2 + $0x10] sm:$0xff] }
 0x3f9   :  { %v1053_v4 = vadd.f32 %v4281_v40, %v1052_v63  ;;  %v1093_v47 = vld [vmem:[#allocation2 + $0xc] sm:$0xff] }
 0x3fa   :  { %v1122_v42 = vld [vmem:[#allocation2 + $0xd] sm:$0xff] }
 0x3fb   :  { %v1067_v39 = vmax.f32 %v1053_v4, 0.0 }
 0x3fc   :  { %v1130_v61 = vld [vmem:[#allocation2 + $0x16] sm:$0xff] }
 0x3fd   :  { %1074 = vst.msk [vmem:[#allocation2 + $0x20] sm:$0xff] %vm18_vm6, %v1067_v39  ;;  %v1379_v5 = vmul.f32 %v1130_v61, %v5233_v23  ;;  %v1094_v32 = vld [vmem:[#allocation2 + $0x14] sm:$0xff] }
 0x3fe   :  { %1255 = vrot.lane.b32.xlu0 %v1113_v41, %s3730_s7  ;;  %1229 = vrot.lane.b32.xlu2 %v1107_v38, %s3726_s29  ;;  %v1087_v4 = vld [vmem:[#allocation2 + $0x13] sm:$0xff]  ;;  %v5234_v38 = vunpack.c.h.bf16 %v3976_v9 }
 0x3ff   :  { %1173 = vrot.lane.b32.xlu1 %v1093_v47, %s3728_s5  ;;  %v1391_v24 = vpack.c.bf16 %v1379_v5, %v1377_v22  ;;  %v1123_v2 = vld [vmem:[#allocation2 + $0x15] sm:$0xff]  ;;  %v4329_v22 = vpop.f32.mrf.mxu0 }
 0x400   :  { %v1114_v39 = vld [vmem:[#allocation2 + $0x11] sm:$0xff] }
 0x401   :  { %v1055_v52 = vpop.f32.mrf.mxu3  ;;  %3372 = vmatmul.msk.bf16.vlgmr.msrb.gmra.mxu0 %vm18_vm6, %v1391_v24 }
 0x402   :  { %v1056_v0 = vadd.f32 %v4281_v40, %v1055_v52 }
 0x404   :  { %v1068_v27 = vmax.f32 %v1056_v0, 0.0  ;;  %v1131_v25 = vld [vmem:[#allocation2 + $0x1e] sm:$0xff] }
 0x405   :  { %v1381_v61 = vmul.f32 %v1131_v25, %v5234_v38  ;;  %v1108_v0 = vld [vmem:[#allocation2 + $0x18] sm:$0xff] }
 0x406   :  { %1280 = vrot.lane.b32.xlu0 %v1094_v32, %s3732_s9  ;;  %1278 = vrot.lane.b32.xlu2 %v1093_v47, %s3732_s9  ;;  %1075 = vst.msk [vmem:[#allocation2 + $0x28] sm:$0xff] %vm18_vm6, %v1068_v27  ;;  %v5235_v47 = vunpack.c.h.bf16 %v3970_v8  ;;  %v1101_v27 = vld [vmem:[#allocation2 + $0x17] sm:$0xff] }
 0x407   :  { %1306 = vrot.lane.b32.xlu1 %v1122_v42, %s3731_s8  ;;  %v4337_v42 = vpop.f32.mrf.mxu0  ;;  %v1095_v25 = vld [vmem:[#allocation2 + $0x1c] sm:$0xff] }
 0x408   :  { %v1081_v58 = vld [vmem:[#allocation2 + $0x1a] sm:$0xff] }
 0x409   :  { %v1057_v30 = vpop.f32.mrf.mxu3 }
 0x40a   :  { %v1058_v10 = vadd.f32 %v4281_v40, %v1057_v30 }
 0x40c   :  { %v1069_v63 = vmax.f32 %v1058_v10, 0.0 }
 0x40d   :  { %v1132_v41 = vld [vmem:[#allocation2 + $0x26] sm:$0xff] }
 0x40e   :  { %1147 = vrot.lane.b32.xlu0 %v1087_v4, %s3729_s6  ;;  %1308 = vrot.lane.b32.xlu2 %v1123_v2, %s3731_s8  ;;  %1076 = vst.msk [vmem:[#allocation2 + $0x30] sm:$0xff] %vm18_vm6, %v1069_v63  ;;  %v1383_v20 = vmul.f32 %v1132_v41, %v5235_v47  ;;  %v1102_v63 = vld [vmem:[#allocation2 + $0x1f] sm:$0xff] }
 0x40f   :  { %1257 = vrot.lane.b32.xlu1 %v1114_v39, %s3730_s7  ;;  %v5237_v39 = vunpack.c.h.bf16 %v3993_v43  ;;  %v4346_v38 = vpop.f32.mrf.mxu0  ;;  %v1124_v47 = vld [vmem:[#allocation2 + $0x1d] sm:$0xff] }
 0x410   :  { %v1393_v23 = vpack.c.bf16 %v1383_v20, %v1381_v61  ;;  %v1115_v20 = vld [vmem:[#allocation2 + $0x19] sm:$0xff] }
 0x411   :  { %v1060_v5 = vpop.f32.mrf.mxu3 }
 0x412   :  { %v1061_v24 = vadd.f32 %v4281_v40, %v1060_v5  ;;  %3373 = vmatmul.msk.bf16.vlgmr.msra.gmra.mxu2 %vm18_vm6, %v1393_v23  ;;  %v1088_v40 = vld [vmem:[#allocation2 + $0x1b] sm:$0xff] }
 0x413   :  { %v1109_v23 = vld [vmem:[#allocation2 + $0x20] sm:$0xff] }
 0x414   :  { %v1070_v52 = vmax.f32 %v1061_v24, 0.0  ;;  %v1116_v24 = vld [vmem:[#allocation2 + $0x21] sm:$0xff] }
 0x415   :  { %v1133_v10 = vld [vmem:[#allocation2 + $0x2e] sm:$0xff] }
 0x416   :  { %1231 = vrot.lane.b32.xlu0 %v1108_v0, %s3726_s29  ;;  %1175 = vrot.lane.b32.xlu2 %v1094_v32, %s3728_s5  ;;  %1077 = vst.msk [vmem:[#allocation2 + $0x38] sm:$0x3] %vm27_vm7, %v1070_v52  ;;  %v5236_v32 = vunpack.c.h.bf16 %v3999_v44  ;;  %v1096_v52 = vld [vmem:[#allocation2 + $0x24] sm:$0xff]  ;;  %vm3104_vm7 = vcmask 517120  }
 0x417   :  { %1203 = vrot.lane.b32.xlu1 %v1101_v27, %s3727_s30  ;;  %v4352_v5 = vpop.f32.mrf.mxu0  ;;  %v1103_v27 = vld [vmem:[#allocation2 + $0x27] sm:$0xff] }
 0x418   :  { %v1385_v2 = vmul.f32 %v1133_v10, %v5236_v32  ;;  %v1125_v10 = vld [vmem:[#allocation2 + $0x25] sm:$0xff]  ;;  %v1111_v32 = vld [vmem:[#allocation2 + $0x30] sm:$0xff] }
 0x419   :  { %v1062_v30 = vpop.f32.mrf.mxu3 }
 0x41a   :  { %v1089_v30 = vld [vmem:[#allocation2 + $0x23] sm:$0xff] }
 0x41d   :  { %v1134_v4 = vld [vmem:[#allocation2 + $0x36] sm:$0xff] }
 0x41e   :  { %1177 = vrot.lane.b32.xlu0 %v1095_v25, %s3728_s5  ;;  %1205 = vrot.lane.b32.xlu2 %v1102_v63, %s3727_s30  ;;  %v1387_v41 = vmul.f32 %v1134_v4, %v5237_v39  ;;  %v1110_v4 = vld [vmem:[#allocation2 + $0x28] sm:$0xff] }
 0x41f   :  { %1149 = vrot.lane.b32.xlu1 %v1088_v40, %s3729_s6  ;;  %v4357_v0 = vpop.f32.mrf.mxu0  ;;  %v1090_v40 = vld [vmem:[#allocation2 + $0x2b] sm:$0xff] }
 0x420   :  { %v1395_v61 = vpack.c.bf16 %v1387_v41, %v1385_v2  ;;  %v1097_v2 = vld [vmem:[#allocation2 + $0x2c] sm:$0xff] }
 0x421   :  { %v1104_v39 = vld [vmem:[#allocation2 + $0x2f] sm:$0xff] }
 0x422   :  { %3374 = vmatmul.msk.bf16.gmra.mxu2 %vm18_vm6, %v1395_v61 }
 0x426   :  { %1310 = vrot.lane.b32.xlu0 %v1124_v47, %s3731_s8  ;;  %1259 = vrot.lane.b32.xlu2 %v1115_v20, %s3730_s7  ;;  %v3623_v47 = vld [vmem:[%s5203_s1 + $0xd8] sm:$0xff]  ;;  %v3622_v20 = vld [vmem:[%s5203_s1 + $0xd0] sm:$0xff] }
 0x427   :  { %1233 = vrot.lane.b32.xlu1 %v1109_v23, %s3726_s29  ;;  %v4362_v63 = vpop.f32.mrf.mxu0  ;;  %1484 = vmatpush.bf16.msrb.mxu1 %v3623_v47  ;;  %v1118_v23 = vld [vmem:[#allocation2 + $0x31] sm:$0xff] }
 0x428   :  { %v3619_v47 = vld [vmem:[%s5203_s1 + $0xb8] sm:$0xff] }
 0x42b   :  { %1485 = vmatpush.bf16.msrb.mxu1 %v3622_v20  ;;  %v3618_v20 = vld [vmem:[%s5203_s1 + $0xb0] sm:$0xff] }
 0x42e   :  { %1261 = vrot.lane.b32.xlu0 %v1116_v24, %s3730_s7  ;;  %1284 = vrot.lane.b32.xlu2 %v1096_v52, %s3732_s9  ;;  %v1117_v24 = vld [vmem:[#allocation2 + $0x29] sm:$0xff] }
 0x42f   :  { %1282 = vrot.lane.b32.xlu1 %v1095_v25, %s3732_s9  ;;  %v4367_v25 = vpop.f32.mrf.mxu0 }
 0x436   :  { %1207 = vrot.lane.b32.xlu0 %v1103_v27, %s3727_s30  ;;  %1151 = vrot.lane.b32.xlu2 %v1089_v30, %s3729_s6  ;;  %v3621_v30 = vld [vmem:[%s5203_s1 + $0xc8] sm:$0xff] }
 0x437   :  { %1312 = vrot.lane.b32.xlu1 %v1125_v10, %s3731_s8  ;;  %v4374_v61 = vpop.f32.mrf.mxu0  ;;  %1486 = vmatpush.bf16.msrb.mxu1 %v3621_v30  ;;  %v3620_v10 = vld [vmem:[%s5203_s1 + $0xc0] sm:$0xff]  ;;  %v1091_v30 = vld [vmem:[#allocation2 + $0x33] sm:$0x3] }
 0x43b   :  { %1487 = vmatpush.bf16.msrb.mxu1 %v3620_v10 }
 0x43e   :  { %1153 = vrot.lane.b32.xlu0 %v1090_v40, %s3729_s6  ;;  %1235 = vrot.lane.b32.xlu2 %v1110_v4, %s3726_s29  ;;  %v1127_v40 = vld [vmem:[#allocation2 + $0x35] sm:$0xff]  ;;  %v1126_v4 = vld [vmem:[#allocation2 + $0x2d] sm:$0xff] }
 0x43f   :  { %1179 = vrot.lane.b32.xlu1 %v1096_v52, %s3728_s5  ;;  %v4385_v27 = vpop.f32.mrf.mxu0  ;;  %1488 = vmatpush.bf16.msrb.mxu1 %v3619_v47  ;;  %v1119_v47 = vld [vmem:[#allocation2 + $0x39] sm:$0x3] }
 0x443   :  { %1489 = vmatpush.bf16.msrb.mxu1 %v3618_v20 }
 0x446   :  { %1237 = vrot.lane.b32.xlu0 %v1111_v32, %s3726_s29  ;;  %1181 = vrot.lane.b32.xlu2 %v1097_v2, %s3728_s5  ;;  %v1120_v32 = vld [vmem:[#allocation2 + $0x34] sm:$0xff] }
 0x447   :  { %1209 = vrot.lane.b32.xlu1 %v1104_v39, %s3727_s30  ;;  %v4372_v41 = vpop.permute.xlu2 %1199  ;;  %v254_v39 = vpop.f32.mrf.mxu0 }
 0x44e   :  { %1286 = vrot.lane.b32.xlu0 %v1097_v2, %s3732_s9  ;;  %1265 = vrot.lane.b32.xlu2 %v1118_v23, %s3730_s7  ;;  %v1105_v23 = vld [vmem:[#allocation2 + $0x37] sm:$0x3] }
 0x44f   :  { %1263 = vrot.lane.b32.xlu1 %v1117_v24, %s3730_s7  ;;  %v1098_v24 = vld [vmem:[#allocation2 + $0x34] sm:$0x3] }
 0x450   :  { %v1146_v52 = vpop.permute.xlu2 %1145 }
 0x456   :  { %1316 = vrot.lane.b32.xlu0 %v1127_v40, %s3731_s8  ;;  %1314 = vrot.lane.b32.xlu2 %v1126_v4, %s3731_s8  ;;  %v3617_v4 = vld [vmem:[%s5203_s1 + $0xa8] sm:$0xff] }
 0x457   :  { %1288 = vrot.lane.b32.xlu1 %v1120_v32, %s3732_s9  ;;  %v1121_v32 = vld [vmem:[#allocation2 + $0x3c] sm:$0x3]  ;;  %1490 = vmatpush.bf16.msrb.mxu1 %v3617_v4 }
 0x458   :  { %v1230_v2 = vpop.permute.xlu2 %1229 }
 0x45e   :  { %1211 = vrot.lane.b32.xlu0 %v1105_v23, %s3727_s30  ;;  %1183 = vrot.lane.b32.xlu2 %v1098_v24, %s3728_s5  ;;  %v3616_v23 = vld [vmem:[%s5203_s1 + $0xa0] sm:$0xff]  ;;  %v1112_v24 = vld [vmem:[#allocation2 + $0x38] sm:$0x3] }
 0x45f   :  { %1155 = vrot.lane.b32.xlu1 %v1091_v30, %s3729_s6  ;;  %1491 = vmatpush.bf16.msrb.mxu1 %v3616_v23 }
 0x460   :  { %v1172_v10 = vpop.permute.xlu0 %1171  ;;  %v1279_v39 = vpop.permute.xlu2 %1278 }
 0x461   :  { %v1144_v40 = vpop.permute.xlu1 %1143 }
 0x462   :  { %v1327_v60 = vsel %vm18_vm6, %v1078_v18, %v1144_v40 }
 0x463   :  { %v1334_v6 = vsel %vm686_vm8, %v1327_v60, %v1172_v10 }
 0x464   :  { %v1341_v7 = vsel %vm694_vm9, %v1334_v6, %v4372_v41  ;;  %v5238_v41 = vunpack.c.l.bf16 %v3953_v56 }
 0x466   :  { %1267 = vrot.lane.b32.xlu2 %v1119_v47, %s3730_s7  ;;  %1290 = vrot.lane.b32.xlu0 %v1121_v32, %s3732_s9  ;;  %v1079_v47 = vld [vmem:[#allocation2 + $0xa] sm:$0xff] }
 0x467   :  { %1239 = vrot.lane.b32.xlu1 %v1112_v24, %s3726_s29  ;;  %v1328_v24 = vsel %vm18_vm6, %v1079_v47, %v1146_v52 }
 0x468   :  { %v1202_v20 = vpop.permute.xlu0 %1201  ;;  %v1309_v59 = vpop.permute.xlu2 %1308 }
 0x469   :  { %v1228_v30 = vpop.permute.xlu1 %1227 }
 0x46f   :  { %1318 = vrot.lane.b32.xlu1 %v1128_v15, %s3731_s8  ;;  %v1348_v15 = vsel %vm376_vm3, %v1341_v7, %v1228_v30 }
 0x470   :  { %v1256_v4 = vpop.permute.xlu0 %1255  ;;  %v1176_v62 = vpop.permute.xlu2 %1175 }
 0x471   :  { %v1174_v1 = vpop.permute.xlu1 %1173  ;;  %v1355_v12 = vsel %vm709_vm10, %v1348_v15, %v1256_v4 }
 0x472   :  { %v1335_v23 = vsel %vm686_vm8, %v1328_v24, %v1174_v1  ;;  %v1362_v40 = vsel %vm717_vm11, %v1355_v12, %v1279_v39 }
 0x473   :  { %v1342_v31 = vsel %vm694_vm9, %v1335_v23, %v1202_v20 }
 0x474   :  { %v1349_v60 = vsel %vm376_vm3, %v1342_v31, %v1230_v2 }
 0x478   :  { %v1281_v57 = vpop.permute.xlu0 %1280  ;;  %v1206_v10 = vpop.permute.xlu2 %1205 }
 0x479   :  { %v1307_v32 = vpop.permute.xlu1 %1306 }
 0x47a   :  { %v1369_v52 = vsel %vm725_vm12, %v1362_v40, %v1307_v32 }
 0x47b   :  { %v1376_v7 = vmul.f32 %v1369_v52, %v733_v26 }
 0x480   :  { %v1148_v18 = vpop.permute.xlu0 %1147  ;;  %v1260_v31 = vpop.permute.xlu2 %1259 }
 0x481   :  { %v1258_v49 = vpop.permute.xlu1 %1257 }
 0x482   :  { %v1356_v1 = vsel %vm709_vm10, %v1349_v60, %v1258_v49  ;;  %v1080_v49 = vld [vmem:[#allocation2 + $0x12] sm:$0xff] }
 0x483   :  { %v1363_v47 = vsel %vm717_vm11, %v1356_v1, %v1281_v57  ;;  %v1329_v57 = vsel %vm18_vm6, %v1080_v49, %v1148_v18 }
 0x484   :  { %v1370_v6 = vsel %vm725_vm12, %v1363_v47, %v1309_v59  ;;  %v1336_v59 = vsel %vm686_vm8, %v1329_v57, %v1176_v62 }
 0x485   :  { %v1378_v20 = vmul.f32 %v1370_v6, %v5238_v41 }
 0x487   :  { %v1390_v30 = vpack.c.bf16 %v1378_v20, %v1376_v7 }
 0x488   :  { %v1232_v12 = vpop.permute.xlu0 %1231  ;;  %v1285_v32 = vpop.permute.xlu2 %1284 }
 0x489   :  { %v1204_v39 = vpop.permute.xlu1 %1203  ;;  %1492 = vmatmul.bf16.vlgmr.msrb.gmra.mxu1 %v1390_v30 }
 0x48a   :  { %v1343_v26 = vsel %vm694_vm9, %v1336_v59, %v1204_v39 }
 0x48b   :  { %v1350_v60 = vsel %vm376_vm3, %v1343_v26, %v1232_v12 }
 0x48c   :  { %v1357_v6 = vsel %vm709_vm10, %v1350_v60, %v1260_v31  ;;  %v5240_v31 = vunpack.c.l.bf16 %v3976_v9 }
 0x490   :  { %v1178_v2 = vpop.permute.xlu0 %1177  ;;  %v1152_v15 = vpop.permute.xlu2 %1151 }
 0x491   :  { %v1150_v4 = vpop.permute.xlu1 %1149 }
 0x492   :  { %v1330_v56 = vsel %vm18_vm6, %v1081_v58, %v1150_v4  ;;  %v5239_v4 = vunpack.c.l.bf16 %v3970_v8 }
 0x493   :  { %v1337_v52 = vsel %vm686_vm8, %v1330_v56, %v1178_v2  ;;  %v1082_v56 = vld [vmem:[#allocation2 + $0x22] sm:$0xff] }
 0x494   :  { %v1344_v47 = vsel %vm694_vm9, %v1337_v52, %v1206_v10  ;;  %v1083_v52 = vld [vmem:[#allocation2 + $0x2a] sm:$0xff] }
 0x498   :  { %v1311_v24 = vpop.permute.xlu0 %1310  ;;  %v1236_v12 = vpop.permute.xlu2 %1235 }
 0x499   :  { %v1234_v23 = vpop.permute.xlu1 %1233 }
 0x49a   :  { %v1351_v18 = vsel %vm376_vm3, %v1344_v47, %v1234_v23 }
 0x4a0   :  { %v1262_v40 = vpop.permute.xlu0 %1261  ;;  %v1182_v58 = vpop.permute.xlu2 %1181 }
 0x4a1   :  { %v1283_v1 = vpop.permute.xlu1 %1282  ;;  %v1358_v7 = vsel %vm709_vm10, %v1351_v18, %v1262_v40 }
 0x4a2   :  { %v1364_v62 = vsel %vm717_vm11, %v1357_v6, %v1283_v1  ;;  %v1365_v30 = vsel %vm717_vm11, %v1358_v7, %v1285_v32  ;;  %v1331_v32 = vsel %vm18_vm6, %v1082_v56, %v1152_v15 }
 0x4a3   :  { %v1371_v41 = vsel %vm725_vm12, %v1364_v62, %v1311_v24 }
 0x4a4   :  { %v1380_v49 = vmul.f32 %v1371_v41, %v5240_v31 }
 0x4a8   :  { %v1208_v20 = vpop.permute.xlu0 %1207  ;;  %v1266_v60 = vpop.permute.xlu2 %1265 }
 0x4a9   :  { %v1313_v39 = vpop.permute.xlu1 %1312 }
 0x4aa   :  { %v1372_v2 = vsel %vm725_vm12, %v1365_v30, %v1313_v39 }
 0x4ab   :  { %v1382_v10 = vmul.f32 %v1372_v2, %v5239_v4 }
 0x4ad   :  { %v1392_v23 = vpack.c.bf16 %v1382_v10, %v1380_v49 }
 0x4af   :  { %1497 = vmatmul.bf16.gmra.mxu1 %v1392_v23  ;;  %v5242_v23 = vunpack.c.l.bf16 %v3993_v43 }
 0x4b0   :  { %v1154_v57 = vpop.permute.xlu0 %1153  ;;  %v1315_v30 = vpop.permute.xlu2 %1314 }
 0x4b1   :  { %v1180_v59 = vpop.permute.xlu1 %1179  ;;  %v1332_v8 = vsel %vm18_vm6, %v1083_v52, %v1154_v57 }
 0x4b2   :  { %v1338_v40 = vsel %vm686_vm8, %v1331_v32, %v1180_v59  ;;  %v1339_v6 = vsel %vm686_vm8, %v1332_v8, %v1182_v58 }
 0x4b3   :  { %v1345_v1 = vsel %vm694_vm9, %v1338_v40, %v1208_v20 }
 0x4b4   :  { %v1352_v18 = vsel %vm376_vm3, %v1345_v1, %v1236_v12  ;;  %v5241_v12 = vunpack.c.l.bf16 %v3999_v44 }
 0x4b8   :  { %v1238_v26 = vpop.permute.xlu0 %1237 }
 0x4b9   :  { %v1210_v24 = vpop.permute.xlu1 %1209 }
 0x4ba   :  { %v1346_v62 = vsel %vm694_vm9, %v1339_v6, %v1210_v24  ;;  %v1084_v24 = vld [vmem:[#allocation2 + $0x32] sm:$0x3] }
 0x4bb   :  { %v1353_v15 = vsel %vm376_vm3, %v1346_v62, %v1238_v26  ;;  %v1184_v26 = vpop.permute.xlu2 %1183 }
 0x4bc   :  { %v1360_v2 = vsel %vm709_vm10, %v1353_v15, %v1266_v60  ;;  %v3625_v15 = vld [vmem:[%s5203_s1 + $0xe8] sm:$0xff] }
 0x4bd   :  { %1580 = vmatpush.bf16.msrb.mxu3 %v3625_v15 }
 0x4c0   :  { %v1287_v9 = vpop.permute.xlu0 %1286 }
 0x4c1   :  { %v1264_v47 = vpop.permute.xlu1 %1263 }
 0x4c2   :  { %v1359_v7 = vsel %vm709_vm10, %v1352_v18, %v1264_v47  ;;  %v5243_v18 = vunpack.c.l.bf16 %v4142_v17 }
 0x4c3   :  { %v1366_v41 = vsel %vm717_vm11, %v1359_v7, %v1287_v9  ;;  %v1268_v44 = vpop.permute.xlu2 %1267 }
 0x4c4   :  { %v1373_v20 = vsel %vm725_vm12, %v1366_v41, %v1315_v30  ;;  %v1521_v41 = vpop.f32.mrf.mxu0 }
 0x4c5   :  { %v1384_v49 = vmul.f32 %v1373_v20, %v5241_v12 }
 0x4c8   :  { %v1317_v39 = vpop.permute.xlu0 %1316 }
 0x4c9   :  { %v1289_v4 = vpop.permute.xlu1 %1288 }
 0x4ca   :  { %v1367_v10 = vsel %vm717_vm11, %v1360_v2, %v1289_v4 }
 0x4cb   :  { %v1374_v31 = vsel %vm725_vm12, %v1367_v10, %v1317_v39  ;;  %v3698_v39 = vld [vmem:[%s5204_s3 + $0x5] ss:$0 sm:$0xff] }
 0x4cc   :  { %v1386_v57 = vmul.f32 %v1374_v31, %v5242_v23  ;;  %v1523_v31 = vpop.f32.mrf.mxu0 }
 0x4ce   :  { %v1394_v59 = vpack.c.bf16 %v1386_v57, %v1384_v49  ;;  %v1526_v57 = vpop.f32.mrf.mxu2 }
 0x4d0   :  { %1502 = vmatmul.bf16.gmra.mxu1 %v1394_v59  ;;  %v1212_v32 = vpop.permute.xlu0 %1211 }
 0x4d1   :  { %v1156_v58 = vpop.permute.xlu1 %1155 }
 0x4d2   :  { %v1333_v56 = vsel %vm18_vm6, %v1084_v24, %v1156_v58 }
 0x4d3   :  { %v1340_v40 = vsel %vm686_vm8, %v1333_v56, %v1184_v26 }
 0x4d4   :  { %v1347_v52 = vsel %vm694_vm9, %v1340_v40, %v1212_v32 }
 0x4d6   :  { %v1528_v32 = vpop.f32.mrf.mxu2 }
 0x4d8   :  { %v1291_v1 = vpop.permute.xlu0 %1290 }
 0x4d9   :  { %v1240_v60 = vpop.permute.xlu1 %1239 }
 0x4da   :  { %v1354_v8 = vsel %vm376_vm3, %v1347_v52, %v1240_v60 }
 0x4db   :  { %v1361_v43 = vsel %vm709_vm10, %v1354_v8, %v1268_v44  ;;  %v1536_v44 = vpop.f32.mrf.mxu3 }
 0x4dc   :  { %v1368_v9 = vsel %vm717_vm11, %v1361_v43, %v1291_v1 }
 0x4de   :  { %v1531_v43 = vpop.f32.mrf.mxu2 }
 0x4e1   :  { %v1319_v47 = vpop.permute.xlu1 %1318 }
 0x4e2   :  { %v1375_v6 = vsel %vm725_vm12, %v1368_v9, %v1319_v47 }
 0x4e3   :  { %v1388_v62 = vmul.f32 %v1375_v6, %v5243_v18  ;;  %v1538_v1 = vpop.f32.mrf.mxu3 }
 0x4e5   :  { %v1396_v7 = vpack.c.bf16 %v1388_v62, %v1388_v62 }
 0x4e7   :  { %1507 = vmatmul.bf16.gmra.mxu1 %v1396_v7  ;;  %v1533_v7 = vpop.f32.mrf.mxu2 }
 0x506   :  { %v1493_v30 = vpop.f32.mrf.mxu1 }
 0x507   :  { %v1494_v2 = vadd.f32 %v3698_v39, %v1493_v30 }
 0x509   :  { %v1522_v20 = vadd.f32 %v1521_v41, %v1494_v2 }
 0x50b   :  { %v1540_v12 = vmax.f32 %v1522_v20, 0.0 }
 0x50e   :  { %v1495_v4 = vpop.f32.mrf.mxu1 }
 0x50f   :  { %v1496_v10 = vadd.f32 %v3698_v39, %v1495_v4 }
 0x511   :  { %v1524_v17 = vadd.f32 %v1523_v31, %v1496_v10 }
 0x513   :  { %v1541_v49 = vmax.f32 %v1524_v17, 0.0 }
 0x515   :  { %v1547_v23 = vpack.c.bf16 %v1541_v49, %v1540_v12 }
 0x517   :  { %3380 = vmatmul.msk.bf16.vlgmr.msrb.gmra.mxu3 %vm18_vm6, %v1547_v23 }
 0x52c   :  { %v1498_v59 = vpop.f32.mrf.mxu1 }
 0x52d   :  { %v1499_v58 = vadd.f32 %v3698_v39, %v1498_v59 }
 0x52f   :  { %v1527_v24 = vadd.f32 %v1526_v57, %v1499_v58 }
 0x531   :  { %v1542_v60 = vmax.f32 %v1527_v24, 0.0  ;;  %v3699_v24 = vld [vmem:[%s5204_s3 + $0x6] ss:$0 sm:$0xff] }
 0x534   :  { %v1500_v26 = vpop.f32.mrf.mxu1 }
 0x535   :  { %v1501_v56 = vadd.f32 %v3698_v39, %v1500_v26 }
 0x537   :  { %v1529_v40 = vadd.f32 %v1528_v32, %v1501_v56 }
 0x539   :  { %v1543_v52 = vmax.f32 %v1529_v40, 0.0 }
 0x53b   :  { %v1548_v8 = vpack.c.bf16 %v1543_v52, %v1542_v60 }
 0x53d   :  { %3381 = vmatmul.msk.bf16.gmra.mxu3 %vm18_vm6, %v1548_v8  ;;  %v5244_v8 = vmax.f32 %v4241_v50, 0.0 }
 0x54d   :  { %v1503_v9 = vpop.f32.mrf.mxu1 }
 0x54e   :  { %v1504_v47 = vadd.f32 %v3698_v39, %v1503_v9  ;;  %v5245_v9 = vmax.f32 %v4237_v54, 0.0 }
 0x550   :  { %v1532_v18 = vadd.f32 %v1531_v43, %v1504_v47 }
 0x552   :  { %v1544_v41 = vmax.f32 %v1532_v18, 0.0 }
 0x555   :  { %v1505_v6 = vpop.f32.mrf.mxu1 }
 0x556   :  { %v1506_v62 = vadd.f32 %v3698_v39, %v1505_v6 }
 0x558   :  { %v1534_v15 = vadd.f32 %v1533_v7, %v1506_v62  ;;  %v5246_v62 = vmax.f32 %v4222_v21, 0.0 }
 0x55a   :  { %v1545_v30 = vmax.f32 %v1534_v15, 0.0 }
 0x55c   :  { %v1549_v2 = vpack.c.bf16 %v1545_v30, %v1544_v41 }
 0x55e   :  { %3382 = vmatmul.msk.bf16.gmra.mxu3 %vm18_vm6, %v1549_v2 }
 0x564   :  { %v1508_v4 = vpop.f32.mrf.mxu1 }
 0x565   :  { %v1509_v20 = vadd.f32 %v3698_v39, %v1508_v4 }
 0x567   :  { %v1537_v10 = vadd.f32 %v1536_v44, %v1509_v20  ;;  %v5248_v20 = vmax.f32 %v4207_v13, 0.0 }
 0x569   :  { %v1546_v31 = vmax.f32 %v1537_v10, 0.0 }
 0x56b   :  { %v1550_v17 = vpack.c.bf16 %v1546_v31, %v1546_v31 }
 0x56c   :  { %v1510_v12 = vpop.f32.mrf.mxu1 }
 0x56e   :  { %3383 = vmatmul.msk.bf16.gmra.mxu3 %vm18_vm6, %v1550_v17  ;;  %v5249_v17 = vmax.f32 %v4203_v53, 0.0 }
 0x59a   :  { %v1582_v49 = vpop.f32.mrf.mxu3 }
 0x59b   :  { %v1583_v2 = vadd.f32 %v3699_v24, %v1582_v49 }
 0x59d   :  { %v1601_v12 = vadd.f32 %v1583_v2, %v5249_v17 }
 0x5a2   :  { %v1584_v23 = vpop.f32.mrf.mxu3 }
 0x5a3   :  { %v1585_v18 = vadd.f32 %v3699_v24, %v1584_v23 }
 0x5a5   :  { %v1602_v10 = vadd.f32 %v1585_v18, %v5248_v20 }
 0x5a7   :  { %v1609_v23 = vmax.f32 %v1602_v10, 0.0 }
 0x5c0   :  { %v1587_v57 = vpop.f32.mrf.mxu3 }
 0x5c1   :  { %v1588_v43 = vadd.f32 %v3699_v24, %v1587_v57 }
 0x5c8   :  { %v1589_v59 = vpop.f32.mrf.mxu3 }
 0x5c9   :  { %v1590_v52 = vadd.f32 %v3699_v24, %v1589_v59  ;;  %v1608_v59 = vmax.f32 %v1601_v12, 0.0 }
 0x5cb   :  { %v1604_v7 = vadd.f32 %v1590_v52, %v5246_v62  ;;  %v1615_v49 = vpack.c.bf16 %v1609_v23, %v1608_v59  ;;  %v3646_v52 = vld [vmem:[%s5203_s1 + $0x198] sm:$0xff] }
 0x5cc   :  { %v3627_v62 = vld [vmem:[%s5203_s1 + $0xf8] sm:$0xff] }
 0x5cd   :  { %v1611_v54 = vmax.f32 %v1604_v7, 0.0  ;;  %v3644_v7 = vld [vmem:[%s5203_s1 + $0x188] sm:$0xff] }
 0x5e1   :  { %v1592_v58 = vpop.f32.mrf.mxu3 }
 0x5e2   :  { %v1593_v39 = vadd.f32 %v3699_v24, %v1592_v58 }
 0x5e4   :  { %v1605_v47 = vadd.f32 %v1593_v39, %v5245_v9  ;;  %v3629_v39 = vld [vmem:[%s5203_s1 + $0x108] sm:$0xff] }
 0x5e6   :  { %v1612_v50 = vmax.f32 %v1605_v47, 0.0 }
 0x5e9   :  { %v1594_v26 = vpop.f32.mrf.mxu3 }
 0x5ea   :  { %v1595_v56 = vadd.f32 %v3699_v24, %v1594_v26  ;;  %v3633_v26 = vld [vmem:[%s5203_s1 + $0x128] sm:$0xff] }
 0x5eb   :  { %1746 = vmatpush.bf16.msra.mxu1 %v3633_v26 }
 0x5ec   :  { %v1606_v44 = vadd.f32 %v1595_v56, %v5244_v8 }
 0x5ee   :  { %v1613_v15 = vmax.f32 %v1606_v44, 0.0 }
 0x5f0   :  { %v1617_v31 = vpack.c.bf16 %v1613_v15, %v1612_v50  ;;  %v3643_v50 = vld [vmem:[%s5203_s1 + $0x180] sm:$0xff] }
 0x5f1   :  { %v1597_v32 = vpop.f32.mrf.mxu3 }
 0x5f2   :  { %v1598_v40 = vadd.f32 %v3699_v24, %v1597_v32  ;;  %v3648_v24 = vld [vmem:[%s5203_s1 + $0x1a8] sm:$0xff]  ;;  %v3630_v32 = vld [vmem:[%s5203_s1 + $0x110] sm:$0xff] }
 0x5f4   :  { %v1607_v60 = vadd.f32 %v1598_v40, %v4255_v16  ;;  %v5247_v16 = vmax.f32 %v4218_v11, 0.0  ;;  %v3647_v40 = vld [vmem:[%s5203_s1 + $0x1a0] sm:$0xff] }
 0x5f6   :  { %v1614_v1 = vmax.f32 %v1607_v60, 0.0  ;;  %v1603_v4 = vadd.f32 %v1588_v43, %v5247_v16  ;;  %v3628_v43 = vld [vmem:[%s5203_s1 + $0x100] sm:$0xff] }
 0x5f8   :  { %v1618_v6 = vpack.c.bf16 %v1614_v1, %v1614_v1  ;;  %v1610_v21 = vmax.f32 %v1603_v4, 0.0  ;;  %v3626_v4 = vld [vmem:[%s5203_s1 + $0xf0] sm:$0xff] }
 0x5f9   :  { %v1599_v41 = vpop.f32.mrf.mxu3 }
 0x5fa   :  { %v1620_v30 = vsel %vm310_vm4, %v1618_v6, 0  ;;  %v1616_v57 = vpack.c.bf16 %v1611_v54, %v1610_v21  ;;  %v3645_v6 = vld [vmem:[%s5203_s1 + $0x190] sm:$0xff] }
 0x5fb   :  { %1626 = vmatpush.bf16.msra.mxu0 %v1620_v30 }
 0x5ff   :  { %1627 = vmatpush.bf16.msra.mxu0 %v1617_v31 }
 0x603   :  { %1628 = vmatpush.bf16.msra.mxu0 %v1616_v57 }
 0x607   :  { %1629 = vmatpush.bf16.msra.mxu0 %v1615_v49 }
 0x60a   :  { %3384 = vmatmul.msk.bf16.vlgmr.msra.gmra.mxu0 %vm297_vm5, %v3843_v45  ;;  %v3650_v45 = vld [vmem:[%s5203_s1 + $0x1b8] sm:$0xff] }
 0x60b   :  { %2153 = vmatpush.bf16.msrb.mxu0 %v3650_v45  ;;  %v1796_v45 = vld [vmem:[#allocation3 + $0x21] sm:$0x1] }
 0x61a   :  { %3385 = vmatmul.msk.bf16.gmra.mxu0 %vm297_vm5, %v3853_v48  ;;  %v3632_v48 = vld [vmem:[%s5203_s1 + $0x120] sm:$0xff] }
 0x61b   :  { %1747 = vmatpush.bf16.msra.mxu1 %v3632_v48 }
 0x62a   :  { %3386 = vmatmul.msk.bf16.gmra.mxu0 %vm297_vm5, %v3863_v51  ;;  %v3649_v51 = vld [vmem:[%s5203_s1 + $0x1b0] sm:$0xff] }
 0x62b   :  { %2154 = vmatpush.bf16.msrb.mxu0 %v3649_v51 }
 0x62f   :  { %2155 = vmatpush.bf16.msrb.mxu0 %v3648_v24 }
 0x633   :  { %2156 = vmatpush.bf16.msrb.mxu0 %v3647_v40  ;;  %v3642_v40 = vld [vmem:[%s5203_s1 + $0x170] sm:$0xff] }
 0x634   :  { %2071 = vmatpush.bf16.msra.mxu3 %v3642_v40 }
 0x637   :  { %2157 = vmatpush.bf16.msrb.mxu0 %v3646_v52 }
 0x63a   :  { %3387 = vmatmul.msk.bf16.gmra.mxu0 %vm297_vm5, %v3881_v55  ;;  %v3631_v55 = vld [vmem:[%s5203_s1 + $0x118] sm:$0xff] }
 0x63b   :  { %1748 = vmatpush.bf16.msra.mxu1 %v3631_v55  ;;  %2158 = vmatpush.bf16.msrb.mxu0 %v3645_v6 }
 0x63f   :  { %1749 = vmatpush.bf16.msra.mxu1 %v3630_v32  ;;  %2159 = vmatpush.bf16.msrb.mxu0 %v3644_v7 }
 0x643   :  { %1750 = vmatpush.bf16.msra.mxu1 %v3629_v39  ;;  %2160 = vmatpush.bf16.msrb.mxu0 %v3643_v50 }
 0x647   :  { %1751 = vmatpush.bf16.msra.mxu1 %v3628_v43 }
 0x64b   :  { %1752 = vmatpush.bf16.msra.mxu1 %v3627_v62  ;;  %v4600_v62 = vld [vmem:[%s5206_s2 + $0x158] sm:$0xff] }
 0x64f   :  { %1753 = vmatpush.bf16.msra.mxu1 %v3626_v4 }
 0x687   :  { %v1631_v53 = vpop.f32.mrf.mxu0 }
 0x68f   :  { %v1633_v13 = vpop.f32.mrf.mxu0 }
 0x697   :  { %v1636_v11 = vpop.f32.mrf.mxu0 }
 0x69f   :  { %v1638_v58 = vpop.f32.mrf.mxu0 }
 0x6a0   :  { %v1655_v44 = vrot.slane %v1638_v58, 1 }
 0x6a7   :  { %v1641_v56 = vpop.f32.mrf.mxu0 }
 0x6a8   :  { %v1656_v60 = vrot.slane %v1641_v56, 1 }
 0x6aa   :  { %v1657_v9 = vsel %vm1654_vm13, %v1655_v44, %v1656_v60 }
 0x6af   :  { %v1643_v8 = vpop.f32.mrf.mxu0 }
 0x6b0   :  { %v1658_v1 = vrot.slane %v1643_v8, 1 }
 0x6b2   :  { %v1659_v47 = vsel %vm1654_vm13, %v1656_v60, %v1658_v1 }
 0x6b3   :  { %v3682_v18 = vpack.i.bf16 %v1659_v47, %v1657_v9 }
 0x6b5   :  { %3683 = vrot.lane.b32.xlu2 %v3682_v18, %s3726_s29  ;;  %v4595_v18 = vld [vmem:[%s5206_s2 + $0x150] sm:$0xff] }
 0x6b7   :  { %v1646_v15 = vpop.f32.mrf.mxu0 }
 0x6b8   :  { %v1660_v41 = vrot.slane %v1646_v15, 1 }
 0x6ba   :  { %v1661_v30 = vsel %vm1654_vm13, %v1658_v1, %v1660_v41 }
 0x6bb   :  { %v3687_v2 = vpack.i.bf16 %v1660_v41, %v1661_v30  ;;  %v1946_v41 = vunpack.c.h.bf16 %v4595_v18  ;;  %v1948_v30 = vunpack.c.h.bf16 %v4600_v62 }
 0x6bd   :  { %3688 = vrot.lane.b32.xlu0 %v3687_v2, %s3726_s29 }
 0x6bf   :  { %v1648_v16 = vpop.f32.mrf.mxu0 }
 0x6c5   :  { %1881 = vrot.lane.b32.xlu0 %v1796_v45, %s3730_s7  ;;  %v1806_v45 = vld [vmem:[#allocation3 + $0x26] sm:$0x1] }
 0x70f   :  { %v3684_v20 = vpop.permute.xlu2 %3683 }
 0x710   :  { %v3686_v10 = vunpack.i.h.bf16 %v3684_v20  ;;  %v3685_v54 = vunpack.i.l.bf16 %v3684_v20 }
 0x712   :  { %v1675_v31 = vsel %vm376_vm3, %v1633_v13, %v3686_v10  ;;  %v1674_v17 = vsel %vm376_vm3, %v1631_v53, %v3685_v54  ;;  %v3700_v53 = vld [vmem:[%s5204_s3 + $0x7] ss:$0 sm:$0xff] }
 0x713   :  { %v1678_v12 = vpack.c.bf16 %v1675_v31, %v1674_v17 }
 0x715   :  { %1754 = vmatmul.bf16.vlgmr.msra.gmra.mxu1 %v1678_v12  ;;  %2161 = vmatmul.bf16.vlgmr.msrb.gmra.mxu0 %v1678_v12 }
 0x72f   :  { %v3689_v21 = vpop.permute.xlu0 %3688 }
 0x730   :  { %v3691_v23 = vunpack.i.h.bf16 %v3689_v21  ;;  %v3690_v57 = vunpack.i.l.bf16 %v3689_v21 }
 0x732   :  { %v1676_v59 = vsel %vm376_vm3, %v1636_v11, %v3690_v57  ;;  %v1677_v49 = vsel %vm376_vm3, %v1638_v58, %v3691_v23  ;;  %v4618_v23 = vld [vmem:[%s5206_s2 + $0x160] sm:$0xff]  ;;  %v4623_v57 = vld [vmem:[%s5206_s2 + $0x168] sm:$0x11] }
 0x733   :  { %v1679_v26 = vpack.c.bf16 %v1677_v49, %v1676_v59  ;;  %v1950_v59 = vunpack.c.h.bf16 %v4618_v23  ;;  %v1952_v49 = vunpack.c.h.bf16 %v4623_v57 }
 0x735   :  { %1759 = vmatmul.bf16.gmra.mxu1 %v1679_v26  ;;  %2166 = vmatmul.bf16.gmra.mxu0 %v1679_v26 }
 0x792   :  { %v1755_v13 = vpop.f32.mrf.mxu1 }
 0x793   :  { %v1756_v48 = vadd.f32 %v3700_v53, %v1755_v13 }
 0x795   :  { %v1765_v51 = vmax.f32 %v1756_v48, 0.0 }
 0x797   :  { %1769 = vst.msk [vmem:[#allocation3 + $0x8] sm:$0xff] %vm18_vm6, %v1765_v51  ;;  %v1960_v51 = vmul.f32 %v1952_v49, %v1806_v45 }
 0x79a   :  { %v1757_v55 = vpop.f32.mrf.mxu1 }
 0x79b   :  { %v1758_v11 = vadd.f32 %v3700_v53, %v1757_v55 }
 0x79d   :  { %v1766_v24 = vmax.f32 %v1758_v11, 0.0 }
 0x79e   :  { %v1785_v58 = vld [vmem:[#allocation3 + $0x7] sm:$0xff] }
 0x79f   :  { %v1777_v56 = vld [vmem:[#allocation3 + $0x3] sm:$0xff]  ;;  %1770 = vst.msk [vmem:[#allocation3 + $0x10] sm:$0xff] %vm18_vm6, %v1766_v24  ;;  %1843 = vrot.lane.b32.xlu2 %v1785_v58, %s3727_s30 }
 0x7a0   :  { %v1781_v32 = vld [vmem:[#allocation3 + $0x4] sm:$0xff]  ;;  %1811 = vrot.lane.b32.xlu1 %v1777_v56, %s3729_s6 }
 0x7a1   :  { %1827 = vrot.lane.b32.xlu0 %v1781_v32, %s3728_s5  ;;  %v1789_v60 = vld [vmem:[#allocation3 + $0x8] sm:$0xff]  ;;  %v1798_v32 = vld [vmem:[#allocation3 + $0x24] sm:$0x1] }
 0x7a6   :  { %v1778_v39 = vld [vmem:[#allocation3 + $0xb] sm:$0xff] }
 0x7a7   :  { %v1786_v52 = vld [vmem:[#allocation3 + $0xf] sm:$0xff]  ;;  %1813 = vrot.lane.b32.xlu2 %v1778_v39, %s3729_s6 }
 0x7a8   :  { %1859 = vrot.lane.b32.xlu1 %v1789_v60, %s3726_s29  ;;  %v1790_v8 = vld [vmem:[#allocation3 + $0x10] sm:$0xff]  ;;  %v1802_v60 = vld [vmem:[#allocation3 + $0x25] sm:$0x1] }
 0x7a9   :  { %1845 = vrot.lane.b32.xlu0 %v1786_v52, %s3727_s30  ;;  %v1782_v44 = vld [vmem:[#allocation3 + $0xc] sm:$0xff]  ;;  %v3641_v52 = vld [vmem:[%s5203_s1 + $0x168] sm:$0xff] }
 0x7aa   :  { %v1793_v1 = vld [vmem:[#allocation3 + $0x9] sm:$0xff]  ;;  %2045 = vmatpush.bf16.msrb.mxu2 %v3641_v52 }
 0x7ab   :  { %v1799_v6 = vld [vmem:[#allocation3 + $0xd] sm:$0xff] }
 0x7ac   :  { %v1803_v16 = vld [vmem:[#allocation3 + $0xe] sm:$0xff] }
 0x7ad   :  { %v1954_v54 = vmul.f32 %v1946_v41, %v1803_v16 }
 0x7af   :  { %1861 = vrot.lane.b32.xlu2 %v1790_v8, %s3726_s29  ;;  %v3640_v8 = vld [vmem:[%s5203_s1 + $0x160] sm:$0xff] }
 0x7b0   :  { %1829 = vrot.lane.b32.xlu1 %v1782_v44, %s3728_s5  ;;  %2046 = vmatpush.bf16.msrb.mxu2 %v3640_v8 }
 0x7b1   :  { %1875 = vrot.lane.b32.xlu0 %v1793_v1, %s3730_s7  ;;  %v3638_v1 = vld [vmem:[%s5203_s1 + $0x150] sm:$0xff] }
 0x7b2   :  { %v1760_v43 = vpop.f32.mrf.mxu1 }
 0x7b3   :  { %v1761_v9 = vadd.f32 %v3700_v53, %v1760_v43 }
 0x7b5   :  { %v1767_v47 = vmax.f32 %v1761_v9, 0.0  ;;  %v3637_v9 = vld [vmem:[%s5203_s1 + $0x148] sm:$0xff] }
 0x7b7   :  { %1771 = vst.msk [vmem:[#allocation3 + $0x18] sm:$0xff] %vm18_vm6, %v1767_v47  ;;  %1889 = vrot.lane.b32.xlu2 %v1782_v44, %s3732_s9  ;;  %v3639_v44 = vld [vmem:[%s5203_s1 + $0x158] sm:$0xff]  ;;  %v4658_v47 = vpop.permute.xlu0 %1881 }
 0x7b8   :  { %1905 = vrot.lane.b32.xlu1 %v1799_v6, %s3731_s8  ;;  %2047 = vmatpush.bf16.msrb.mxu2 %v3639_v44  ;;  %v3636_v6 = vld [vmem:[%s5203_s1 + $0x140] sm:$0xff] }
 0x7ba   :  { %v1762_v7 = vpop.f32.mrf.mxu1 }
 0x7bb   :  { %v1763_v15 = vadd.f32 %v3700_v53, %v1762_v7 }
 0x7bc   :  { %2048 = vmatpush.bf16.msrb.mxu2 %v3638_v1 }
 0x7bd   :  { %v1768_v2 = vmax.f32 %v1763_v15, 0.0 }
 0x7be   :  { %v1800_v4 = vld [vmem:[#allocation3 + $0x15] sm:$0xff]  ;;  %v1788_v53 = vld [vmem:[#allocation3 + $0x1f] sm:$0x1] }
 0x7bf   :  { %v1794_v50 = vld [vmem:[#allocation3 + $0x11] sm:$0xff]  ;;  %1772 = vst.msk [vmem:[#allocation3 + $0x20] sm:$0x1] %vm34_vm14, %v1768_v2  ;;  %1907 = vrot.lane.b32.xlu2 %v1800_v4, %s3731_s8  ;;  %v1780_v12 = vld [vmem:[#allocation3 + $0x1b] sm:$0x1]  ;;  %v3634_v4 = vld [vmem:[%s5203_s1 + $0x130] sm:$0xff] }
 0x7c0   :  { %v1783_v20 = vld [vmem:[#allocation3 + $0x14] sm:$0xff]  ;;  %1877 = vrot.lane.b32.xlu1 %v1794_v50, %s3730_s7  ;;  %v1784_v55 = vld [vmem:[#allocation3 + $0x1c] sm:$0x1]  ;;  %2049 = vmatpush.bf16.msrb.mxu2 %v3637_v9 }
 0x7c1   :  { %v1804_v10 = vld [vmem:[#allocation3 + $0x16] sm:$0xff]  ;;  %1891 = vrot.lane.b32.xlu0 %v1783_v20, %s3732_s9 }
 0x7c2   :  { %v1956_v31 = vmul.f32 %v1948_v30, %v1804_v10  ;;  %v1779_v21 = vld [vmem:[#allocation3 + $0x13] sm:$0xff] }
 0x7c3   :  { %v1787_v13 = vld [vmem:[#allocation3 + $0x17] sm:$0xff] }
 0x7c4   :  { %v1962_v17 = vpack.c.bf16 %v1956_v31, %v1954_v54  ;;  %v1791_v56 = vld [vmem:[#allocation3 + $0x18] sm:$0xff]  ;;  %2050 = vmatpush.bf16.msrb.mxu2 %v3636_v6  ;;  %v3635_v2 = vld [vmem:[%s5203_s1 + $0x138] sm:$0xff]  ;;  %v1773_v31 = vld [vmem:[#allocation3 + $0x2] sm:$0xff] }
 0x7c6   :  { %3456 = vmatmul.msk.bf16.vlgmr.msra.gmra.mxu3 %vm18_vm6, %v1962_v17  ;;  %v1805_v26 = vld [vmem:[#allocation3 + $0x1e] sm:$0xff] }
 0x7c7   :  { %1831 = vrot.lane.b32.xlu2 %v1783_v20, %s3728_s5  ;;  %v1958_v48 = vmul.f32 %v1950_v59, %v1805_v26  ;;  %v1795_v24 = vld [vmem:[#allocation3 + $0x19] sm:$0xff] }
 0x7c8   :  { %1817 = vrot.lane.b32.xlu1 %v1780_v12, %s3729_s6  ;;  %v1792_v58 = vld [vmem:[#allocation3 + $0x20] sm:$0x1]  ;;  %2051 = vmatpush.bf16.msrb.mxu2 %v3635_v2 }
 0x7c9   :  { %1815 = vrot.lane.b32.xlu0 %v1779_v21, %s3729_s6  ;;  %v1964_v11 = vpack.c.bf16 %v1960_v51, %v1958_v48  ;;  %v1797_v40 = vld [vmem:[#allocation3 + $0x1c] sm:$0xff]  ;;  %v1774_v21 = vld [vmem:[#allocation3 + $0xa] sm:$0xff] }
 0x7ca   :  { %v1801_v39 = vld [vmem:[#allocation3 + $0x1d] sm:$0xff] }
 0x7cc   :  { %2052 = vmatpush.bf16.msrb.mxu2 %v3634_v4  ;;  %v3651_v4 = vld [vmem:[%s5203_s1 + $0x178] sm:$0xff] }
 0x7cd   :  { %2197 = vmatpush.bf16.msrb.mxu1 %v3651_v4  ;;  %v3702_v4 = vld [vmem:[%s5204_s3 + $0x8] ss:$0 sm:$0xff] }
 0x7cf   :  { %1849 = vrot.lane.b32.xlu2 %v1788_v53, %s3727_s30 }
 0x7d0   :  { %1847 = vrot.lane.b32.xlu1 %v1787_v13, %s3727_s30 }
 0x7d1   :  { %1833 = vrot.lane.b32.xlu0 %v1784_v55, %s3728_s5 }
 0x7d6   :  { %3457 = vmatmul.msk.bf16.gmra.mxu3 %vm18_vm6, %v1964_v11 }
 0x7d7   :  { %1879 = vrot.lane.b32.xlu2 %v1795_v24, %s3730_s7 }
 0x7d8   :  { %1865 = vrot.lane.b32.xlu1 %v1792_v58, %s3726_s29 }
 0x7d9   :  { %1863 = vrot.lane.b32.xlu0 %v1791_v56, %s3726_s29  ;;  %v1945_v56 = vunpack.c.l.bf16 %v4595_v18 }
 0x7df   :  { %1895 = vrot.lane.b32.xlu2 %v1798_v32, %s3732_s9 }
 0x7e0   :  { %1893 = vrot.lane.b32.xlu1 %v1797_v40, %s3732_s9 }
 0x7e1   :  { %1909 = vrot.lane.b32.xlu0 %v1801_v39, %s3731_s8 }
 0x7e8   :  { %1911 = vrot.lane.b32.xlu1 %v1802_v60, %s3731_s8  ;;  %v1947_v60 = vunpack.c.l.bf16 %v4600_v62 }
 0x7f9   :  { %v1844_v43 = vpop.permute.xlu2 %1843 }
 0x801   :  { %v1814_v15 = vpop.permute.xlu2 %1813 }
 0x802   :  { %v1918_v53 = vsel %vm18_vm6, %v1774_v21, %v1814_v15  ;;  %v1776_v21 = vld [vmem:[#allocation3 + $0x1a] sm:$0x1] }
 0x809   :  { %v1862_v20 = vpop.permute.xlu2 %1861 }
 0x811   :  { %v1890_v17 = vpop.permute.xlu2 %1889 }
 0x812   :  { %v1812_v7 = vpop.permute.xlu1 %1811 }
 0x813   :  { %v1828_v16 = vpop.permute.xlu0 %1827  ;;  %v1917_v12 = vsel %vm18_vm6, %v1773_v31, %v1812_v7  ;;  %v1775_v31 = vld [vmem:[#allocation3 + $0x12] sm:$0xff] }
 0x814   :  { %v1921_v26 = vsel %vm686_vm8, %v1917_v12, %v1828_v16 }
 0x815   :  { %v1925_v51 = vsel %vm694_vm9, %v1921_v26, %v1844_v43 }
 0x819   :  { %v1908_v58 = vpop.permute.xlu2 %1907 }
 0x81a   :  { %v1860_v50 = vpop.permute.xlu1 %1859 }
 0x81b   :  { %v1846_v10 = vpop.permute.xlu0 %1845  ;;  %v1929_v55 = vsel %vm376_vm3, %v1925_v51, %v1860_v50 }
 0x821   :  { %v1832_v2 = vpop.permute.xlu2 %1831 }
 0x822   :  { %v1830_v54 = vpop.permute.xlu1 %1829 }
 0x823   :  { %v1876_v13 = vpop.permute.xlu0 %1875  ;;  %v1922_v48 = vsel %vm686_vm8, %v1918_v53, %v1830_v54 }
 0x824   :  { %v1926_v11 = vsel %vm694_vm9, %v1922_v48, %v1846_v10  ;;  %v1933_v24 = vsel %vm709_vm10, %v1929_v55, %v1876_v13 }
 0x825   :  { %v1937_v32 = vsel %vm717_vm11, %v1933_v24, %v1890_v17  ;;  %v1930_v40 = vsel %vm376_vm3, %v1926_v11, %v1862_v20 }
 0x829   :  { %v1850_v10 = vpop.permute.xlu2 %1849 }
 0x82a   :  { %v1906_v45 = vpop.permute.xlu1 %1905 }
 0x82b   :  { %v1941_v52 = vsel %vm725_vm12, %v1937_v32, %v1906_v45 }
 0x82c   :  { %v1953_v9 = vmul.f32 %v1945_v56, %v1941_v52 }
 0x831   :  { %v1880_v26 = vpop.permute.xlu2 %1879 }
 0x832   :  { %v1878_v39 = vpop.permute.xlu1 %1877 }
 0x833   :  { %v1934_v8 = vsel %vm709_vm10, %v1930_v40, %v1878_v39  ;;  %v1892_v44 = vpop.permute.xlu0 %1891 }
 0x834   :  { %v1938_v1 = vsel %vm717_vm11, %v1934_v8, %v1892_v44  ;;  %v1949_v8 = vunpack.c.l.bf16 %v4618_v23  ;;  %v1951_v44 = vunpack.c.l.bf16 %v4623_v57  ;;  %v3705_v23 = vld [vmem:[%s5204_s3 + $0xc] ss:$0 sm:$0xff] }
 0x835   :  { %v1942_v43 = vsel %vm725_vm12, %v1938_v1, %v1908_v58 }
 0x836   :  { %v1955_v6 = vmul.f32 %v1947_v60, %v1942_v43 }
 0x838   :  { %v1961_v7 = vpack.c.bf16 %v1955_v6, %v1953_v9 }
 0x839   :  { %v1896_v39 = vpop.permute.xlu2 %1895 }
 0x83a   :  { %2053 = vmatmul.bf16.vlgmr.msrb.gmra.mxu2 %v1961_v7  ;;  %v1818_v15 = vpop.permute.xlu1 %1817 }
 0x83b   :  { %v1816_v16 = vpop.permute.xlu0 %1815  ;;  %v1920_v45 = vsel %vm18_vm6, %v1776_v21, %v1818_v15 }
 0x83c   :  { %v1919_v12 = vsel %vm18_vm6, %v1775_v31, %v1816_v16 }
 0x83d   :  { %v1923_v53 = vsel %vm686_vm8, %v1919_v12, %v1832_v2 }
 0x842   :  { %v1848_v50 = vpop.permute.xlu1 %1847 }
 0x843   :  { %v1834_v20 = vpop.permute.xlu0 %1833  ;;  %v1927_v48 = vsel %vm694_vm9, %v1923_v53, %v1848_v50 }
 0x844   :  { %v1924_v13 = vsel %vm686_vm8, %v1920_v45, %v1834_v20  ;;  %v3655_v45 = vld [vmem:[%s5203_s1 + $0x1d8] sm:$0xff] }
 0x845   :  { %v1928_v11 = vsel %vm694_vm9, %v1924_v13, %v1850_v10  ;;  %2263 = vmatpush.bf16.msra.mxu2 %v3655_v45 }
 0x84a   :  { %v1866_v54 = vpop.permute.xlu1 %1865 }
 0x84b   :  { %v1864_v17 = vpop.permute.xlu0 %1863  ;;  %v1932_v24 = vsel %vm376_vm3, %v1928_v11, %v1866_v54 }
 0x84c   :  { %v1931_v51 = vsel %vm376_vm3, %v1927_v48, %v1864_v17  ;;  %v1936_v52 = vsel %vm709_vm10, %v1932_v24, %v4658_v47  ;;  %v2073_v47 = vpop.f32.mrf.mxu3 }
 0x84d   :  { %v1935_v58 = vsel %vm709_vm10, %v1931_v51, %v1880_v26  ;;  %v1940_v43 = vsel %vm717_vm11, %v1936_v52, %v1896_v39  ;;  %v3654_v52 = vld [vmem:[%s5203_s1 + $0x1d0] sm:$0xff] }
 0x84e   :  { %2264 = vmatpush.bf16.msra.mxu2 %v3654_v52  ;;  %v3704_v52 = vld [vmem:[%s5204_s3 + $0xb] ss:$0 sm:$0xff] }
 0x852   :  { %v1894_v55 = vpop.permute.xlu1 %1893 }
 0x853   :  { %v1939_v32 = vsel %vm717_vm11, %v1935_v58, %v1894_v55  ;;  %v1910_v40 = vpop.permute.xlu0 %1909 }
 0x854   :  { %v1943_v1 = vsel %vm725_vm12, %v1939_v32, %v1910_v40  ;;  %v2075_v31 = vpop.f32.mrf.mxu3 }
 0x855   :  { %v1957_v7 = vmul.f32 %v1949_v8, %v1943_v1  ;;  %v3653_v1 = vld [vmem:[%s5203_s1 + $0x1c8] sm:$0xff] }
 0x856   :  { %2265 = vmatpush.bf16.msra.mxu2 %v3653_v1 }
 0x85a   :  { %v1912_v9 = vpop.permute.xlu1 %1911 }
 0x85b   :  { %v1944_v6 = vsel %vm725_vm12, %v1940_v43, %v1912_v9  ;;  %v3652_v43 = vld [vmem:[%s5203_s1 + $0x1c0] sm:$0xff]  ;;  %v2162_v9 = vpop.f32.mrf.mxu0 }
 0x85c   :  { %v1959_v15 = vmul.f32 %v1951_v44, %v1944_v6  ;;  %v2078_v53 = vpop.f32.mrf.mxu3  ;;  %2266 = vmatpush.bf16.msra.mxu2 %v3652_v43 }
 0x85e   :  { %v1963_v2 = vpack.c.bf16 %v1959_v15, %v1957_v7  ;;  %v3703_v7 = vld [vmem:[%s5204_s3 + $0x9] ss:$0 sm:$0xff]  ;;  %v3701_v15 = vld [vmem:[%s5204_s3 + $0xa] ss:$0 sm:$0xff] }
 0x860   :  { %2058 = vmatmul.bf16.gmra.mxu2 %v1963_v2 }
 0x864   :  { %v2080_v24 = vpop.f32.mrf.mxu3 }
 0x8bd   :  { %v2054_v16 = vpop.f32.mrf.mxu2 }
 0x8be   :  { %v2055_v50 = vadd.f32 %v3702_v4, %v2054_v16  ;;  %v2163_v16 = vadd.f32 %v3701_v15, %v2162_v9 }
 0x8c0   :  { %v2074_v10 = vadd.f32 %v2073_v47, %v2055_v50  ;;  %v2164_v47 = vpop.f32.mrf.mxu0 }
 0x8c1   :  { %v2165_v50 = vadd.f32 %v3701_v15, %v2164_v47 }
 0x8c2   :  { %v2083_v12 = vmax.f32 %v2074_v10, 0.0 }
 0x8c5   :  { %v2056_v20 = vpop.f32.mrf.mxu2 }
 0x8c6   :  { %v2057_v54 = vadd.f32 %v3702_v4, %v2056_v20 }
 0x8c8   :  { %v2076_v17 = vadd.f32 %v2075_v31, %v2057_v54 }
 0x8ca   :  { %v2084_v21 = vmax.f32 %v2076_v17, 0.0 }
 0x8cc   :  { %v2172_v26 = vpack.c.bf16 %v2084_v21, %v2083_v12  ;;  %v2167_v21 = vpop.f32.mrf.mxu0 }
 0x8ce   :  { %3494 = vmatmul.msk.bf16.vlgmr.msrb.gmra.mxu1 %vm18_vm6, %v2172_v26 }
 0x8e3   :  { %v2059_v13 = vpop.f32.mrf.mxu2 }
 0x8e4   :  { %v2060_v48 = vadd.f32 %v3702_v4, %v2059_v13  ;;  %v2168_v13 = vadd.f32 %v3701_v15, %v2167_v21 }
 0x8e6   :  { %v2079_v55 = vadd.f32 %v2078_v53, %v2060_v48  ;;  %v2169_v53 = vpop.f32.mrf.mxu0 }
 0x8e8   :  { %v2085_v32 = vmax.f32 %v2079_v55, 0.0 }
 0x8eb   :  { %v2061_v51 = vpop.f32.mrf.mxu2 }
 0x8ec   :  { %v2062_v11 = vadd.f32 %v3702_v4, %v2061_v51  ;;  %v2170_v51 = vadd.f32 %v3701_v15, %v2169_v53 }
 0x8ee   :  { %v2081_v58 = vadd.f32 %v2080_v24, %v2062_v11 }
 0x8f0   :  { %v2086_v40 = vmax.f32 %v2081_v58, 0.0 }
 0x8f2   :  { %v2173_v39 = vpack.c.bf16 %v2086_v40, %v2085_v32 }
 0x8f4   :  { %3495 = vmatmul.msk.bf16.gmra.mxu1 %vm18_vm6, %v2173_v39  ;;  %v2309_v39 = vld [vmem:[#allocation3 + $0x21] sm:$0x1] }
 0x8f5   :  { %2394 = vrot.lane.b32.xlu1 %v2309_v39, %s3730_s7 }
 0x94b   :  { %v2199_v6 = vpop.f32.mrf.mxu1 }
 0x94c   :  { %v2200_v2 = vadd.f32 %v3703_v7, %v2199_v6 }
 0x94e   :  { %v4736_v20 = vadd.f32 %v2200_v2, %v2163_v16 }
 0x950   :  { %v2213_v31 = vmax.f32 %v4736_v20, 0.0 }
 0x953   :  { %v2201_v4 = vpop.f32.mrf.mxu1 }
 0x954   :  { %v2202_v10 = vadd.f32 %v3703_v7, %v2201_v4 }
 0x956   :  { %v4738_v54 = vadd.f32 %v2202_v10, %v2165_v50 }
 0x958   :  { %v2214_v17 = vmax.f32 %v4738_v54, 0.0 }
 0x95a   :  { %v2217_v12 = vpack.c.bf16 %v2214_v17, %v2213_v31 }
 0x95c   :  { %3512 = vmatmul.msk.bf16.vlgmr.msra.gmra.mxu2 %vm376_vm3, %v2217_v12  ;;  %v3664_v12 = vld [vmem:[%s5203_s1 + $0x220] sm:$0xff] }
 0x95d   :  { %2576 = vmatpush.bf16.msra.mxu0 %v3664_v12 }
 0x971   :  { %v2204_v26 = vpop.f32.mrf.mxu1 }
 0x972   :  { %v2205_v45 = vadd.f32 %v3703_v7, %v2204_v26 }
 0x974   :  { %v4747_v55 = vadd.f32 %v2205_v45, %v2168_v13 }
 0x976   :  { %v2215_v58 = vmax.f32 %v4747_v55, 0.0 }
 0x979   :  { %v2206_v48 = vpop.f32.mrf.mxu1 }
 0x97a   :  { %v2207_v11 = vadd.f32 %v3703_v7, %v2206_v48 }
 0x97c   :  { %v4749_v24 = vadd.f32 %v2207_v11, %v2170_v51 }
 0x97e   :  { %v2216_v32 = vmax.f32 %v4749_v24, 0.0 }
 0x980   :  { %v2218_v40 = vpack.c.bf16 %v2216_v32, %v2215_v58 }
 0x982   :  { %3513 = vmatmul.msk.bf16.gmra.mxu2 %vm376_vm3, %v2218_v40 }
 0x9df   :  { %v2268_v1 = vpop.f32.mrf.mxu2 }
 0x9e0   :  { %v2269_v43 = vadd.f32 %v3704_v52, %v2268_v1 }
 0x9e2   :  { %v2278_v9 = vmax.f32 %v2269_v43, 0.0 }
 0x9e4   :  { %2282 = vst.msk [vmem:[#allocation3 + $0x8] sm:$0xff] %vm18_vm6, %v2278_v9 }
 0x9e7   :  { %v2270_v6 = vpop.f32.mrf.mxu2 }
 0x9e8   :  { %v2271_v7 = vadd.f32 %v3704_v52, %v2270_v6 }
 0x9ea   :  { %v2279_v15 = vmax.f32 %v2271_v7, 0.0 }
 0x9eb   :  { %v2298_v2 = vld [vmem:[#allocation3 + $0x7] sm:$0xff] }
 0x9ec   :  { %v2294_v47 = vld [vmem:[#allocation3 + $0x4] sm:$0xff]  ;;  %2283 = vst.msk [vmem:[#allocation3 + $0x10] sm:$0xff] %vm18_vm6, %v2279_v15  ;;  %2356 = vrot.lane.b32.xlu0 %v2298_v2, %s3727_s30 }
 0x9ed   :  { %v2290_v16 = vld [vmem:[#allocation3 + $0x3] sm:$0xff]  ;;  %2340 = vrot.lane.b32.xlu1 %v2294_v47, %s3728_s5 }
 0x9ee   :  { %2324 = vrot.lane.b32.xlu2 %v2290_v16, %s3729_s6  ;;  %v2302_v10 = vld [vmem:[#allocation3 + $0x8] sm:$0xff] }
 0x9f3   :  { %v2299_v4 = vld [vmem:[#allocation3 + $0xf] sm:$0xff] }
 0x9f4   :  { %v2291_v50 = vld [vmem:[#allocation3 + $0xb] sm:$0xff] }
 0x9f5   :  { %2358 = vrot.lane.b32.xlu1 %v2299_v4, %s3727_s30  ;;  %2326 = vrot.lane.b32.xlu0 %v2291_v50, %s3729_s6  ;;  %v2306_v21 = vld [vmem:[#allocation3 + $0x9] sm:$0xff]  ;;  %v2319_v50 = vld [vmem:[#allocation3 + $0x26] sm:$0x1] }
 0x9f6   :  { %2372 = vrot.lane.b32.xlu2 %v2302_v10, %s3726_s29  ;;  %v2303_v26 = vld [vmem:[#allocation3 + $0x10] sm:$0xff] }
 0x9f7   :  { %v2295_v45 = vld [vmem:[#allocation3 + $0xc] sm:$0xff] }
 0x9f8   :  { %v2312_v53 = vld [vmem:[#allocation3 + $0xd] sm:$0xff] }
 0x9f9   :  { %v2316_v1 = vld [vmem:[#allocation3 + $0xe] sm:$0xff] }
 0x9fa   :  { %v2459_v15 = vmul.f32 %v2316_v1, %v1946_v41  ;;  %v3661_v1 = vld [vmem:[%s5203_s1 + $0x208] sm:$0xff] }
 0x9fd   :  { %2388 = vrot.lane.b32.xlu1 %v2306_v21, %s3730_s7  ;;  %2374 = vrot.lane.b32.xlu0 %v2303_v26, %s3726_s29 }
 0x9fe   :  { %2342 = vrot.lane.b32.xlu2 %v2295_v45, %s3728_s5 }
 0xa05   :  { %2402 = vrot.lane.b32.xlu0 %v2295_v45, %s3732_s9  ;;  %v2273_v13 = vpop.f32.mrf.mxu2 }
 0xa06   :  { %2418 = vrot.lane.b32.xlu2 %v2312_v53, %s3731_s8  ;;  %v2274_v48 = vadd.f32 %v3704_v52, %v2273_v13 }
 0xa08   :  { %v2280_v51 = vmax.f32 %v2274_v48, 0.0 }
 0xa0a   :  { %2284 = vst.msk [vmem:[#allocation3 + $0x18] sm:$0xff] %vm18_vm6, %v2280_v51  ;;  %v2315_v51 = vld [vmem:[#allocation3 + $0x25] sm:$0x1] }
 0xa0d   :  { %v2275_v11 = vpop.f32.mrf.mxu2 }
 0xa0e   :  { %v2276_v40 = vadd.f32 %v3704_v52, %v2275_v11  ;;  %v3663_v11 = vld [vmem:[%s5203_s1 + $0x218] sm:$0xff] }
 0xa0f   :  { %2550 = vmatpush.bf16.msrb.mxu3 %v3663_v11 }
 0xa10   :  { %v2281_v39 = vmax.f32 %v2276_v40, 0.0 }
 0xa11   :  { %v2296_v43 = vld [vmem:[#allocation3 + $0x14] sm:$0xff]  ;;  %v2297_v10 = vld [vmem:[#allocation3 + $0x1c] sm:$0x1]  ;;  %v2301_v12 = vld [vmem:[#allocation3 + $0x1f] sm:$0x1] }
 0xa12   :  { %v2313_v9 = vld [vmem:[#allocation3 + $0x15] sm:$0xff]  ;;  %2285 = vst.msk [vmem:[#allocation3 + $0x20] sm:$0x1] %vm34_vm14, %v2281_v39  ;;  %2404 = vrot.lane.b32.xlu1 %v2296_v43, %s3732_s9  ;;  %v3662_v39 = vld [vmem:[%s5203_s1 + $0x210] sm:$0xff] }
 0xa13   :  { %v2307_v6 = vld [vmem:[#allocation3 + $0x11] sm:$0xff]  ;;  %2420 = vrot.lane.b32.xlu0 %v2313_v9, %s3731_s8  ;;  %v2293_v16 = vld [vmem:[#allocation3 + $0x1b] sm:$0x1]  ;;  %2551 = vmatpush.bf16.msrb.mxu3 %v3662_v39 }
 0xa14   :  { %v2317_v7 = vld [vmem:[#allocation3 + $0x16] sm:$0xff]  ;;  %2390 = vrot.lane.b32.xlu2 %v2307_v6, %s3730_s7 }
 0xa15   :  { %v2461_v52 = vmul.f32 %v2317_v7, %v1948_v30  ;;  %v2292_v47 = vld [vmem:[#allocation3 + $0x13] sm:$0xff]  ;;  %v2465_v30 = vmul.f32 %v2319_v50, %v1952_v49  ;;  %v2311_v49 = vld [vmem:[#allocation3 + $0x24] sm:$0x1]  ;;  %v4821_v7 = vpop.permute.xlu1 %2394 }
 0xa16   :  { %v2300_v21 = vld [vmem:[#allocation3 + $0x17] sm:$0xff] }
 0xa17   :  { %v2467_v2 = vpack.c.bf16 %v2461_v52, %v2459_v15  ;;  %v2304_v45 = vld [vmem:[#allocation3 + $0x18] sm:$0xff]  ;;  %2552 = vmatpush.bf16.msrb.mxu3 %v3661_v1  ;;  %v3659_v6 = vld [vmem:[%s5203_s1 + $0x1f8] sm:$0xff]  ;;  %v3658_v52 = vld [vmem:[%s5203_s1 + $0x1f0] sm:$0xff] }
 0xa18   :  { %v3660_v9 = vld [vmem:[%s5203_s1 + $0x200] sm:$0xff] }
 0xa19   :  { %3550 = vmatmul.msk.bf16.vlgmr.msra.gmra.mxu0 %vm18_vm6, %v2467_v2  ;;  %v2318_v4 = vld [vmem:[#allocation3 + $0x1e] sm:$0xff] }
 0xa1a   :  { %2328 = vrot.lane.b32.xlu1 %v2292_v47, %s3729_s6  ;;  %v2463_v41 = vmul.f32 %v2318_v4, %v1950_v59  ;;  %v2308_v53 = vld [vmem:[#allocation3 + $0x19] sm:$0xff] }
 0xa1b   :  { %2344 = vrot.lane.b32.xlu0 %v2296_v43, %s3728_s5  ;;  %v2305_v59 = vld [vmem:[#allocation3 + $0x20] sm:$0x1]  ;;  %2553 = vmatpush.bf16.msrb.mxu3 %v3660_v9  ;;  %v3656_v50 = vld [vmem:[%s5203_s1 + $0x1e0] sm:$0xff] }
 0xa1c   :  { %2330 = vrot.lane.b32.xlu2 %v2293_v16, %s3729_s6  ;;  %v2469_v26 = vpack.c.bf16 %v2465_v30, %v2463_v41  ;;  %v2314_v13 = vld [vmem:[#allocation3 + $0x1d] sm:$0xff] }
 0xa1d   :  { %v2310_v48 = vld [vmem:[#allocation3 + $0x1c] sm:$0xff] }
 0xa1e   :  { %v3657_v47 = vld [vmem:[%s5203_s1 + $0x1e8] sm:$0xff] }
 0xa1f   :  { %2554 = vmatpush.bf16.msrb.mxu3 %v3659_v6 }
 0xa22   :  { %2346 = vrot.lane.b32.xlu1 %v2297_v10, %s3728_s5 }
 0xa23   :  { %2362 = vrot.lane.b32.xlu0 %v2301_v12, %s3727_s30  ;;  %2555 = vmatpush.bf16.msrb.mxu3 %v3658_v52 }
 0xa24   :  { %2360 = vrot.lane.b32.xlu2 %v2300_v21, %s3727_s30  ;;  %v2286_v21 = vld [vmem:[#allocation3 + $0x2] sm:$0xff] }
 0xa27   :  { %2556 = vmatpush.bf16.msrb.mxu3 %v3657_v47 }
 0xa29   :  { %3551 = vmatmul.msk.bf16.gmra.mxu0 %vm18_vm6, %v2469_v26 }
 0xa2a   :  { %2376 = vrot.lane.b32.xlu1 %v2304_v45, %s3726_s29 }
 0xa2b   :  { %2392 = vrot.lane.b32.xlu0 %v2308_v53, %s3730_s7  ;;  %2557 = vmatpush.bf16.msrb.mxu3 %v3656_v50  ;;  %v2287_v53 = vld [vmem:[#allocation3 + $0xa] sm:$0xff] }
 0xa2c   :  { %2378 = vrot.lane.b32.xlu2 %v2305_v59, %s3726_s29 }
 0xa32   :  { %2422 = vrot.lane.b32.xlu1 %v2314_v13, %s3731_s8 }
 0xa33   :  { %2408 = vrot.lane.b32.xlu0 %v2311_v49, %s3732_s9 }
 0xa34   :  { %2406 = vrot.lane.b32.xlu2 %v2310_v48, %s3732_s9 }
 0xa3c   :  { %2424 = vrot.lane.b32.xlu2 %v2315_v51, %s3731_s8 }
 0xa48   :  { %v2325_v40 = vpop.permute.xlu2 %2324 }
 0xa49   :  { %v2430_v26 = vsel %vm18_vm6, %v2286_v21, %v2325_v40 }
 0xa50   :  { %v2373_v43 = vpop.permute.xlu2 %2372 }
 0xa58   :  { %v2343_v2 = vpop.permute.xlu2 %2342 }
 0xa5e   :  { %v2357_v15 = vpop.permute.xlu0 %2356 }
 0xa5f   :  { %v2341_v16 = vpop.permute.xlu1 %2340 }
 0xa60   :  { %v2419_v10 = vpop.permute.xlu2 %2418  ;;  %v2434_v45 = vsel %vm686_vm8, %v2430_v26, %v2341_v16 }
 0xa61   :  { %v2438_v49 = vsel %vm694_vm9, %v2434_v45, %v2357_v15 }
 0xa62   :  { %v2442_v39 = vsel %vm376_vm3, %v2438_v49, %v2373_v43  ;;  %v2289_v49 = vld [vmem:[#allocation3 + $0x1a] sm:$0x1] }
 0xa67   :  { %v2327_v4 = vpop.permute.xlu0 %2326  ;;  %v2359_v12 = vpop.permute.xlu1 %2358 }
 0xa68   :  { %v2431_v59 = vsel %vm18_vm6, %v2287_v53, %v2327_v4 }
 0xa69   :  { %v2435_v51 = vsel %vm686_vm8, %v2431_v59, %v2343_v2 }
 0xa6a   :  { %v2439_v9 = vsel %vm694_vm9, %v2435_v51, %v2359_v12 }
 0xa6e   :  { %v2391_v30 = vpop.permute.xlu2 %2390 }
 0xa6f   :  { %v2375_v41 = vpop.permute.xlu0 %2374  ;;  %v2389_v13 = vpop.permute.xlu1 %2388 }
 0xa70   :  { %v2446_v1 = vsel %vm709_vm10, %v2442_v39, %v2389_v13  ;;  %v2443_v40 = vsel %vm376_vm3, %v2439_v9, %v2375_v41 }
 0xa71   :  { %v2447_v15 = vsel %vm709_vm10, %v2443_v40, %v2391_v30  ;;  %v2288_v30 = vld [vmem:[#allocation3 + $0x12] sm:$0xff] }
 0xa76   :  { %v2331_v11 = vpop.permute.xlu2 %2330 }
 0xa77   :  { %v2403_v48 = vpop.permute.xlu0 %2402  ;;  %v2433_v18 = vsel %vm18_vm6, %v2289_v49, %v2331_v11 }
 0xa78   :  { %v2450_v6 = vsel %vm717_vm11, %v2446_v1, %v2403_v48 }
 0xa79   :  { %v2454_v52 = vsel %vm725_vm12, %v2450_v6, %v2419_v10 }
 0xa7a   :  { %v2458_v43 = vmul.f32 %v2454_v52, %v1945_v56 }
 0xa7e   :  { %v2361_v12 = vpop.permute.xlu2 %2360 }
 0xa84   :  { %v2405_v47 = vpop.permute.xlu1 %2404 }
 0xa85   :  { %v2421_v16 = vpop.permute.xlu0 %2420  ;;  %v2451_v4 = vsel %vm717_vm11, %v2447_v15, %v2405_v47 }
 0xa86   :  { %v2455_v2 = vsel %vm725_vm12, %v2451_v4, %v2421_v16  ;;  %v2379_v10 = vpop.permute.xlu2 %2378 }
 0xa87   :  { %v2460_v50 = vmul.f32 %v2455_v2, %v1947_v60 }
 0xa89   :  { %v2466_v41 = vpack.c.bf16 %v2460_v50, %v2458_v43 }
 0xa8b   :  { %2558 = vmatmul.bf16.vlgmr.msrb.gmra.mxu3 %v2466_v41  ;;  %v3665_v41 = vld [vmem:[%s5203_s1 + $0x228] sm:$0xff] }
 0xa8c   :  { %v2329_v21 = vpop.permute.xlu1 %2328  ;;  %2617 = vmatpush.bf16.msra.mxu1 %v3665_v41 }
 0xa8d   :  { %v2345_v26 = vpop.permute.xlu0 %2344  ;;  %v2432_v59 = vsel %vm18_vm6, %v2288_v30, %v2329_v21 }
 0xa8e   :  { %v2436_v13 = vsel %vm686_vm8, %v2432_v59, %v2345_v26  ;;  %v2407_v56 = vpop.permute.xlu2 %2406 }
 0xa8f   :  { %v2440_v48 = vsel %vm694_vm9, %v2436_v13, %v2361_v12 }
 0xa94   :  { %v2347_v45 = vpop.permute.xlu1 %2346 }
 0xa95   :  { %v2363_v53 = vpop.permute.xlu0 %2362  ;;  %v2437_v62 = vsel %vm686_vm8, %v2433_v18, %v2347_v45 }
 0xa96   :  { %v2441_v1 = vsel %vm694_vm9, %v2437_v62, %v2363_v53  ;;  %v2425_v47 = vpop.permute.xlu2 %2424  ;;  %v2578_v21 = vpop.f32.mrf.mxu0 }
 0xa97   :  { %v2445_v40 = vsel %vm376_vm3, %v2441_v1, %v2379_v10 }
 0xa98   :  { %v2449_v16 = vsel %vm709_vm10, %v2445_v40, %v4821_v7  ;;  %v3706_v40 = vld [vmem:[%s5204_s3 + $0xd] ss:$0 sm:$0xff] }
 0xa9c   :  { %v2377_v60 = vpop.permute.xlu1 %2376 }
 0xa9d   :  { %v2393_v51 = vpop.permute.xlu0 %2392  ;;  %v2444_v39 = vsel %vm376_vm3, %v2440_v48, %v2377_v60 }
 0xa9e   :  { %v2448_v9 = vsel %vm709_vm10, %v2444_v39, %v2393_v51  ;;  %v2580_v53 = vpop.f32.mrf.mxu0 }
 0xa9f   :  { %v2452_v52 = vsel %vm717_vm11, %v2448_v9, %v2407_v56 }
 0xaa4   :  { %v2423_v6 = vpop.permute.xlu1 %2422 }
 0xaa5   :  { %v2456_v11 = vsel %vm725_vm12, %v2452_v52, %v2423_v6  ;;  %v2409_v15 = vpop.permute.xlu0 %2408 }
 0xaa6   :  { %v2462_v4 = vmul.f32 %v2456_v11, %v1949_v8  ;;  %v2453_v2 = vsel %vm717_vm11, %v2449_v16, %v2409_v15  ;;  %v2583_v49 = vpop.f32.mrf.mxu0 }
 0xaa7   :  { %v2457_v43 = vsel %vm725_vm12, %v2453_v2, %v2425_v47 }
 0xaa8   :  { %v2464_v50 = vmul.f32 %v2457_v43, %v1951_v44 }
 0xaaa   :  { %v2468_v12 = vpack.c.bf16 %v2464_v50, %v2462_v4 }
 0xaac   :  { %2563 = vmatmul.bf16.gmra.mxu3 %v2468_v12 }
 0xaae   :  { %v2585_v48 = vpop.f32.mrf.mxu0 }
 0xb0e   :  { %v2559_v26 = vpop.f32.mrf.mxu3 }
 0xb0f   :  { %v2560_v8 = vadd.f32 %v3705_v23, %v2559_v26 }
 0xb11   :  { %v2579_v10 = vadd.f32 %v2578_v21, %v2560_v8 }
 0xb13   :  { %v2588_v44 = vmax.f32 %v2579_v10, 0.0 }
 0xb16   :  { %v2561_v7 = vpop.f32.mrf.mxu3 }
 0xb17   :  { %v2562_v45 = vadd.f32 %v3705_v23, %v2561_v7 }
 0xb19   :  { %v2581_v57 = vadd.f32 %v2580_v53, %v2562_v45 }
 0xb1b   :  { %v2589_v30 = vmax.f32 %v2581_v57, 0.0 }
 0xb1d   :  { %v2592_v59 = vpack.c.bf16 %v2589_v30, %v2588_v44 }
 0xb1f   :  { %3556 = vmatmul.msk.bf16.vlgmr.msra.gmra.mxu1 %vm18_vm6, %v2592_v59 }
 0xb2f   :  { %v2564_v13 = vpop.f32.mrf.mxu3 }
 0xb30   :  { %v2565_v18 = vadd.f32 %v3705_v23, %v2564_v13 }
 0xb32   :  { %v2584_v62 = vadd.f32 %v2583_v49, %v2565_v18 }
 0xb34   :  { %v2590_v39 = vmax.f32 %v2584_v62, 0.0 }
 0xb37   :  { %v2566_v56 = vpop.f32.mrf.mxu3 }
 0xb38   :  { %v2567_v60 = vadd.f32 %v3705_v23, %v2566_v56 }
 0xb3a   :  { %v2586_v51 = vadd.f32 %v2585_v48, %v2567_v60 }
 0xb3c   :  { %v2591_v1 = vmax.f32 %v2586_v51, 0.0 }
 0xb3e   :  { %v2593_v9 = vpack.c.bf16 %v2591_v1, %v2590_v39 }
 0xb40   :  { %3557 = vmatmul.msk.bf16.gmra.mxu1 %vm18_vm6, %v2593_v9  ;;  %vm2989_vm6 = vcmask 523266  }
 0xb9c   :  { %v2619_v6 = vpop.f32.mrf.mxu1 }
 0xb9d   :  { %v2620_v52 = vadd.f32 %v3706_v40, %v2619_v6 }
 0xb9f   :  { %v2629_v47 = vadd.f32 %v2620_v52, %v2213_v31  ;;  %v4899_v52 = vld [vmem:[%s5204_s3] ss:$0 sm:$0xff] }
 0xba1   :  { %v2633_v11 = vmax.f32 %v2629_v47, 0.0  ;;  %v4903_v47 = vadd.f32 %v4899_v52, %v4346_v38  ;;  %v4921_v38 = vadd.f32 %v4899_v52, %v4385_v27  ;;  %v4940_v27 = vadd.f32 %v4899_v52, %v4352_v5 }
 0xba3   :  { %v2637_v15 = vsel %vm376_vm3, %v2633_v11, -inf }
 0xba4   :  { %v2621_v16 = vpop.f32.mrf.mxu1  ;;  %2638 = vmax.xlane.f32.xlu2 %v2637_v15  ;;  %v4907_v15 = vadd.f32 %v4899_v52, %v4357_v0  ;;  %v4927_v0 = vadd.f32 %v4899_v52, %v4310_v3 }
 0xba5   :  { %v2622_v4 = vadd.f32 %v3706_v40, %v2621_v16  ;;  %v4911_v16 = vadd.f32 %v4899_v52, %v4362_v63  ;;  %v4931_v63 = vadd.f32 %v4899_v52, %v4329_v22 }
 0xba6   :  { %v270_v3 = vmax.f32 %v4907_v15, 0.0 }
 0xba7   :  { %v2630_v2 = vadd.f32 %v2622_v4, %v2214_v17  ;;  %v4915_v4 = vadd.f32 %v4899_v52, %v4367_v25  ;;  %v4935_v25 = vadd.f32 %v4899_v52, %v4337_v42  ;;  %v274_v42 = vmax.f32 %v4921_v38, 0.0 }
 0xba8   :  { %v266_v38 = vmax.f32 %v4931_v63, 0.0 }
 0xba9   :  { %v2634_v43 = vmax.f32 %v2630_v2, 0.0  ;;  %v250_v2 = vadd.f32 %v4899_v52, %v4374_v61  ;;  %v268_v61 = vmax.f32 %v4903_v47, 0.0  ;;  %v272_v22 = vmax.f32 %v4915_v4, 0.0 }
 0xbaa   :  { %v267_v47 = vmax.f32 %v4935_v25, 0.0 }
 0xbab   :  { %v2640_v50 = vsel %vm376_vm3, %v2634_v43, -inf }
 0xbac   :  { %2641 = vmax.xlane.f32.xlu2 %v2640_v50 }
 0xbbd   :  { %v2624_v12 = vpop.f32.mrf.mxu1 }
 0xbbe   :  { %v2625_v41 = vadd.f32 %v3706_v40, %v2624_v12 }
 0xbc0   :  { %v2631_v21 = vadd.f32 %v2625_v41, %v2215_v58  ;;  %v271_v41 = vmax.f32 %v4911_v16, 0.0 }
 0xbc2   :  { %v2635_v20 = vmax.f32 %v2631_v21, 0.0  ;;  %v273_v21 = vmax.f32 %v250_v2, 0.0 }
 0xbc4   :  { %v2643_v31 = vsel %vm376_vm3, %v2635_v20, -inf }
 0xbc5   :  { %v2626_v26 = vpop.f32.mrf.mxu1  ;;  %2644 = vmax.xlane.f32.xlu0 %v2643_v31 }
 0xbc6   :  { %v2627_v23 = vadd.f32 %v3706_v40, %v2626_v26 }
 0xbc8   :  { %v2632_v8 = vadd.f32 %v2627_v23, %v2216_v32 }
 0xbca   :  { %v2636_v54 = vmax.f32 %v2632_v8, 0.0 }
 0xbcc   :  { %v2647_v17 = vsel %vm2646_vm15, %v2636_v54, -inf }
 0xbcd   :  { %2648 = vmax.xlane.f32.xlu1 %v2647_v17 }
 0xc17   :  { %v2639_v7 = vpop.xlane.xlu2 %2638 }
 0xc18   :  { %v2650_v10 = vsub.f32 %v2633_v11, %v2639_v7 }
 0xc1a   :  { %v2654_v45 = vmul.f32 1.442695, %v2650_v10 }
 0xc1c   :  { %3707 = vpow2.f32 %v2654_v45 }
 0xc1f   :  { %v2642_v53 = vpop.xlane.xlu2 %2641 }
 0xc20   :  { %v2651_v30 = vsub.f32 %v2634_v43, %v2642_v53 }
 0xc22   :  { %v3708_v55 = vpop.eup %3707  ;;  %v2656_v24 = vmul.f32 1.442695, %v2651_v30 }
 0xc23   :  { %v2662_v58 = vsel %vm376_vm3, %v3708_v55, 0.0 }
 0xc24   :  { %2663 = vadd.xlane.f32.xlu2 %v2662_v58 }
 0xc38   :  { %v2645_v57 = vpop.xlane.xlu0 %2644 }
 0xc39   :  { %v2652_v44 = vsub.f32 %v2635_v20, %v2645_v57 }
 0xc3b   :  { %v2658_v59 = vmul.f32 1.442695, %v2652_v44 }
 0xc3d   :  { %3709 = vpow2.f32 %v2658_v59 }
 0xc3e   :  { %3711 = vpow2.f32 %v2656_v24 }
 0xc40   :  { %v2649_v32 = vpop.xlane.xlu1 %2648 }
 0xc41   :  { %v2653_v49 = vsub.f32 %v2636_v54, %v2649_v32 }
 0xc43   :  { %v3710_v13 = vpop.eup %3709  ;;  %v2660_v18 = vmul.f32 1.442695, %v2653_v49 }
 0xc44   :  { %v2668_v56 = vsel %vm376_vm3, %v3710_v13, 0.0  ;;  %v3712_v62 = vpop.eup %3711 }
 0xc45   :  { %3713 = vpow2.f32 %v2660_v18  ;;  %2669 = vadd.xlane.f32.xlu0 %v2668_v56  ;;  %v2665_v51 = vsel %vm376_vm3, %v3712_v62, 0.0 }
 0xc4b   :  { %v3714_v60 = vpop.eup %3713 }
 0xc4c   :  { %v2671_v48 = vsel %vm2646_vm15, %v3714_v60, 0.0 }
 0xc4d   :  { %2672 = vadd.xlane.f32.xlu1 %v2671_v48  ;;  %2666 = vadd.xlane.f32.xlu0 %v2665_v51 }
 0xc97   :  { %v2664_v39 = vpop.xlane.xlu2 %2663 }
 0xc98   :  { %3715 = vrcp.f32 %v2664_v39 }
 0xc9e   :  { %v3716_v6 = vpop.eup %3715 }
 0xc9f   :  { %v4923_v43 = vmul.f32 %v3716_v6, %v3708_v55 }
 0xca1   :  { %v2708_v31 = vrot.slane %v4923_v43, 5  ;;  %v4950_v23 = vrot.slane %v4923_v43, 6  ;;  %v2686_v8 = vrot.slane %v4923_v43, 7 }
 0xcb8   :  { %v2670_v1 = vpop.xlane.xlu0 %2669 }
 0xcb9   :  { %3717 = vrcp.f32 %v2670_v1 }
 0xcbf   :  { %v3718_v11 = vpop.eup %3717 }
 0xcc0   :  { %v2673_v9 = vpop.xlane.xlu1 %2672  ;;  %v2667_v40 = vpop.xlane.xlu0 %2666  ;;  %v4942_v50 = vmul.f32 %v3718_v11, %v3710_v13 }
 0xcc1   :  { %3719 = vrcp.f32 %v2673_v9 }
 0xcc2   :  { %3721 = vrcp.f32 %v2667_v40  ;;  %v4956_v54 = vrot.slane %v4942_v50, 6  ;;  %v2689_v7 = vrot.slane %v4942_v50, 7  ;;  %v2711_v45 = vrot.slane %v4942_v50, 5 }
 0xcc7   :  { %v3720_v12 = vpop.eup %3719 }
 0xcc8   :  { %v3722_v20 = vpop.eup %3721  ;;  %v2681_v26 = vmul.f32 %v3720_v12, %v3714_v60 }
 0xcc9   :  { %v4952_v5 = vmul.f32 %v3722_v20, %v3712_v62 }
 0xcca   :  { %v2703_v17 = vrot.slane %v2681_v26, 6  ;;  %v2691_v10 = vrot.slane %v2681_v26, 7  ;;  %v2713_v57 = vrot.slane %v2681_v26, 5  ;;  %v4967_v59 = vsel %vm310_vm4, %v2681_v26, %v2686_v8 }
 0xccb   :  { %v2699_v55 = vrot.slane %v4952_v5, 6  ;;  %v2709_v58 = vrot.slane %v4952_v5, 5  ;;  %v2687_v53 = vrot.slane %v4952_v5, 7 }
 0xccc   :  { %v2692_v44 = vsel %vm310_vm4, %v2689_v7, %v2691_v10  ;;  %v2704_v30 = vsel %vm2697_vm0, %v4956_v54, %v2703_v17  ;;  %v2714_v2 = vsel %vm2707_vm1, %v2711_v45, %v2713_v57 }
 0xccd   :  { %v2717_v24 = vsel %vm2697_vm0, %v2692_v44, %v4950_v23  ;;  %v2710_v32 = vsel %vm2707_vm1, %v2708_v31, %v2709_v58  ;;  %v2712_v49 = vsel %vm2707_vm1, %v2709_v58, %v2711_v45  ;;  %v4975_v13 = vsel %vm2697_vm0, %v4950_v23, %v2699_v55 }
 0xcce   :  { %v2728_v18 = vrot.slane %v2717_v24, 6  ;;  %v4978_v56 = vmul.f32 %v2717_v24, %v3933_v37  ;;  %v2736_v62 = vrot.slane %v2710_v32, 6  ;;  %v2738_v60 = vrot.slane %v2712_v49, 6 }
 0xccf   :  { %v2702_v48 = vsel %vm2697_vm0, %v2699_v55, %v4956_v54  ;;  %v2730_v51 = vrot.slane %v4975_v13, 6  ;;  %v2718_v39 = vsel %vm2707_vm1, %v2704_v30, %v2708_v31  ;;  %v2688_v1 = vsel %vm310_vm4, %v2686_v8, %v2687_v53 }
 0xcd0   :  { %v2784_v9 = vpack.c.bf16 %v4978_v56, %v4978_v56  ;;  %v2739_v40 = vsel %vm2697_vm0, %v2736_v62, %v2738_v60  ;;  %v2732_v6 = vrot.slane %v2702_v48, 6  ;;  %v2734_v11 = vrot.slane %v2718_v39, 6 }
 0xcd1   :  { %v4988_v37 = vmul.f32 %v2739_v40, %v273_v21  ;;  %v2690_v15 = vsel %vm310_vm4, %v2687_v53, %v2689_v7  ;;  %v4992_v4 = vmul.f32 %v2688_v1, %v3929_v34  ;;  %v2724_v7 = vrot.slane %v2688_v1, 6 }
 0xcd2   :  { %v2837_v12 = vsel %vm376_vm3, %v2784_v9, 0  ;;  %v2733_v20 = vsel %vm2697_vm0, %v2730_v51, %v2732_v6  ;;  %v2737_v31 = vsel %vm2697_vm0, %v2734_v11, %v2736_v62  ;;  %v2726_v26 = vrot.slane %v2690_v15, 6 }
 0xcd3   :  { %2843 = vmatpush.bf16.xpose.msrb.mxu2 %v2837_v12  ;;  %v2987_v8 = vmul.f32 %v4988_v37, %v4988_v37  ;;  %v5000_v21 = vmul.f32 %v2733_v20, %v270_v3  ;;  %v5002_v17 = vmul.f32 %v2737_v31, %v272_v22  ;;  %v5005_v34 = vmul.f32 %v2690_v15, %v3931_v36 }
 0xcd4   :  { %v2729_v10 = vsel %vm2697_vm0, %v2726_v26, %v2728_v18  ;;  %v2740_v45 = vrot.slane %v2714_v2, 6  ;;  %v2735_v55 = vsel %vm2697_vm0, %v2732_v6, %v2734_v11  ;;  %v264_v62 = vmax.f32 %v4927_v0, 0.0 }
 0xcd5   :  { %v3023_v58 = vsel %vm376_vm3, %v2987_v8, 0.0  ;;  %v2984_v53 = vmul.f32 %v5000_v21, %v5000_v21  ;;  %v2986_v3 = vmul.f32 %v5002_v17, %v5002_v17  ;;  %v2779_v22 = vpack.c.bf16 %v4988_v37, %v5002_v17 }
 0xcd6   :  { %3024 = vadd.xlane.f32.xlu0 %v3023_v58  ;;  %v2783_v36 = vpack.c.bf16 %v5005_v34, %v4992_v4  ;;  %v2760_v57 = vmul.f32 %v2729_v10, %v268_v61  ;;  %v2741_v44 = vsel %vm2697_vm0, %v2738_v60, %v2740_v45  ;;  %v2763_v30 = vmul.f32 %v2735_v55, %v271_v41 }
 0xcd7   :  { %v3014_v24 = vsel %vm376_vm3, %v2984_v53, 0.0  ;;  %v3020_v32 = vsel %vm376_vm3, %v2986_v3, 0.0  ;;  %v2766_v49 = vmul.f32 %v2741_v44, %v274_v42  ;;  %v230_v39 = vadd.f32 %v4899_v52, %v4318_v29 }
 0xcd8   :  { %3015 = vadd.xlane.f32.xlu1 %v3014_v24  ;;  %3021 = vadd.xlane.f32.xlu2 %v3020_v32  ;;  %v2778_v61 = vpack.c.bf16 %v2763_v30, %v5000_v21  ;;  %v2982_v16 = vmul.f32 %v2760_v57, %v2760_v57  ;;  %v2722_v41 = vrot.slane %v4967_v59, 6  ;;  %v2731_v60 = vsel %vm2697_vm0, %v2728_v18, %v2730_v51 }
 0xcd9   :  { %v2727_v1 = vsel %vm2697_vm0, %v2724_v7, %v2726_v26  ;;  %v269_v0 = vmax.f32 %v4940_v27, 0.0  ;;  %v2834_v42 = vsel %vm376_vm3, %v2783_v36, 0  ;;  %v5040_v29 = vmul.f32 %v4967_v59, %v3927_v33 }
 0xcda   :  { %v2988_v25 = vmul.f32 %v2766_v49, %v2766_v49  ;;  %v2985_v9 = vmul.f32 %v2763_v30, %v2763_v30  ;;  %v2759_v40 = vmul.f32 %v2727_v1, %v267_v47  ;;  %v2725_v6 = vsel %vm2697_vm0, %v2722_v41, %v2724_v7 }
 0xcdb   :  { %2844 = vmatpush.bf16.xpose.msrb.mxu2 %v2834_v42  ;;  %v5045_v18 = vmul.f32 %v4942_v50, %v3920_v28  ;;  %v2761_v63 = vmul.f32 %v2731_v60, %v269_v0  ;;  %v2758_v51 = vmul.f32 %v2725_v6, %v266_v38  ;;  %v265_v27 = vmax.f32 %v230_v39, 0.0 }
 0xcdc   :  { %v3008_v11 = vsel %vm376_vm3, %v2982_v16, 0.0  ;;  %v2756_v15 = vmul.f32 %v2702_v48, %v264_v62  ;;  %v2723_v33 = vsel %vm2697_vm0, %v4956_v54, %v2722_v41  ;;  %v225_v59 = vadd.f32 %v4899_v52, %v4298_v46 }
 0xcdd   :  { %v2782_v2 = vpack.c.bf16 %v5040_v29, %v5045_v18  ;;  %v3027_v12 = vsel %vm3026_vm2, %v2988_v25, 0.0  ;;  %v3017_v28 = vsel %vm376_vm3, %v2985_v9, 0.0  ;;  %v2776_v50 = vpack.c.bf16 %v2759_v40, %v2758_v51 }
 0xcde   :  { %3009 = vadd.xlane.f32.xlu0 %v3008_v11  ;;  %v2757_v20 = vmul.f32 %v2723_v33, %v265_v27  ;;  %v2777_v31 = vpack.c.bf16 %v2761_v63, %v2760_v57  ;;  %v2780_v26 = vpack.c.bf16 %v2766_v49, %v2766_v49  ;;  %v2981_v48 = vmul.f32 %v2759_v40, %v2759_v40 }
 0xcdf   :  { %v263_v21 = vmax.f32 %v225_v59, 0.0  ;;  %v2831_v54 = vsel %vm376_vm3, %v2782_v2, 0  ;;  %v2767_v46 = vmul.f32 %v4923_v43, %v3909_v14  ;;  %v2768_v52 = vmul.f32 %v4952_v5, %v3915_v19 }
 0xce0   :  { %3028 = vadd.xlane.f32.xlu1 %v3027_v12  ;;  %3018 = vadd.xlane.f32.xlu2 %v3017_v28  ;;  %v2775_v8 = vpack.c.bf16 %v2757_v20, %v2756_v15  ;;  %v2983_v7 = vmul.f32 %v2761_v63, %v2761_v63  ;;  %v2980_v10 = vmul.f32 %v2758_v51, %v2758_v51  ;;  %v2796_v55 = vrot.slane %v2776_v50, 1 }
 0xce1   :  { %v2754_v58 = vmul.f32 %v4950_v23, %v3821_v35  ;;  %v2755_v53 = vmul.f32 %v4975_v13, %v263_v21  ;;  %v2798_v3 = vrot.slane %v2777_v31, 1  ;;  %v2800_v36 = vrot.slane %v2778_v61, 1 }
 0xce2   :  { %v2794_v45 = vrot.slane %v2775_v8, 1  ;;  %v3005_v57 = vsel %vm376_vm3, %v2981_v48, 0.0  ;;  %v2802_v14 = vrot.slane %v2779_v22, 1  ;;  %v2804_v19 = vrot.slane %v2780_v26, 1 }
 0xce3   :  { %2845 = vmatpush.bf16.xpose.msrb.mxu2 %v2831_v54  ;;  %v2781_v43 = vpack.c.bf16 %v2768_v52, %v2767_v46  ;;  %v2799_v5 = vsel %vm1654_vm13, %v2796_v55, %v2798_v3  ;;  %v2801_v30 = vsel %vm1654_vm13, %v2798_v3, %v2800_v36  ;;  %v3011_v35 = vsel %vm376_vm3, %v2983_v7, 0.0 }
 0xce4   :  { %v2797_v44 = vsel %vm1654_vm13, %v2794_v45, %v2796_v55  ;;  %v3002_v23 = vsel %vm376_vm3, %v2980_v10, 0.0  ;;  %v2803_v13 = vsel %vm1654_vm13, %v2800_v36, %v2802_v14  ;;  %v2805_v24 = vsel %vm1654_vm13, %v2802_v14, %v2804_v19 }
 0xce5   :  { %v2774_v32 = vpack.c.bf16 %v2755_v53, %v2754_v58  ;;  %v2976_v37 = vmul.f32 %v2754_v58, %v2754_v58  ;;  %v2828_v17 = vsel %vm376_vm3, %v2781_v43, 0  ;;  %v2978_v22 = vmul.f32 %v2756_v15, %v2756_v15 }
 0xce6   :  { %3006 = vadd.xlane.f32.xlu0 %v3005_v57  ;;  %v2979_v49 = vmul.f32 %v2757_v20, %v2757_v20  ;;  %v3083_v41 = vmul.f32 %v4992_v4, %v4992_v4  ;;  %v2977_v60 = vmul.f32 %v2755_v53, %v2755_v53  ;;  %v3085_v1 = vmul.f32 %v4978_v56, %v4978_v56 }
 0xce7   :  { %v2793_v62 = vrot.slane %v2774_v32, 1  ;;  %v2990_v39 = vsel %vm2989_vm6, %v2976_v37, 0.0  ;;  %v2996_v47 = vsel %vm376_vm3, %v2978_v22, 0.0  ;;  %v3082_v25 = vmul.f32 %v5040_v29, %v5040_v29 }
 0xce8   :  { %3012 = vadd.xlane.f32.xlu1 %v3011_v35  ;;  %3003 = vadd.xlane.f32.xlu2 %v3002_v23  ;;  %v2999_v61 = vsel %vm376_vm3, %v2979_v49, 0.0  ;;  %v3098_v38 = vsel %vm376_vm3, %v3083_v41, 0.0  ;;  %v2993_v0 = vsel %vm376_vm3, %v2977_v60, 0.0  ;;  %v3105_v42 = vsel %vm3104_vm7, %v3085_v1, 0.0  ;;  %v63_v23 = vld [vmem:[%s5206_s2 + $0xa0] sm:$0xf] }
 0xce9   :  { %v2795_v16 = vsel %vm1654_vm13, %v2793_v62, %v2794_v45  ;;  %v3084_v4 = vmul.f32 %v5005_v34, %v5005_v34  ;;  %v3081_v9 = vmul.f32 %v5045_v18, %v5045_v18  ;;  %v3095_v56 = vsel %vm376_vm3, %v3082_v25, 0.0  ;;  %v68_v25 = vld [vmem:[%s5206_s2 + $0xc8] sm:$0xf] }
 0xcea   :  { %v3079_v63 = vmul.f32 %v2767_v46, %v2767_v46  ;;  %v3080_v51 = vmul.f32 %v2768_v52, %v2768_v52 }
 0xceb   :  { %2846 = vmatpush.bf16.xpose.msrb.mxu2 %v2828_v17  ;;  %v3101_v40 = vsel %vm376_vm3, %v3084_v4, 0.0  ;;  %v3092_v6 = vsel %vm376_vm3, %v3081_v9, 0.0  ;;  %v2887_v9 = vunpack.c.l.bf16 %v68_v25 }
 0xcec   :  { %v3086_v29 = vsel %vm376_vm3, %v3079_v63, 0.0  ;;  %v3089_v34 = vsel %vm376_vm3, %v3080_v51, 0.0 }
 0xcee   :  { %2991 = vadd.xlane.f32.xlu0 %v2990_v39  ;;  %v65_v39 = vld [vmem:[%s5206_s2 + $0xb0] sm:$0xf] }
 0xcf0   :  { %2997 = vadd.xlane.f32.xlu1 %v2996_v47  ;;  %3000 = vadd.xlane.f32.xlu2 %v2999_v61  ;;  %v66_v47 = vld [vmem:[%s5206_s2 + $0xb8] sm:$0xf]  ;;  %v2884_v61 = vunpack.c.l.bf16 %v65_v39  ;;  %v3572_v39 = vld [vmem:[%s5206_s2 + $0x70] sm:$0xf] }
 0xcf2   :  { %3558 = vmatmul.msk.bf16.vlgmr.msrb.gmra.mxu2 %vm376_vm3, %v2795_v16  ;;  %v2885_v16 = vunpack.c.l.bf16 %v66_v47  ;;  %v3585_v47 = vld [vmem:[%s5206_s2 + $0x74] sm:$0xf0] }
 0xcf6   :  { %3099 = vadd.xlane.f32.xlu0 %v3098_v38 }
 0xcf8   :  { %2994 = vadd.xlane.f32.xlu1 %v2993_v0  ;;  %3106 = vadd.xlane.f32.xlu2 %v3105_v42  ;;  %v67_v42 = vld [vmem:[%s5206_s2 + $0xc0] sm:$0xf] }
 0xcf9   :  { %v2886_v4 = vunpack.c.l.bf16 %v67_v42 }
 0xcfe   :  { %3096 = vadd.xlane.f32.xlu0 %v3095_v56 }
 0xd00   :  { %3102 = vadd.xlane.f32.xlu1 %v3101_v40  ;;  %3093 = vadd.xlane.f32.xlu2 %v3092_v6 }
 0xd02   :  { %3559 = vmatmul.msk.bf16.gmra.mxu2 %vm376_vm3, %v2797_v44 }
 0xd08   :  { %3087 = vadd.xlane.f32.xlu1 %v3086_v29  ;;  %3090 = vadd.xlane.f32.xlu2 %v3089_v34 }
 0xd12   :  { %3560 = vmatmul.msk.bf16.gmra.mxu2 %vm376_vm3, %v2799_v5 }
 0xd22   :  { %3561 = vmatmul.msk.bf16.gmra.mxu2 %vm376_vm3, %v2801_v30 }
 0xd32   :  { %3562 = vmatmul.msk.bf16.gmra.mxu2 %vm376_vm3, %v2803_v13  ;;  %v64_v13 = vld [vmem:[%s5206_s2 + $0xa8] sm:$0xf] }
 0xd33   :  { %v2883_v32 = vunpack.c.l.bf16 %v64_v13  ;;  %v3576_v13 = vld [vmem:[%s5206_s2 + $0x80] sm:$0xf] }
 0xd42   :  { %3563 = vmatmul.msk.bf16.gmra.mxu2 %vm376_vm3, %v2805_v24  ;;  %v2882_v24 = vunpack.c.l.bf16 %v63_v23 }
 0xd49   :  { %v3025_v18 = vpop.xlane.xlu0 %3024 }
 0xd4b   :  { %v3016_v27 = vpop.xlane.xlu1 %3015  ;;  %v3022_v11 = vpop.xlane.xlu2 %3021 }
 0xd4c   :  { %v3035_v12 = vpack.c.bf16 %v3025_v18, %v3022_v11 }
 0xd4e   :  { %v3053_v31 = vrot.slane %v3035_v12, 1  ;;  %v54_v12 = vld [vmem:[%s5206_s2 + $0x40] sm:$0x3] }
 0xd51   :  { %v3010_v15 = vpop.xlane.xlu0 %3009 }
 0xd52   :  { %3564 = vmatmul.msk.bf16.gmra.mxu2 %vm376_vm3, %v2804_v19  ;;  %vm2915_vm3 = vcmask 818176  }
 0xd53   :  { %v3029_v33 = vpop.xlane.xlu1 %3028  ;;  %v3019_v59 = vpop.xlane.xlu2 %3018 }
 0xd54   :  { %v3036_v2 = vpack.c.bf16 %v3029_v33, %v3029_v33  ;;  %v3034_v20 = vpack.c.bf16 %v3019_v59, %v3016_v27  ;;  %v74_v33 = vld [vmem:[%s5206_s2 + $0xf8] sm:$0xf] }
 0xd56   :  { %v3055_v28 = vrot.slane %v3036_v2, 1  ;;  %v3051_v8 = vrot.slane %v3034_v20, 1  ;;  %v73_v2 = vld [vmem:[%s5206_s2 + $0xf0] sm:$0xf]  ;;  %v72_v20 = vld [vmem:[%s5206_s2 + $0xe8] sm:$0xf] }
 0xd58   :  { %v3064_v50 = vsel %vm2697_vm0, %v3055_v28, 0  ;;  %v3056_v54 = vsel %vm1654_vm13, %v3053_v31, %v3055_v28  ;;  %v3054_v10 = vsel %vm1654_vm13, %v3051_v8, %v3053_v31  ;;  %v2893_v28 = vunpack.c.l.bf16 %v74_v33 }
 0xd59   :  { %3067 = vmatpush.bf16.msrb.mxu1 %v3064_v50  ;;  %v3007_v46 = vpop.xlane.xlu0 %3006 }
 0xd5b   :  { %v3013_v26 = vpop.xlane.xlu1 %3012  ;;  %v3004_v48 = vpop.xlane.xlu2 %3003 }
 0xd5c   :  { %v3033_v21 = vpack.c.bf16 %v3013_v26, %v3010_v15  ;;  %v3032_v7 = vpack.c.bf16 %v3007_v46, %v3004_v48  ;;  %v75_v15 = vld [vmem:[%s5206_s2 + $0x100] sm:$0x3]  ;;  %v2892_v26 = vunpack.c.l.bf16 %v73_v2  ;;  %v70_v46 = vld [vmem:[%s5206_s2 + $0xd8] sm:$0xf] }
 0xd5d   :  { %3068 = vmatpush.bf16.msrb.mxu1 %v3056_v54  ;;  %v2894_v59 = vunpack.c.l.bf16 %v75_v15  ;;  %v71_v48 = vld [vmem:[%s5206_s2 + $0xe0] sm:$0xf] }
 0xd5e   :  { %v3049_v52 = vrot.slane %v3033_v21, 1  ;;  %v3047_v58 = vrot.slane %v3032_v7, 1  ;;  %v2891_v21 = vunpack.c.l.bf16 %v72_v20  ;;  %v2890_v7 = vunpack.c.l.bf16 %v71_v48 }
 0xd60   :  { %v3052_v3 = vsel %vm1654_vm13, %v3049_v52, %v3051_v8  ;;  %v3050_v57 = vsel %vm1654_vm13, %v3047_v58, %v3049_v52 }
 0xd61   :  { %3069 = vmatpush.bf16.msrb.mxu1 %v3054_v10  ;;  %v2992_v44 = vpop.xlane.xlu0 %2991 }
 0xd63   :  { %v2998_v45 = vpop.xlane.xlu1 %2997  ;;  %v3001_v55 = vpop.xlane.xlu2 %3000 }
 0xd64   :  { %v3031_v53 = vpack.c.bf16 %v3001_v55, %v2998_v45  ;;  %v69_v45 = vld [vmem:[%s5206_s2 + $0xd0] sm:$0xf]  ;;  %v2889_v55 = vunpack.c.l.bf16 %v70_v46 }
 0xd65   :  { %3070 = vmatpush.bf16.msrb.mxu1 %v3052_v3 }
 0xd66   :  { %v3045_v36 = vrot.slane %v3031_v53, 1 }
 0xd68   :  { %v3048_v43 = vsel %vm1654_vm13, %v3045_v36, %v3047_v58 }
 0xd69   :  { %3071 = vmatpush.bf16.msrb.mxu1 %v3050_v57 }
 0xd6b   :  { %v2995_v14 = vpop.xlane.xlu1 %2994 }
 0xd6c   :  { %v3030_v19 = vpack.c.bf16 %v2995_v14, %v2992_v44 }
 0xd6d   :  { %3072 = vmatpush.bf16.msrb.mxu1 %v3048_v43 }
 0xd6e   :  { %v3044_v5 = vrot.slane %v3030_v19, 1 }
 0xd70   :  { %v3046_v30 = vsel %vm1654_vm13, %v3044_v5, %v3045_v36  ;;  %v2888_v36 = vunpack.c.l.bf16 %v69_v45  ;;  %v62_v5 = vld [vmem:[%s5206_s2 + $0x90] sm:$0x1] }
 0xd71   :  { %3073 = vmatpush.bf16.msrb.mxu1 %v3046_v30  ;;  %v3107_v30 = vpop.xlane.xlu2 %3106 }
 0xd74   :  { %3579 = vmatmul.msk.bf16.vlgmr.msrb.gmra.mxu1 %vm2915_vm3, %v54_v12 }
 0xd75   :  { %v2848_v35 = vpop.f32.mrf.mxu2 }
 0xd76   :  { %v5115_v17 = vmul.f32 %v2882_v24, %v2848_v35  ;;  %v2949_v35 = vunpack.c.l.b16 %v62_v5  ;;  %v3586_v24 = vld [vmem:[%s5206_s2 + $0x84] sm:$0xf0] }
 0xd78   :  { %v2953_v23 = vpack.c.b16 %v2949_v35, %v2949_v35 }
 0xd7d   :  { %v2850_v37 = vpop.f32.mrf.mxu2 }
 0xd7e   :  { %v5117_v22 = vmul.f32 %v2883_v32, %v2850_v37  ;;  %v2961_v32 = vsel %vm310_vm4, %v2953_v23, 0  ;;  %v3577_v37 = vor.u32 %v3586_v24, %v3576_v13 }
 0xd7f   :  { %2967 = vmatpush.bf16.msrb.mxu0 %v2961_v32 }
 0xd80   :  { %v2908_v49 = vpack.c.bf16 %v5117_v22, %v5115_v17  ;;  %v3568_v17 = vld [vmem:[%s5206_s2 + $0x60] sm:$0xf]  ;;  %v3584_v22 = vld [vmem:[%s5206_s2 + $0x64] sm:$0xf0] }
 0xd83   :  { %2968 = vmatpush.bf16.msrb.mxu0 %v3577_v37 }
 0xd85   :  { %v2853_v62 = vpop.f32.mrf.mxu2 }
 0xd86   :  { %v5127_v60 = vmul.f32 %v2884_v61, %v2853_v62  ;;  %v3100_v62 = vpop.xlane.xlu0 %3099  ;;  %v3111_v61 = vpack.c.bf16 %v3107_v30, %v3107_v30 }
 0xd88   :  { %v3116_v42 = vsel %vm310_vm4, %v3111_v61, 0  ;;  %vm3172_vm4 = vcmask 11264  }
 0xd8d   :  { %v2855_v41 = vpop.f32.mrf.mxu2 }
 0xd8e   :  { %v5129_v1 = vmul.f32 %v2885_v16, %v2855_v41  ;;  %v3573_v16 = vor.u32 %v3585_v47, %v3572_v39  ;;  %v3103_v41 = vpop.xlane.xlu1 %3102 }
 0xd8f   :  { %v3110_v25 = vpack.c.bf16 %v3103_v41, %v3100_v62 }
 0xd90   :  { %v2909_v38 = vpack.c.bf16 %v5129_v1, %v5127_v60  ;;  %2969 = vmatpush.bf16.msrb.mxu0 %v3573_v16 }
 0xd95   :  { %v2858_v0 = vpop.f32.mrf.mxu2 }
 0xd96   :  { %v2899_v40 = vmul.f32 %v2886_v4, %v2858_v0  ;;  %v3094_v0 = vpop.xlane.xlu2 %3093  ;;  %v3097_v4 = vpop.xlane.xlu0 %3096 }
 0xd97   :  { %v3088_v60 = vpop.xlane.xlu1 %3087 }
 0xd9d   :  { %v2860_v56 = vpop.f32.mrf.mxu2 }
 0xd9e   :  { %v2900_v6 = vmul.f32 %v2887_v9, %v2860_v56  ;;  %v3109_v9 = vpack.c.bf16 %v3097_v4, %v3094_v0  ;;  %v3091_v1 = vpop.xlane.xlu2 %3090  ;;  %v55_v56 = vld [vmem:[%s5206_s2 + $0x50] sm:$0x1] }
 0xda0   :  { %v2910_v63 = vpack.c.bf16 %v2900_v6, %v2899_v40  ;;  %v3733_v6 = vmov 0  }
 0xda1   :  { %3692 = vset.pattern.permute.xlu0 %v3733_v6 }
 0xda5   :  { %v2863_v51 = vpop.f32.mrf.mxu2 }
 0xda6   :  { %v2901_v19 = vmul.f32 %v2888_v36, %v2863_v51 }
 0xdad   :  { %v2865_v29 = vpop.f32.mrf.mxu2 }
 0xdae   :  { %v2902_v44 = vmul.f32 %v2889_v55, %v2865_v29 }
 0xdb0   :  { %v2911_v43 = vpack.c.bf16 %v2902_v44, %v2901_v19 }
 0xdb5   :  { %v2868_v34 = vpop.f32.mrf.mxu2 }
 0xdb6   :  { %v2903_v57 = vmul.f32 %v2890_v7, %v2868_v34 }
 0xdbd   :  { %v2870_v18 = vpop.f32.mrf.mxu2 }
 0xdbe   :  { %v2904_v58 = vmul.f32 %v2891_v21, %v2870_v18 }
 0xdc0   :  { %v2912_v14 = vpack.c.bf16 %v2904_v58, %v2903_v57 }
 0xdc5   :  { %v2873_v27 = vpop.f32.mrf.mxu2 }
 0xdc6   :  { %v2905_v10 = vmul.f32 %v2892_v26, %v2873_v27 }
 0xdcd   :  { %v2875_v11 = vpop.f32.mrf.mxu2 }
 0xdce   :  { %v2906_v54 = vmul.f32 %v2893_v28, %v2875_v11 }
 0xdd0   :  { %v2913_v53 = vpack.c.bf16 %v2906_v54, %v2905_v10 }
 0xdd5   :  { %v2878_v50 = vpop.f32.mrf.mxu2 }
 0xdd6   :  { %v2907_v31 = vmul.f32 %v2894_v59, %v2878_v50 }
 0xdd8   :  { %v2914_v8 = vpack.c.bf16 %v2907_v31, %v2907_v31 }
 0xdda   :  { %v2920_v52 = vsel %vm2697_vm0, %v2914_v8, 0 }
 0xddb   :  { %2923 = vmatpush.bf16.msra.mxu3 %v2920_v52 }
 0xddd   :  { %v2880_v3 = vpop.f32.mrf.mxu2 }
 0xddf   :  { %2924 = vmatpush.bf16.msra.mxu3 %v2913_v53 }
 0xde3   :  { %2925 = vmatpush.bf16.msra.mxu3 %v2912_v14 }
 0xde7   :  { %2926 = vmatpush.bf16.msra.mxu3 %v2911_v43 }
 0xdeb   :  { %2927 = vmatpush.bf16.msra.mxu3 %v2910_v63 }
 0xdef   :  { %2928 = vmatpush.bf16.msra.mxu3 %v2909_v38  ;;  %v3108_v38 = vpack.c.bf16 %v3091_v1, %v3088_v60 }
 0xdf1   :  { %v3075_v40 = vpop.f32.mrf.mxu1 }
 0xdf2   :  { %3134 = vperm.xlu0 %3692, %v3075_v40  }
 0xdf3   :  { %2929 = vmatpush.bf16.msra.mxu3 %v2908_v49  ;;  %v3569_v49 = vor.u32 %v3584_v22, %v3568_v17 }
 0xdf5   :  { %2970 = vmatpush.bf16.msrb.mxu0 %v3569_v49 }
 0xdf6   :  { %3565 = vmatmul.msk.bf16.vlgmr.msra.gmra.mxu3 %vm2915_vm3, %v54_v12 }
 0xdf7   :  { %3122 = vmatpush.bf16.msrb.mxu3 %v3116_v42 }
 0xdf9   :  { %v3077_v63 = vpop.f32.mrf.mxu1 }
 0xdfb   :  { %3123 = vmatpush.bf16.msrb.mxu3 %v3110_v25 }
 0xdff   :  { %3124 = vmatpush.bf16.msrb.mxu3 %v3109_v9 }
 0xe03   :  { %3125 = vmatpush.bf16.msrb.mxu3 %v3108_v38 }
 0xe06   :  { %3580 = vmatmul.msk.bf16.vlgmr.msrb.gmra.mxu3 %vm297_vm5, %v55_v56 }
 0xe64   :  { %v3135_v59 = vpop.permute.xlu0 %3134 }
 0xe79   :  { %v2931_v51 = vpop.f32.mrf.mxu3 }
 0xe7a   :  { %v2935_v29 = vpack.c.bf16 %v2931_v51, %v2931_v51 }
 0xe7c   :  { %3578 = vmatmul.msk.bf16.vlgmr.msrb.gmra.mxu0 %vm297_vm5, %v2935_v29 }
 0xe81   :  { %v2933_v34 = vpop.f32.mrf.mxu3 }
 0xe89   :  { %v3127_v18 = vpop.f32.mrf.mxu3 }
 0xe8a   :  { %3138 = vxpose.xlu1.b32.start.end [1/1] (short) (narrow) %v3127_v18, 8 }
 0xe91   :  { %v3129_v27 = vpop.f32.mrf.mxu3 }
 0xef9   :  { %v2972_v11 = vpop.f32.mrf.mxu0 }
 0xefa   :  { %v3131_v33 = vmul.f32 2.0, %v2972_v11 }
 0xefc   :  { %v3137_v12 = vsub.f32 %v3131_v33, %v3135_v59 }
 0xf01   :  { %v2974_v15 = vpop.f32.mrf.mxu0 }
 0xf2e   :  { %v3154_v2 = vpop.trf.xlu1 }
 0xf2f   :  { %v3170_v28 = vperm.slane %v3154_v2, 0 }
 0xf31   :  { %v3171_v50 = vsub.f32 %v3137_v12, %v3170_v28 }
 0xf33   :  { %3173 = vst.msk [vmem:[%s5207_s4] sm:$0xf] %vm3172_vm4, %v3171_v50 }

</bundles_post_ra>
